<compile_context>
chip_gen: v6e
topology: v6e:2x2x1
jax: 0.10.0
libtpu: 0.0.40
codegen_flags: <defaults>
</compile_context>

<pallas_src>
import jax
import jax.numpy as jnp
import numpy as np
from jax.experimental import pallas as pl
from jax.experimental.pallas import tpu as pltpu


# ----------------------------------------------------------------------------
# Pallas kernels
# ----------------------------------------------------------------------------

def _dot(a, b):
    return jnp.dot(a, b, preferred_element_type=jnp.float32)


def _bf16(x):
    return x.astype(jnp.bfloat16)


def snerf_mlp_kernel(x_ref, wA_ref, bA_ref, wB_ref, b0_ref, wC_ref, bC_ref,
                     wD_ref, out_ref):
    """Fused SNeRFMLP: 8-layer trunk (skip at layer 5), bottleneck, one
    view-conditioned layer, fused density|grad|rgb heads AND their epilogues
    (sigma ReLU, rgb sigmoid, -l2_normalize on grad), emitted as one
    lane-dense (rows, 128) slab:
        lane 0     = density (ReLU)
        lanes 1..3 = normals_pred (= -l2_normalize(grad))
        lanes 4..6 = rgb (sigmoid)
        lanes 7..  = 0

    Stacked operands:
        wA (8,256,256): [L1, L2, L3, L4, L5a, L6, L7, bottleneck]
        bA (8,256)    : [b1, b2, b3, b4, b5,  b6, b7, b_bottleneck]
        wB (2,128,256): [L0 (pos_enc rows), L5b (pos_enc rows)]   b0 (1,256)
        wC (2,256,128): [view (bottleneck rows), density|grad head]
        bC (2,128)    : [view bias, fused head bias]
        wD (2,128,128): [view (cond rows 64..90), rgb head (from hv)]
    """
    relu = lambda z: jnp.maximum(z, 0.0)

    xin = x_ref[...]                                   # (T, 128) bf16
    bA = bA_ref[...]                                   # (8, 256) f32
    bC = bC_ref[...]                                   # (2, 128) f32

    h = _bf16(relu(_dot(xin, wB_ref[0]) + b0_ref[...]))          # layer 0
    for k in range(4):                                            # layers 1..4
        h = _bf16(relu(_dot(h, wA_ref[k]) + bA[k:k + 1]))
    # skip layer 5: relu(L5(cat([h, pos_enc]))) == relu(h@W5a + xin@W5b + b5)
    h = _bf16(relu(_dot(h, wA_ref[4]) + _dot(xin, wB_ref[1]) + bA[4:5]))
    h = _bf16(relu(_dot(h, wA_ref[5]) + bA[5:6]))                 # layer 6
    h = _bf16(relu(_dot(h, wA_ref[6]) + bA[6:7]))                 # layer 7

    bottleneck = _bf16(_dot(h, wA_ref[7]) + bA[7:8])              # (T, 256)
    # view branch: relu(L(cat([bottleneck, cond]))); cond lives in xin lanes 64..90
    hv = _bf16(relu(_dot(bottleneck, wC_ref[0]) + _dot(xin, wD_ref[0]) + bC[0:1]))

    # fused heads + fused epilogues
    raw = _dot(h, wC_ref[1]) + _dot(hv, wD_ref[1]) + bC[1:2]      # (T, 128) f32
    lane = jax.lax.broadcasted_iota(jnp.int32, raw.shape, 1)
    is_grad = (lane >= 1) & (lane <= 3)
    grad = jnp.where(is_grad, raw, 0.0)
    inv_norm = jax.lax.rsqrt(
        jnp.maximum(jnp.sum(grad * grad, axis=-1, keepdims=True),
                    jnp.finfo(jnp.float32).eps))
    sig = 1.0 / (1.0 + jnp.exp(-raw))
    out = jnp.where(lane == 0, jnp.maximum(raw, 0.0),
          jnp.where(is_grad, -grad * inv_norm,
          jnp.where((lane >= 4) & (lane <= 6), sig, 0.0)))
    out_ref[...] = out


def view_mlp_kernel(x_ref, wP_ref, wQ_ref, wR_ref, w3b_ref, b256_ref, b128_ref,
                    out_ref):
    """Fused 9-layer ViewMLP (tanh) with the two skip concats expressed as
    split matmuls, followed by l2-normalize + pad/scale.  Input and output are
    padded to 128 lanes; padded lanes are exactly zero before the final scale
    so the 128-lane l2 norm equals the 7-lane norm.

    Stacked operands:
        wP (4,128,256): [L0 (rows 0..6 real), L4, L7a, L7b]
        wQ (3,256,256): [L1, L2 (cols 0..248 real), L5]
        wR (3,256,128): [L3a (rows 0..248 real), L6, L8 (cols 0..6 real)]
        w3b (128,128) : L3b (rows 0..6 real)
        b256 (6,256)  : [b0, b1, b2(pad), b4, b5, b7]
        b128 (3,128)  : [b3, b6, b8(pad)]
    """
    tanh = jnp.tanh
    b256 = b256_ref[...]
    b128 = b128_ref[...]

    x0 = x_ref[...]                                              # (T, 128) bf16
    x = _bf16(tanh(_dot(x0, wP_ref[0]) + b256[0:1]))             # L0 -> 256
    x = _bf16(tanh(_dot(x, wQ_ref[0]) + b256[1:2]))              # L1 -> 256
    x = _bf16(tanh(_dot(x, wQ_ref[1]) + b256[2:3]))              # L2 -> 256 (249 real)
    # i == 2: cat([x, inputs]) feeds layer 3
    x = _bf16(tanh(_dot(x, wR_ref[0]) + _dot(x0, w3b_ref[...]) + b128[0:1]))
    inp1 = x                                                     # i == 3: inputs = x
    x = _bf16(tanh(_dot(x, wP_ref[1]) + b256[3:4]))              # L4 -> 256
    x = _bf16(tanh(_dot(x, wQ_ref[2]) + b256[4:5]))              # L5 -> 256
    x = _bf16(tanh(_dot(x, wR_ref[1]) + b128[1:2]))              # L6 -> 128
    # i == 6: cat([x, inputs]) feeds layer 7
    x = _bf16(tanh(_dot(x, wP_ref[2]) + _dot(inp1, wP_ref[3]) + b256[5:6]))
    x = tanh(_dot(x, wR_ref[2]) + b128[2:3])                     # (T, 128), lanes 7.. = 0

    pad = 0.001
    inv_norm = jax.lax.rsqrt(
        jnp.maximum(jnp.sum(x * x, axis=-1, keepdims=True),
                    jnp.finfo(jnp.float32).eps))
    # NOTE: lanes 7..127 end up exactly -pad; callers must slice [:, :7].
    out_ref[...] = (x * inv_norm) * (1.0 + 2.0 * pad) - pad


# ----------------------------------------------------------------------------
# Pallas call wrapper (row-tiled grid, resident single-buffered weights,
# lane-dense I/O)
# ----------------------------------------------------------------------------

_MAX_TILE = 1024            # fills each grid step; per-step overhead amortized
_WEIGHT_BUF = [1]           # cached: 1 = single-buffered weights, None = default


def _round_up(x, m):
    return ((x + m - 1) // m) * m


def _num_grid_min_steps():
    # v7x exposes two TensorCores per chip; give the "parallel" grid axis at
    # least two steps there so both cores get work.  v5e/v6e have one TC.
    try:
        kind = jax.devices()[0].device_kind.lower()
        if "v7" in kind:
            return 2
    except Exception:
        pass
    return 1


def _vmem_limit_bytes(tile, weights, in_dim, out_dim):
    wbytes = sum(int(np.prod(w.shape)) * w.dtype.itemsize for w in weights)
    io = 2 * tile * in_dim * 2 + 2 * tile * out_dim * 4   # double-buffered x/out
    interm = 10 * tile * 256 * 4                          # live activations
    est = 2 * wbytes + io + interm + (4 << 20)            # headroom
    return int(min(max(est, 16 << 20), 48 << 20))


def _run_rowwise_mlp(kernel, x_packed, weights, out_dim=128, max_tile=_MAX_TILE):
    """Run a fused row-wise MLP kernel over `x_packed` ([rows, 128] bf16).

    The grid is chosen first (to minimize pad waste and to keep >= 2 steps on
    multi-TC chips), then a 16-row-aligned tile.  Weights stay resident via
    constant index maps; the output is one lane-dense f32 [rows, out_dim]
    slab."""
    n, f = x_packed.shape
    grid_n = max(pl.cdiv(n, max_tile), _num_grid_min_steps())
    tile = max(_round_up(pl.cdiv(n, grid_n), 16), 16)
    n_pad = grid_n * tile
    if n_pad != n:
        x_packed = jnp.pad(x_packed, ((0, n_pad - n), (0, 0)))

    vmem_limit = _vmem_limit_bytes(tile, weights, f, out_dim)

    def call(weight_buffer_count):
        w_mode = (pl.Buffered(weight_buffer_count)
                  if weight_buffer_count is not None else None)
        in_specs = [pl.BlockSpec((tile, f), lambda i: (i, 0))]
        in_specs += [pl.BlockSpec(w.shape, lambda i, nd=w.ndim: (0,) * nd,
                                  pipeline_mode=w_mode)
                     for w in weights]
        return pl.pallas_call(
            kernel,
            grid=(grid_n,),
            in_specs=in_specs,
            out_specs=pl.BlockSpec((tile, out_dim), lambda i: (i, 0)),
            out_shape=jax.ShapeDtypeStruct((n_pad, out_dim), jnp.float32),
            compiler_params=pltpu.CompilerParams(
                dimension_semantics=("parallel",),
                vmem_limit_bytes=vmem_limit),
        )(x_packed, *weights)

    try:
        out = call(_WEIGHT_BUF[0])
    except Exception:
        # TODO(synk): some jax versions reject single-buffered input BlockSpecs
        # (pipeline_mode=pl.Buffered(1)); fall back to the default pipelining.
        _WEIGHT_BUF[0] = None
        out = call(None)
    return out[:n]


# ----------------------------------------------------------------------------
# Plain-JAX glue (helper.* equivalents)
# ----------------------------------------------------------------------------

def pos_enc(x, min_deg, max_deg):
    scales = jnp.array([2.0 ** i for i in range(min_deg, max_deg)],
                       dtype=x.dtype)
    xb = (x[..., None, :] * scales[:, None]).reshape(x.shape[:-1] + (-1,))
    four_feat = jnp.sin(jnp.concatenate([xb, xb + 0.5 * jnp.pi], axis=-1))
    return jnp.concatenate([x, four_feat], axis=-1)


def sample_along_rays(rays_o, rays_d, num_samples, near, far, randomized,
                      lindisp):
    bsz = rays_o.shape[0]
    t_vals = jnp.linspace(0.0, 1.0, num_samples, dtype=jnp.float32)
    if lindisp:
        t_vals = 1.0 / (1.0 / near * (1.0 - t_vals) + 1.0 / far * t_vals)
    else:
        t_vals = near * (1.0 - t_vals) + far * t_vals
    # randomized=False path (deterministic) used in this script.
    t_vals = jnp.broadcast_to(t_vals, (bsz, num_samples))
    coords = rays_o[..., None, :] + t_vals[..., :, None] * rays_d[..., None, :]
    return t_vals, coords


def volumetric_rendering(rgb, sigma, t_vals, dirs, white_bkgd):
    eps = 1e-10
    dists = jnp.concatenate(
        [t_vals[..., 1:] - t_vals[..., :-1],
         jnp.full_like(t_vals[..., :1], 1e10)], axis=-1)
    dists = dists * jnp.linalg.norm(dirs[..., None, :], axis=-1)
    alpha = 1.0 - jnp.exp(-sigma[..., 0] * dists)
    accum_prod = jnp.concatenate(
        [jnp.ones_like(alpha[..., :1]),
         jnp.cumprod(1.0 - alpha[..., :-1] + eps, axis=-1)], axis=-1)
    weights = alpha * accum_prod
    comp_rgb = (weights[..., None] * rgb).sum(axis=-2)
    depth = (weights * t_vals).sum(axis=-1)
    acc = weights.sum(axis=-1)
    if white_bkgd:
        comp_rgb = comp_rgb + (1.0 - acc[..., None])
    return comp_rgb, acc, weights, depth


def sorted_piecewise_constant_pdf(bins, weights, num_samples, randomized):
    eps = 1e-5
    weight_sum = weights.sum(axis=-1, keepdims=True)
    padding = jnp.maximum(0.0, eps - weight_sum)
    weights = weights + padding / weights.shape[-1]
    weight_sum = weight_sum + padding
    pdf = weights / weight_sum
    cdf = jnp.minimum(1.0, jnp.cumsum(pdf[..., :-1], axis=-1))
    cdf = jnp.concatenate(
        [jnp.zeros_like(cdf[..., :1]), cdf, jnp.ones_like(cdf[..., :1])], -1)

    # deterministic (randomized=False) sample positions
    u = jnp.linspace(0.0, 1.0 - float(jnp.finfo(jnp.float32).eps), num_samples)
    u = jnp.broadcast_to(u, bins.shape[:-1] + (num_samples,))

    mask = u[..., None, :] >= cdf[..., :, None]

    def find_interval(x):
        x0 = jnp.max(jnp.where(mask, x[..., None], x[..., :1, None]), -2)
        x1 = jnp.min(jnp.where(~mask, x[..., None], x[..., -1:, None]), -2)
        return x0, x1

    bins_g0, bins_g1 = find_interval(bins)
    cdf_g0, cdf_g1 = find_interval(cdf)
    t = jnp.clip(jnp.nan_to_num((u - cdf_g0) / (cdf_g1 - cdf_g0)), 0.0, 1.0)
    return bins_g0 + t * (bins_g1 - bins_g0)


def sample_pdf(bins, weights, origins, directions, t_vals, num_samples,
               randomized):
    t_samples = sorted_piecewise_constant_pdf(bins, weights, num_samples,
                                              randomized)
    t_vals = jnp.sort(jnp.concatenate([t_vals, t_samples], axis=-1), axis=-1)
    coords = origins[..., None, :] + t_vals[..., :, None] * directions[..., None, :]
    return t_vals, coords


def get_rays_uvst(rays_o, rays_d, z0, z1):
    # two-plane (z=z0, z=z1) light-field parameterization of each ray
    t0 = (z0 - rays_o[..., 2:3]) / rays_d[..., 2:3]
    t1 = (z1 - rays_o[..., 2:3]) / rays_d[..., 2:3]
    uv = rays_o[..., :2] + t0 * rays_d[..., :2]
    st = rays_o[..., :2] + t1 * rays_d[..., :2]
    return jnp.concatenate([uv, st], axis=-1)


def get_rays_d(uvst):
    d = jnp.concatenate(
        [uvst[..., 2:4] - uvst[..., 0:2], jnp.ones_like(uvst[..., :1])], -1)
    return d / jnp.linalg.norm(d, axis=-1, keepdims=True)


def get_interest_point(uvst, pts_z):
    uv, st = uvst[..., 0:2], uvst[..., 2:4]
    xy = uv + (st - uv) * pts_z
    return jnp.concatenate([xy, pts_z], axis=-1)


# ----------------------------------------------------------------------------
# Parameter init (deterministic, xavier-uniform like the PyTorch module),
# pre-padded / stacked / bf16 for the kernels.
# ----------------------------------------------------------------------------

_POS = 63           # pos_enc(x, 0, 10) width
_COND = 27          # pos_enc(viewdirs, 0, 4) width
_COND_OFF = 64      # cond lanes inside the packed 128-lane input
_WDT = jnp.bfloat16


def _init_linear(key, fan_in, fan_out):
    kw, kb = jax.random.split(key)
    limit = np.sqrt(6.0 / (fan_in + fan_out))
    w = jax.random.uniform(kw, (fan_in, fan_out), jnp.float32, -limit, limit)
    bound = 1.0 / np.sqrt(fan_in)
    b = jax.random.uniform(kb, (1, fan_out), jnp.float32, -bound, bound)
    return w, b


def _pad_rows(w, rows, offset=0):
    wp = jnp.zeros((rows, w.shape[1]), jnp.float32)
    return wp.at[offset:offset + w.shape[0]].set(w)


def _assert_zero(x, name):
    # zero-padding invariants the packed 128-lane layout relies on
    assert not bool(jnp.any(x != 0)), f"padding invariant violated: {name}"


def init_snerf_mlp_params(key, netwidth=256, netwidth_condition=128):
    keys = jax.random.split(key, 13)
    in_dims = [_POS, netwidth, netwidth, netwidth, netwidth,
               netwidth + _POS, netwidth, netwidth]
    pts = [_init_linear(keys[i], in_dims[i], netwidth) for i in range(8)]
    dens = _init_linear(keys[8], netwidth, 1)
    grad = _init_linear(keys[9], netwidth, 3)
    bott = _init_linear(keys[10], netwidth, netwidth)
    view = _init_linear(keys[11], netwidth + _COND, netwidth_condition)
    rgb = _init_linear(keys[12], netwidth_condition, 3)

    w5, b5 = pts[5]
    # Stack A: 256->256 matmuls from h: layers 1..4, 5a (skip, h part), 6, 7, bottleneck
    wA = jnp.stack([pts[1][0], pts[2][0], pts[3][0], pts[4][0],
                    w5[:netwidth], pts[6][0], pts[7][0], bott[0]], axis=0)
    bA = jnp.concatenate([pts[1][1], pts[2][1], pts[3][1], pts[4][1],
                          b5, pts[6][1], pts[7][1], bott[1]], axis=0)
    # Stack B: packed-input(128)->256: layer 0, skip 5b (pos_enc rows 0..62)
    wB = jnp.stack([_pad_rows(pts[0][0], 128), _pad_rows(w5[netwidth:], 128)],
                   axis=0)
    b0 = pts[0][1]
    # Stack C: 256->128: view layer (bottleneck rows), fused density|grad head
    vw, vb = view
    w_dg = jnp.zeros((netwidth, 128), jnp.float32)
    w_dg = w_dg.at[:, 0:1].set(dens[0]).at[:, 1:4].set(grad[0])
    wC = jnp.stack([vw[:netwidth], w_dg], axis=0)
    b_out = jnp.zeros((1, 128), jnp.float32)
    b_out = (b_out.at[:, 0:1].set(dens[1])
                  .at[:, 1:4].set(grad[1])
                  .at[:, 4:7].set(rgb[1]))
    bC = jnp.concatenate([vb, b_out], axis=0)
    # Stack D: 128->128: view layer cond rows (packed lanes 64..90), rgb head
    vwb = _pad_rows(vw[netwidth:], 128, offset=_COND_OFF)
    w_rgbp = jnp.zeros((netwidth_condition, 128), jnp.float32).at[:, 4:7].set(rgb[0])
    wD = jnp.stack([vwb, w_rgbp], axis=0)

    _assert_zero(wB[0, _POS:], "snerf w0 rows 63..127")
    _assert_zero(wB[1, _POS:], "snerf w5b rows 63..127")
    _assert_zero(wD[0, :_COND_OFF], "snerf vwb rows 0..63")
    _assert_zero(wD[0, _COND_OFF + _COND:], "snerf vwb rows 91..127")
    _assert_zero(wC[1][:, 4:], "snerf density|grad head cols 4..127")
    _assert_zero(wD[1][:, :4], "snerf rgb head cols 0..3")
    _assert_zero(wD[1][:, 7:], "snerf rgb head cols 7..127")
    _assert_zero(bC[1:2, 7:], "snerf head bias cols 7..127")

    return [wA.astype(_WDT), bA, wB.astype(_WDT), b0,
            wC.astype(_WDT), bC, wD.astype(_WDT)]


def init_view_mlp_params(key):
    dim_in = [7, 256, 256, 256, 128, 256, 256, 256, 256]
    dim_out = [256, 256, 249, 128, 256, 256, 128, 256, 7]
    keys = jax.random.split(key, 9)
    layers = [_init_linear(keys[i], dim_in[i], dim_out[i]) for i in range(9)]
    (w0, b0), (w1, b1), (w2, b2), (w3, b3), (w4, b4), \
        (w5, b5), (w6, b6), (w7, b7), (w8, b8) = layers

    # L2 output 249 -> 256 lanes (padded lanes get zero weight & bias)
    w2p = jnp.zeros((256, 256), jnp.float32).at[:, :249].set(w2)
    b2p = jnp.zeros((1, 256), jnp.float32).at[:, :249].set(b2)
    # L3 skip split: cat([x(249->256 lanes), inputs(7->128 lanes)])
    w3a = jnp.zeros((256, 128), jnp.float32).at[:249].set(w3[:249])
    w3b = jnp.zeros((128, 128), jnp.float32).at[:7].set(w3[249:])
    # L8 output 7 -> 128 lanes
    w8p = jnp.zeros((256, 128), jnp.float32).at[:, :7].set(w8)
    b8p = jnp.zeros((1, 128), jnp.float32).at[:, :7].set(b8)

    wP = jnp.stack([_pad_rows(w0, 128), w4, w7[:128], w7[128:]], axis=0)
    wQ = jnp.stack([w1, w2p, w5], axis=0)
    wR = jnp.stack([w3a, w6, w8p], axis=0)
    b256 = jnp.concatenate([b0, b1, b2p, b4, b5, b7], axis=0)
    b128 = jnp.concatenate([b3, b6, b8p], axis=0)

    _assert_zero(wP[0, 7:], "view L0 rows 7..127")
    _assert_zero(w3b[7:], "view L3b rows 7..127")
    _assert_zero(wR[0, 249:], "view L3a rows 249..255")
    _assert_zero(wQ[1][:, 249:], "view L2 cols 249..255")
    _assert_zero(b256[2:3, 249:], "view b2 cols 249..255")
    _assert_zero(wR[2][:, 7:], "view L8 cols 7..127")
    _assert_zero(b128[2:3, 7:], "view b8 cols 7..127")

    return [wP.astype(_WDT), wQ.astype(_WDT), wR.astype(_WDT),
            w3b.astype(_WDT), b256, b128]


# ----------------------------------------------------------------------------
# Module forwards (glue around the Pallas kernels)
# ----------------------------------------------------------------------------

def _pack_snerf_inputs(samples, cond_enc, min_deg, max_deg):
    """samples: [B,S,3], cond_enc: [B,27] -> packed [B*S,128] bf16 rows."""
    x_enc = pos_enc(samples, min_deg, max_deg)                 # [B, S, 63]
    b, s, f = x_enc.shape
    c = cond_enc.shape[-1]
    cond_b = jnp.broadcast_to(cond_enc[:, None, :], (b, s, c))
    packed = jnp.concatenate(
        [x_enc,
         jnp.zeros((b, s, _COND_OFF - f), x_enc.dtype),
         cond_b,
         jnp.zeros((b, s, 128 - _COND_OFF - c), x_enc.dtype)], axis=-1)
    return packed.reshape(-1, 128).astype(_WDT), (b, s)


def snerf_mlp_forward_batched(mlp_params, inputs_list, min_deg=0, max_deg=10):
    """Run one fused SNeRFMLP pallas_call over a list of (samples, cond_enc)
    streams that share the same weights; returns one result dict per stream."""
    packs, shapes = [], []
    for samples, cond in inputs_list:
        p, bs = _pack_snerf_inputs(samples, cond, min_deg, max_deg)
        packs.append(p)
        shapes.append(bs)
    x_all = jnp.concatenate(packs, axis=0)

    out = _run_rowwise_mlp(snerf_mlp_kernel, x_all, mlp_params, out_dim=128)

    results, off = [], 0
    for (b, s) in shapes:
        n = b * s
        slab = out[off:off + n]
        off += n
        # epilogues (relu / sigmoid / -l2_normalize) already fused in-kernel
        density = slab[:, 0:1].reshape(b, s, 1)
        normals_pred = slab[:, 1:4].reshape(b, s, 3)
        rgb = slab[:, 4:7].reshape(b, s, 3)
        normals = jnp.zeros((b, s, 3), jnp.float32)  # eval path (no autograd normals)
        results.append(dict(rgb=rgb, density=density, normals=normals,
                            normals_pred=normals_pred))
    return results


def view_mlp_forward(view_params, x):
    """x: [B, 7] -> [B, 7] (l2-normalized + pad/scale)."""
    n, f = x.shape
    xp = jnp.pad(x, ((0, 0), (0, 128 - f))).astype(_WDT)
    out = _run_rowwise_mlp(view_mlp_kernel, xp, view_params, out_dim=128)
    return out[:, :7]


def snerf_forward(params, rays, randomized, white_bkgd, near, far,
                  num_levels=2, num_coarse_samples=8, num_fine_samples=16,
                  min_deg_point=0, max_deg_point=10, deg_view=4,
                  lindisp=False):
    ret = []
    viewdirs_enc1 = pos_enc(rays["viewdirs"], 0, deg_view)
    for i_level in range(num_levels):
        if i_level == 0:
            mlp = params["coarse"]
            t_vals1, samples1 = sample_along_rays(
                rays["rays_o"], rays["rays_d"], num_coarse_samples // 2,
                near, far, randomized, lindisp)
            (res1,) = snerf_mlp_forward_batched(
                mlp, [(samples1, viewdirs_enc1)], min_deg_point, max_deg_point)
            comp_rgb1, acc1, weights1, depth = volumetric_rendering(
                res1["rgb"], res1["density"], t_vals1, rays["rays_d"],
                white_bkgd)
            res1["weights"] = weights1
            normal = (weights1[..., None] * res1["normals_pred"]).sum(axis=-2)

            pts1 = rays["rays_o"] + depth[:, None] * rays["rays_d"]
            pts_z = pts1[..., 2:]
            uvst = get_rays_uvst(rays["rays_o"], rays["rays_d"], 0.0, 1.0)
            uvst_normal = jnp.concatenate([normal, uvst], axis=-1)
            uvst_normal_pred = view_mlp_forward(params["view"], uvst_normal)
            uvst_pred = uvst_normal_pred[..., 3:]
            rays_o_pred = get_interest_point(uvst_pred, pts_z)
            rays_d_pred = get_rays_d(uvst_pred)
            # second ViewMLP call depends on the first call's output -> separate
            uvst_normal_repred = view_mlp_forward(params["view"],
                                                  -uvst_normal_pred)
            uvst_repred = uvst_normal_repred[..., 3:]

            viewdirs_enc2 = pos_enc(rays_d_pred, 0, deg_view)
            t_vals2, samples2 = sample_along_rays(
                rays_o_pred, rays_d_pred, num_coarse_samples // 2,
                near, far, randomized, lindisp)
            # depends on the view branch above -> cannot merge with the 1st call
            (res2,) = snerf_mlp_forward_batched(
                mlp, [(samples2, viewdirs_enc2)], min_deg_point, max_deg_point)
            comp_rgb2, acc2, weights2, _ = volumetric_rendering(
                res2["rgb"], res2["density"], t_vals2, rays_d_pred, white_bkgd)
            res2["weights"] = weights2
        else:
            mlp = params["fine"]
            t_mids1 = 0.5 * (t_vals1[..., 1:] + t_vals1[..., :-1])
            t_vals1, samples1 = sample_pdf(
                t_mids1, weights1[..., 1:-1], rays["rays_o"], rays["rays_d"],
                t_vals1, num_fine_samples // 2, randomized)
            t_mids2 = 0.5 * (t_vals2[..., 1:] + t_vals2[..., :-1])
            t_vals2, samples2 = sample_pdf(
                t_mids2, weights2[..., 1:-1], rays_o_pred, rays_d_pred,
                t_vals2, num_fine_samples // 2, randomized)
            # both fine streams share weights and are independent -> one call
            res1, res2 = snerf_mlp_forward_batched(
                mlp, [(samples1, viewdirs_enc1), (samples2, viewdirs_enc2)],
                min_deg_point, max_deg_point)
            comp_rgb1, acc1, weights1, _ = volumetric_rendering(
                res1["rgb"], res1["density"], t_vals1, rays["rays_d"],
                white_bkgd)
            res1["weights"] = weights1
            normal = (weights1[..., None] * res1["normals_pred"]).sum(axis=-2)
            comp_rgb2, acc2, weights2, _ = volumetric_rendering(
                res2["rgb"], res2["density"], t_vals2, rays_d_pred, white_bkgd)
            res2["weights"] = weights2

        res = dict(comp_rgb=comp_rgb1 + comp_rgb2, acc=acc1 + acc2,
                   normal=normal)
        ret.append([res, res1, res2])
    ret.append((uvst_pred, uvst_repred))
    return ret


# ----------------------------------------------------------------------------
# Demo
# ----------------------------------------------------------------------------

if __name__ == "__main__":
    key = jax.random.PRNGKey(0)
    k_o, k_d, k_coarse, k_fine, k_view = jax.random.split(key, 5)

    B = 4  # number of rays (small demo; production callers should batch 1000s)
    rays_o = jax.random.uniform(k_o, (B, 3), jnp.float32, -0.5, 0.5)
    rays_o = rays_o.at[:, 2].add(-2.0)                  # origins at z ~ -2
    rays_d = jax.random.uniform(k_d, (B, 3), jnp.float32, -0.2, 0.2)
    rays_d = rays_d.at[:, 2].set(1.0)                   # pointing toward +z
    viewdirs = rays_d / jnp.linalg.norm(rays_d, axis=-1, keepdims=True)
    rays = dict(rays_o=rays_o, rays_d=rays_d, viewdirs=viewdirs)

    params = dict(
        coarse=init_snerf_mlp_params(k_coarse),
        fine=init_snerf_mlp_params(k_fine),
        view=init_view_mlp_params(k_view),
    )

    out = snerf_forward(
        params, rays, randomized=False, white_bkgd=False, near=0.5, far=3.5,
        num_levels=2, num_coarse_samples=8, num_fine_samples=16,
        min_deg_point=0, max_deg_point=10, deg_view=4, lindisp=False)

    jax.block_until_ready(out)

    # light sanity checks on shapes and finiteness
    assert out[0][0]["comp_rgb"].shape == (B, 3)
    assert out[1][1]["rgb"].shape[0] == B
    assert out[2][0].shape == (B, 4) and out[2][1].shape == (B, 4)
    assert bool(jnp.all(jnp.isfinite(out[0][0]["comp_rgb"])))
    assert bool(jnp.all(jnp.isfinite(out[1][0]["comp_rgb"])))
    assert bool(jnp.all(jnp.isfinite(out[2][0])))
    print("KERNEL_OK")
</pallas_src>

<mosaic_0001>
module attributes {stable_mosaic.version = 11 : i64} {
  func.func @snerf_mlp_kernel(%arg0: i32, %arg1: memref<16x128xbf16, #tpu.memory_space<vmem>>, %arg2: memref<8x256x256xbf16, #tpu.memory_space<vmem>>, %arg3: memref<8x256xf32, #tpu.memory_space<vmem>>, %arg4: memref<2x128x256xbf16, #tpu.memory_space<vmem>>, %arg5: memref<1x256xf32, #tpu.memory_space<vmem>>, %arg6: memref<2x256x128xbf16, #tpu.memory_space<vmem>>, %arg7: memref<2x128xf32, #tpu.memory_space<vmem>>, %arg8: memref<2x128x128xbf16, #tpu.memory_space<vmem>>, %arg9: memref<16x128xf32, #tpu.memory_space<vmem>>) attributes {dimension_semantics = [#tpu.dimension_semantics<parallel>], iteration_bounds = array<i64: 1>, scalar_prefetch = 0 : i64, scratch_operands = 0 : i64, tpu.core_type = #tpu.core_type<tc>, window_params = [{transform_indices = @transform_0, window_bounds = array<i64: 16, 128>}, {pipeline_mode = #tpu.pipeline_mode<synchronous>, transform_indices = @transform_1, window_bounds = array<i64: 8, 256, 256>}, {pipeline_mode = #tpu.pipeline_mode<synchronous>, transform_indices = @transform_2, window_bounds = array<i64: 8, 256>}, {pipeline_mode = #tpu.pipeline_mode<synchronous>, transform_indices = @transform_3, window_bounds = array<i64: 2, 128, 256>}, {pipeline_mode = #tpu.pipeline_mode<synchronous>, transform_indices = @transform_4, window_bounds = array<i64: 1, 256>}, {pipeline_mode = #tpu.pipeline_mode<synchronous>, transform_indices = @transform_5, window_bounds = array<i64: 2, 256, 128>}, {pipeline_mode = #tpu.pipeline_mode<synchronous>, transform_indices = @transform_6, window_bounds = array<i64: 2, 128>}, {pipeline_mode = #tpu.pipeline_mode<synchronous>, transform_indices = @transform_7, window_bounds = array<i64: 2, 128, 128>}, {transform_indices = @transform_8, window_bounds = array<i64: 16, 128>}]} {
    %c0 = arith.constant 0 : index
    %c0_0 = arith.constant 0 : index
    %0 = vector.load %arg1[%c0, %c0_0] : memref<16x128xbf16, #tpu.memory_space<vmem>>, vector<16x128xbf16>
    %c0_1 = arith.constant 0 : index
    %c0_2 = arith.constant 0 : index
    %1 = vector.load %arg3[%c0_1, %c0_2] : memref<8x256xf32, #tpu.memory_space<vmem>>, vector<8x256xf32>
    %c0_3 = arith.constant 0 : index
    %c0_4 = arith.constant 0 : index
    %2 = vector.load %arg7[%c0_3, %c0_4] : memref<2x128xf32, #tpu.memory_space<vmem>>, vector<2x128xf32>
    %c0_5 = arith.constant 0 : index
    %c0_6 = arith.constant 0 : index
    %c0_7 = arith.constant 0 : index
    %3 = vector.load %arg4[%c0_5, %c0_6, %c0_7] : memref<2x128x256xbf16, #tpu.memory_space<vmem>>, vector<1x128x256xbf16>
    %4 = vector.shape_cast %3 : vector<1x128x256xbf16> to vector<128x256xbf16>
    %cst = arith.constant dense<0.000000e+00> : vector<16x256xf32>
    %5 = tpu.matmul %0, %4, %cst {dimension_numbers = #tpu.dot_dimension_numbers<[1], [0], [0], [1], [0, 0, 1, 1], [], []>} : vector<16x128xbf16>, vector<128x256xbf16>, vector<16x256xf32> -> vector<16x256xf32>
    %c0_8 = arith.constant 0 : index
    %c0_9 = arith.constant 0 : index
    %6 = vector.load %arg5[%c0_8, %c0_9] : memref<1x256xf32, #tpu.memory_space<vmem>>, vector<1x256xf32>
    %7 = vector.broadcast %6 : vector<1x256xf32> to vector<16x256xf32>
    %8 = arith.addf %5, %7 : vector<16x256xf32>
    %cst_10 = arith.constant 0.000000e+00 : f32
    %9 = vector.broadcast %cst_10 : f32 to vector<16x256xf32>
    %10 = arith.maximumf %8, %9 : vector<16x256xf32>
    %11 = arith.truncf %10 : vector<16x256xf32> to vector<16x256xbf16>
    %c0_11 = arith.constant 0 : index
    %c0_12 = arith.constant 0 : index
    %c0_13 = arith.constant 0 : index
    %12 = vector.load %arg2[%c0_11, %c0_12, %c0_13] : memref<8x256x256xbf16, #tpu.memory_space<vmem>>, vector<1x256x256xbf16>
    %13 = vector.shape_cast %12 : vector<1x256x256xbf16> to vector<256x256xbf16>
    %cst_14 = arith.constant dense<0.000000e+00> : vector<16x256xf32>
    %14 = tpu.matmul %11, %13, %cst_14 {dimension_numbers = #tpu.dot_dimension_numbers<[1], [0], [0], [1], [0, 0, 1, 1], [], []>} : vector<16x256xbf16>, vector<256x256xbf16>, vector<16x256xf32> -> vector<16x256xf32>
    %15 = vector.extract_strided_slice %1 {offsets = [0, 0], sizes = [1, 256], strides = [1, 1]} : vector<8x256xf32> to vector<1x256xf32>
    %16 = vector.broadcast %15 : vector<1x256xf32> to vector<16x256xf32>
    %17 = arith.addf %14, %16 : vector<16x256xf32>
    %cst_15 = arith.constant 0.000000e+00 : f32
    %18 = vector.broadcast %cst_15 : f32 to vector<16x256xf32>
    %19 = arith.maximumf %17, %18 : vector<16x256xf32>
    %20 = arith.truncf %19 : vector<16x256xf32> to vector<16x256xbf16>
    %c1 = arith.constant 1 : index
    %c0_16 = arith.constant 0 : index
    %c0_17 = arith.constant 0 : index
    %21 = vector.load %arg2[%c1, %c0_16, %c0_17] : memref<8x256x256xbf16, #tpu.memory_space<vmem>>, vector<1x256x256xbf16>
    %22 = vector.shape_cast %21 : vector<1x256x256xbf16> to vector<256x256xbf16>
    %cst_18 = arith.constant dense<0.000000e+00> : vector<16x256xf32>
    %23 = tpu.matmul %20, %22, %cst_18 {dimension_numbers = #tpu.dot_dimension_numbers<[1], [0], [0], [1], [0, 0, 1, 1], [], []>} : vector<16x256xbf16>, vector<256x256xbf16>, vector<16x256xf32> -> vector<16x256xf32>
    %24 = vector.extract_strided_slice %1 {offsets = [1, 0], sizes = [1, 256], strides = [1, 1]} : vector<8x256xf32> to vector<1x256xf32>
    %25 = vector.broadcast %24 : vector<1x256xf32> to vector<16x256xf32>
    %26 = arith.addf %23, %25 : vector<16x256xf32>
    %cst_19 = arith.constant 0.000000e+00 : f32
    %27 = vector.broadcast %cst_19 : f32 to vector<16x256xf32>
    %28 = arith.maximumf %26, %27 : vector<16x256xf32>
    %29 = arith.truncf %28 : vector<16x256xf32> to vector<16x256xbf16>
    %c2 = arith.constant 2 : index
    %c0_20 = arith.constant 0 : index
    %c0_21 = arith.constant 0 : index
    %30 = vector.load %arg2[%c2, %c0_20, %c0_21] : memref<8x256x256xbf16, #tpu.memory_space<vmem>>, vector<1x256x256xbf16>
    %31 = vector.shape_cast %30 : vector<1x256x256xbf16> to vector<256x256xbf16>
    %cst_22 = arith.constant dense<0.000000e+00> : vector<16x256xf32>
    %32 = tpu.matmul %29, %31, %cst_22 {dimension_numbers = #tpu.dot_dimension_numbers<[1], [0], [0], [1], [0, 0, 1, 1], [], []>} : vector<16x256xbf16>, vector<256x256xbf16>, vector<16x256xf32> -> vector<16x256xf32>
    %33 = vector.extract_strided_slice %1 {offsets = [2, 0], sizes = [1, 256], strides = [1, 1]} : vector<8x256xf32> to vector<1x256xf32>
    %34 = vector.broadcast %33 : vector<1x256xf32> to vector<16x256xf32>
    %35 = arith.addf %32, %34 : vector<16x256xf32>
    %cst_23 = arith.constant 0.000000e+00 : f32
    %36 = vector.broadcast %cst_23 : f32 to vector<16x256xf32>
    %37 = arith.maximumf %35, %36 : vector<16x256xf32>
    %38 = arith.truncf %37 : vector<16x256xf32> to vector<16x256xbf16>
    %c3 = arith.constant 3 : index
    %c0_24 = arith.constant 0 : index
    %c0_25 = arith.constant 0 : index
    %39 = vector.load %arg2[%c3, %c0_24, %c0_25] : memref<8x256x256xbf16, #tpu.memory_space<vmem>>, vector<1x256x256xbf16>
    %40 = vector.shape_cast %39 : vector<1x256x256xbf16> to vector<256x256xbf16>
    %cst_26 = arith.constant dense<0.000000e+00> : vector<16x256xf32>
    %41 = tpu.matmul %38, %40, %cst_26 {dimension_numbers = #tpu.dot_dimension_numbers<[1], [0], [0], [1], [0, 0, 1, 1], [], []>} : vector<16x256xbf16>, vector<256x256xbf16>, vector<16x256xf32> -> vector<16x256xf32>
    %42 = vector.extract_strided_slice %1 {offsets = [3, 0], sizes = [1, 256], strides = [1, 1]} : vector<8x256xf32> to vector<1x256xf32>
    %43 = vector.broadcast %42 : vector<1x256xf32> to vector<16x256xf32>
    %44 = arith.addf %41, %43 : vector<16x256xf32>
    %cst_27 = arith.constant 0.000000e+00 : f32
    %45 = vector.broadcast %cst_27 : f32 to vector<16x256xf32>
    %46 = arith.maximumf %44, %45 : vector<16x256xf32>
    %47 = arith.truncf %46 : vector<16x256xf32> to vector<16x256xbf16>
    %c4 = arith.constant 4 : index
    %c0_28 = arith.constant 0 : index
    %c0_29 = arith.constant 0 : index
    %48 = vector.load %arg2[%c4, %c0_28, %c0_29] : memref<8x256x256xbf16, #tpu.memory_space<vmem>>, vector<1x256x256xbf16>
    %49 = vector.shape_cast %48 : vector<1x256x256xbf16> to vector<256x256xbf16>
    %cst_30 = arith.constant dense<0.000000e+00> : vector<16x256xf32>
    %50 = tpu.matmul %47, %49, %cst_30 {dimension_numbers = #tpu.dot_dimension_numbers<[1], [0], [0], [1], [0, 0, 1, 1], [], []>} : vector<16x256xbf16>, vector<256x256xbf16>, vector<16x256xf32> -> vector<16x256xf32>
    %c1_31 = arith.constant 1 : index
    %c0_32 = arith.constant 0 : index
    %c0_33 = arith.constant 0 : index
    %51 = vector.load %arg4[%c1_31, %c0_32, %c0_33] : memref<2x128x256xbf16, #tpu.memory_space<vmem>>, vector<1x128x256xbf16>
    %52 = vector.shape_cast %51 : vector<1x128x256xbf16> to vector<128x256xbf16>
    %cst_34 = arith.constant dense<0.000000e+00> : vector<16x256xf32>
    %53 = tpu.matmul %0, %52, %cst_34 {dimension_numbers = #tpu.dot_dimension_numbers<[1], [0], [0], [1], [0, 0, 1, 1], [], []>} : vector<16x128xbf16>, vector<128x256xbf16>, vector<16x256xf32> -> vector<16x256xf32>
    %54 = arith.addf %50, %53 : vector<16x256xf32>
    %55 = vector.extract_strided_slice %1 {offsets = [4, 0], sizes = [1, 256], strides = [1, 1]} : vector<8x256xf32> to vector<1x256xf32>
    %56 = vector.broadcast %55 : vector<1x256xf32> to vector<16x256xf32>
    %57 = arith.addf %54, %56 : vector<16x256xf32>
    %cst_35 = arith.constant 0.000000e+00 : f32
    %58 = vector.broadcast %cst_35 : f32 to vector<16x256xf32>
    %59 = arith.maximumf %57, %58 : vector<16x256xf32>
    %60 = arith.truncf %59 : vector<16x256xf32> to vector<16x256xbf16>
    %c5 = arith.constant 5 : index
    %c0_36 = arith.constant 0 : index
    %c0_37 = arith.constant 0 : index
    %61 = vector.load %arg2[%c5, %c0_36, %c0_37] : memref<8x256x256xbf16, #tpu.memory_space<vmem>>, vector<1x256x256xbf16>
    %62 = vector.shape_cast %61 : vector<1x256x256xbf16> to vector<256x256xbf16>
    %cst_38 = arith.constant dense<0.000000e+00> : vector<16x256xf32>
    %63 = tpu.matmul %60, %62, %cst_38 {dimension_numbers = #tpu.dot_dimension_numbers<[1], [0], [0], [1], [0, 0, 1, 1], [], []>} : vector<16x256xbf16>, vector<256x256xbf16>, vector<16x256xf32> -> vector<16x256xf32>
    %64 = vector.extract_strided_slice %1 {offsets = [5, 0], sizes = [1, 256], strides = [1, 1]} : vector<8x256xf32> to vector<1x256xf32>
    %65 = vector.broadcast %64 : vector<1x256xf32> to vector<16x256xf32>
    %66 = arith.addf %63, %65 : vector<16x256xf32>
    %cst_39 = arith.constant 0.000000e+00 : f32
    %67 = vector.broadcast %cst_39 : f32 to vector<16x256xf32>
    %68 = arith.maximumf %66, %67 : vector<16x256xf32>
    %69 = arith.truncf %68 : vector<16x256xf32> to vector<16x256xbf16>
    %c6 = arith.constant 6 : index
    %c0_40 = arith.constant 0 : index
    %c0_41 = arith.constant 0 : index
    %70 = vector.load %arg2[%c6, %c0_40, %c0_41] : memref<8x256x256xbf16, #tpu.memory_space<vmem>>, vector<1x256x256xbf16>
    %71 = vector.shape_cast %70 : vector<1x256x256xbf16> to vector<256x256xbf16>
    %cst_42 = arith.constant dense<0.000000e+00> : vector<16x256xf32>
    %72 = tpu.matmul %69, %71, %cst_42 {dimension_numbers = #tpu.dot_dimension_numbers<[1], [0], [0], [1], [0, 0, 1, 1], [], []>} : vector<16x256xbf16>, vector<256x256xbf16>, vector<16x256xf32> -> vector<16x256xf32>
    %73 = vector.extract_strided_slice %1 {offsets = [6, 0], sizes = [1, 256], strides = [1, 1]} : vector<8x256xf32> to vector<1x256xf32>
    %74 = vector.broadcast %73 : vector<1x256xf32> to vector<16x256xf32>
    %75 = arith.addf %72, %74 : vector<16x256xf32>
    %cst_43 = arith.constant 0.000000e+00 : f32
    %76 = vector.broadcast %cst_43 : f32 to vector<16x256xf32>
    %77 = arith.maximumf %75, %76 : vector<16x256xf32>
    %78 = arith.truncf %77 : vector<16x256xf32> to vector<16x256xbf16>
    %c7 = arith.constant 7 : index
    %c0_44 = arith.constant 0 : index
    %c0_45 = arith.constant 0 : index
    %79 = vector.load %arg2[%c7, %c0_44, %c0_45] : memref<8x256x256xbf16, #tpu.memory_space<vmem>>, vector<1x256x256xbf16>
    %80 = vector.shape_cast %79 : vector<1x256x256xbf16> to vector<256x256xbf16>
    %cst_46 = arith.constant dense<0.000000e+00> : vector<16x256xf32>
    %81 = tpu.matmul %78, %80, %cst_46 {dimension_numbers = #tpu.dot_dimension_numbers<[1], [0], [0], [1], [0, 0, 1, 1], [], []>} : vector<16x256xbf16>, vector<256x256xbf16>, vector<16x256xf32> -> vector<16x256xf32>
    %82 = vector.extract_strided_slice %1 {offsets = [7, 0], sizes = [1, 256], strides = [1, 1]} : vector<8x256xf32> to vector<1x256xf32>
    %83 = vector.broadcast %82 : vector<1x256xf32> to vector<16x256xf32>
    %84 = arith.addf %81, %83 : vector<16x256xf32>
    %85 = arith.truncf %84 : vector<16x256xf32> to vector<16x256xbf16>
    %c0_47 = arith.constant 0 : index
    %c0_48 = arith.constant 0 : index
    %c0_49 = arith.constant 0 : index
    %86 = vector.load %arg6[%c0_47, %c0_48, %c0_49] : memref<2x256x128xbf16, #tpu.memory_space<vmem>>, vector<1x256x128xbf16>
    %87 = vector.shape_cast %86 : vector<1x256x128xbf16> to vector<256x128xbf16>
    %cst_50 = arith.constant dense<0.000000e+00> : vector<16x128xf32>
    %88 = tpu.matmul %85, %87, %cst_50 {dimension_numbers = #tpu.dot_dimension_numbers<[1], [0], [0], [1], [0, 0, 1, 1], [], []>} : vector<16x256xbf16>, vector<256x128xbf16>, vector<16x128xf32> -> vector<16x128xf32>
    %c0_51 = arith.constant 0 : index
    %c0_52 = arith.constant 0 : index
    %c0_53 = arith.constant 0 : index
    %89 = vector.load %arg8[%c0_51, %c0_52, %c0_53] : memref<2x128x128xbf16, #tpu.memory_space<vmem>>, vector<1x128x128xbf16>
    %90 = vector.shape_cast %89 : vector<1x128x128xbf16> to vector<128x128xbf16>
    %cst_54 = arith.constant dense<0.000000e+00> : vector<16x128xf32>
    %91 = tpu.matmul %0, %90, %cst_54 {dimension_numbers = #tpu.dot_dimension_numbers<[1], [0], [0], [1], [0, 0, 1, 1], [], []>} : vector<16x128xbf16>, vector<128x128xbf16>, vector<16x128xf32> -> vector<16x128xf32>
    %92 = arith.addf %88, %91 : vector<16x128xf32>
    %93 = vector.extract_strided_slice %2 {offsets = [0, 0], sizes = [1, 128], strides = [1, 1]} : vector<2x128xf32> to vector<1x128xf32>
    %94 = vector.broadcast %93 : vector<1x128xf32> to vector<16x128xf32>
    %95 = arith.addf %92, %94 : vector<16x128xf32>
    %cst_55 = arith.constant 0.000000e+00 : f32
    %96 = vector.broadcast %cst_55 : f32 to vector<16x128xf32>
    %97 = arith.maximumf %95, %96 : vector<16x128xf32>
    %98 = arith.truncf %97 : vector<16x128xf32> to vector<16x128xbf16>
    %c1_56 = arith.constant 1 : index
    %c0_57 = arith.constant 0 : index
    %c0_58 = arith.constant 0 : index
    %99 = vector.load %arg6[%c1_56, %c0_57, %c0_58] : memref<2x256x128xbf16, #tpu.memory_space<vmem>>, vector<1x256x128xbf16>
    %100 = vector.shape_cast %99 : vector<1x256x128xbf16> to vector<256x128xbf16>
    %cst_59 = arith.constant dense<0.000000e+00> : vector<16x128xf32>
    %101 = tpu.matmul %78, %100, %cst_59 {dimension_numbers = #tpu.dot_dimension_numbers<[1], [0], [0], [1], [0, 0, 1, 1], [], []>} : vector<16x256xbf16>, vector<256x128xbf16>, vector<16x128xf32> -> vector<16x128xf32>
    %c1_60 = arith.constant 1 : index
    %c0_61 = arith.constant 0 : index
    %c0_62 = arith.constant 0 : index
    %102 = vector.load %arg8[%c1_60, %c0_61, %c0_62] : memref<2x128x128xbf16, #tpu.memory_space<vmem>>, vector<1x128x128xbf16>
    %103 = vector.shape_cast %102 : vector<1x128x128xbf16> to vector<128x128xbf16>
    %cst_63 = arith.constant dense<0.000000e+00> : vector<16x128xf32>
    %104 = tpu.matmul %98, %103, %cst_63 {dimension_numbers = #tpu.dot_dimension_numbers<[1], [0], [0], [1], [0, 0, 1, 1], [], []>} : vector<16x128xbf16>, vector<128x128xbf16>, vector<16x128xf32> -> vector<16x128xf32>
    %105 = arith.addf %101, %104 : vector<16x128xf32>
    %106 = vector.extract_strided_slice %2 {offsets = [1, 0], sizes = [1, 128], strides = [1, 1]} : vector<2x128xf32> to vector<1x128xf32>
    %107 = vector.broadcast %106 : vector<1x128xf32> to vector<16x128xf32>
    %108 = arith.addf %105, %107 : vector<16x128xf32>
    %109 = tpu.iota {dimensions = array<i32: 1>} : vector<16x128xi32>
    %c1_i32 = arith.constant 1 : i32
    %110 = vector.broadcast %c1_i32 : i32 to vector<16x128xi32>
    %111 = arith.cmpi sge, %109, %110 : vector<16x128xi32>
    %c3_i32 = arith.constant 3 : i32
    %112 = vector.broadcast %c3_i32 : i32 to vector<16x128xi32>
    %113 = arith.cmpi sle, %109, %112 : vector<16x128xi32>
    %114 = arith.andi %111, %113 : vector<16x128xi1>
    %cst_64 = arith.constant 0.000000e+00 : f32
    %115 = vector.broadcast %cst_64 : f32 to vector<16x128xf32>
    %116 = arith.select %114, %108, %115 : vector<16x128xi1>, vector<16x128xf32>
    %117 = arith.mulf %116, %116 : vector<16x128xf32>
    %cst_65 = arith.constant dense<0.000000e+00> : vector<16xf32>
    %118 = vector.multi_reduction <add>, %117, %cst_65 [1] : vector<16x128xf32> to vector<16xf32>
    %119 = vector.shape_cast %118 : vector<16xf32> to vector<16x1xf32>
    %cst_66 = arith.constant 1.1920929E-7 : f32
    %120 = vector.broadcast %cst_66 : f32 to vector<16x1xf32>
    %121 = arith.maximumf %119, %120 : vector<16x1xf32>
    %122 = math.rsqrt %121 : vector<16x1xf32>
    %cst_67 = arith.constant 0.000000e+00 : f32
    %123 = vector.broadcast %cst_67 : f32 to vector<16x128xf32>
    %124 = arith.subf %123, %108 : vector<16x128xf32>
    %125 = math.exp %124 : vector<16x128xf32>
    %cst_68 = arith.constant 1.000000e+00 : f32
    %126 = vector.broadcast %cst_68 : f32 to vector<16x128xf32>
    %127 = arith.addf %126, %125 : vector<16x128xf32>
    %cst_69 = arith.constant 1.000000e+00 : f32
    %128 = vector.broadcast %cst_69 : f32 to vector<16x128xf32>
    %129 = arith.divf %128, %127 : vector<16x128xf32>
    %c0_i32 = arith.constant 0 : i32
    %130 = vector.broadcast %c0_i32 : i32 to vector<16x128xi32>
    %131 = arith.cmpi eq, %109, %130 : vector<16x128xi32>
    %cst_70 = arith.constant 0.000000e+00 : f32
    %132 = vector.broadcast %cst_70 : f32 to vector<16x128xf32>
    %133 = arith.maximumf %108, %132 : vector<16x128xf32>
    %cst_71 = arith.constant 0.000000e+00 : f32
    %134 = vector.broadcast %cst_71 : f32 to vector<16x128xf32>
    %135 = arith.subf %134, %116 : vector<16x128xf32>
    %136 = vector.broadcast %122 : vector<16x1xf32> to vector<16x128xf32>
    %137 = arith.mulf %135, %136 : vector<16x128xf32>
    %c4_i32 = arith.constant 4 : i32
    %138 = vector.broadcast %c4_i32 : i32 to vector<16x128xi32>
    %139 = arith.cmpi sge, %109, %138 : vector<16x128xi32>
    %c6_i32 = arith.constant 6 : i32
    %140 = vector.broadcast %c6_i32 : i32 to vector<16x128xi32>
    %141 = arith.cmpi sle, %109, %140 : vector<16x128xi32>
    %142 = arith.andi %139, %141 : vector<16x128xi1>
    %cst_72 = arith.constant 0.000000e+00 : f32
    %143 = vector.broadcast %cst_72 : f32 to vector<16x128xf32>
    %144 = arith.select %142, %129, %143 : vector<16x128xi1>, vector<16x128xf32>
    %145 = arith.select %114, %137, %144 : vector<16x128xi1>, vector<16x128xf32>
    %146 = arith.select %131, %133, %145 : vector<16x128xi1>, vector<16x128xf32>
    %c0_73 = arith.constant 0 : index
    %c0_74 = arith.constant 0 : index
    %147 = vector.load %arg9[%c0_73, %c0_74] : memref<16x128xf32, #tpu.memory_space<vmem>>, vector<16x128xf32>
    tpu.vector_store %arg9[%c0_73, %c0_74], %146 {strides = array<i32>} : memref<16x128xf32, #tpu.memory_space<vmem>>, vector<16x128xf32>,
    return
  }
  func.func @transform_0(%arg0: i32) -> (i32, i32) {
    %c0_i32 = arith.constant 0 : i32
    %c0_i32_0 = arith.constant 0 : i32
    return %arg0, %c0_i32 : i32, i32
  }
  func.func @transform_1(%arg0: i32) -> (i32, i32, i32) {
    %c0_i32 = arith.constant 0 : i32
    %c0_i32_0 = arith.constant 0 : i32
    %c0_i32_1 = arith.constant 0 : i32
    %c0_i32_2 = arith.constant 0 : i32
    return %c0_i32, %c0_i32_0, %c0_i32_1 : i32, i32, i32
  }
  func.func @transform_2(%arg0: i32) -> (i32, i32) {
    %c0_i32 = arith.constant 0 : i32
    %c0_i32_0 = arith.constant 0 : i32
    %c0_i32_1 = arith.constant 0 : i32
    return %c0_i32, %c0_i32_0 : i32, i32
  }
  func.func @transform_3(%arg0: i32) -> (i32, i32, i32) {
    %c0_i32 = arith.constant 0 : i32
    %c0_i32_0 = arith.constant 0 : i32
    %c0_i32_1 = arith.constant 0 : i32
    %c0_i32_2 = arith.constant 0 : i32
    return %c0_i32, %c0_i32_0, %c0_i32_1 : i32, i32, i32
  }
  func.func @transform_4(%arg0: i32) -> (i32, i32) {
    %c0_i32 = arith.constant 0 : i32
    %c0_i32_0 = arith.constant 0 : i32
    %c0_i32_1 = arith.constant 0 : i32
    return %c0_i32, %c0_i32_0 : i32, i32
  }
  func.func @transform_5(%arg0: i32) -> (i32, i32, i32) {
    %c0_i32 = arith.constant 0 : i32
    %c0_i32_0 = arith.constant 0 : i32
    %c0_i32_1 = arith.constant 0 : i32
    %c0_i32_2 = arith.constant 0 : i32
    return %c0_i32, %c0_i32_0, %c0_i32_1 : i32, i32, i32
  }
  func.func @transform_6(%arg0: i32) -> (i32, i32) {
    %c0_i32 = arith.constant 0 : i32
    %c0_i32_0 = arith.constant 0 : i32
    %c0_i32_1 = arith.constant 0 : i32
    return %c0_i32, %c0_i32_0 : i32, i32
  }
  func.func @transform_7(%arg0: i32) -> (i32, i32, i32) {
    %c0_i32 = arith.constant 0 : i32
    %c0_i32_0 = arith.constant 0 : i32
    %c0_i32_1 = arith.constant 0 : i32
    %c0_i32_2 = arith.constant 0 : i32
    return %c0_i32, %c0_i32_0, %c0_i32_1 : i32, i32, i32
  }
  func.func @transform_8(%arg0: i32) -> (i32, i32) {
    %c0_i32 = arith.constant 0 : i32
    %c0_i32_0 = arith.constant 0 : i32
    return %arg0, %c0_i32 : i32, i32
  }
}

module attributes {stable_mosaic.version = 11 : i64} {
  func.func @snerf_mlp_kernel(%arg0: i32, %arg1: memref<16x128xbf16, #tpu.memory_space<vmem>>, %arg2: memref<8x256x256xbf16, #tpu.memory_space<vmem>>, %arg3: memref<8x256xf32, #tpu.memory_space<vmem>>, %arg4: memref<2x128x256xbf16, #tpu.memory_space<vmem>>, %arg5: memref<1x256xf32, #tpu.memory_space<vmem>>, %arg6: memref<2x256x128xbf16, #tpu.memory_space<vmem>>, %arg7: memref<2x128xf32, #tpu.memory_space<vmem>>, %arg8: memref<2x128x128xbf16, #tpu.memory_space<vmem>>, %arg9: memref<16x128xf32, #tpu.memory_space<vmem>>) attributes {dimension_semantics = [#tpu.dimension_semantics<parallel>], iteration_bounds = array<i64: 1>, scalar_prefetch = 0 : i64, scratch_operands = 0 : i64, tpu.core_type = #tpu.core_type<tc>, window_params = [{transform_indices = @transform_0, window_bounds = array<i64: 16, 128>}, {pipeline_mode = #tpu.pipeline_mode<synchronous>, transform_indices = @transform_1, window_bounds = array<i64: 8, 256, 256>}, {pipeline_mode = #tpu.pipeline_mode<synchronous>, transform_indices = @transform_2, window_bounds = array<i64: 8, 256>}, {pipeline_mode = #tpu.pipeline_mode<synchronous>, transform_indices = @transform_3, window_bounds = array<i64: 2, 128, 256>}, {pipeline_mode = #tpu.pipeline_mode<synchronous>, transform_indices = @transform_4, window_bounds = array<i64: 1, 256>}, {pipeline_mode = #tpu.pipeline_mode<synchronous>, transform_indices = @transform_5, window_bounds = array<i64: 2, 256, 128>}, {pipeline_mode = #tpu.pipeline_mode<synchronous>, transform_indices = @transform_6, window_bounds = array<i64: 2, 128>}, {pipeline_mode = #tpu.pipeline_mode<synchronous>, transform_indices = @transform_7, window_bounds = array<i64: 2, 128, 128>}, {transform_indices = @transform_8, window_bounds = array<i64: 16, 128>}]} {
    %c0 = arith.constant 0 : index
    %c0_0 = arith.constant 0 : index
    %0 = vector.load %arg1[%c0, %c0_0] : memref<16x128xbf16, #tpu.memory_space<vmem>>, vector<16x128xbf16>
    %c0_1 = arith.constant 0 : index
    %c0_2 = arith.constant 0 : index
    %1 = vector.load %arg3[%c0_1, %c0_2] : memref<8x256xf32, #tpu.memory_space<vmem>>, vector<8x256xf32>
    %c0_3 = arith.constant 0 : index
    %c0_4 = arith.constant 0 : index
    %2 = vector.load %arg7[%c0_3, %c0_4] : memref<2x128xf32, #tpu.memory_space<vmem>>, vector<2x128xf32>
    %c0_5 = arith.constant 0 : index
    %c0_6 = arith.constant 0 : index
    %c0_7 = arith.constant 0 : index
    %3 = vector.load %arg4[%c0_5, %c0_6, %c0_7] : memref<2x128x256xbf16, #tpu.memory_space<vmem>>, vector<1x128x256xbf16>
    %4 = vector.shape_cast %3 : vector<1x128x256xbf16> to vector<128x256xbf16>
    %cst = arith.constant dense<0.000000e+00> : vector<16x256xf32>
    %5 = tpu.matmul %0, %4, %cst {dimension_numbers = #tpu.dot_dimension_numbers<[1], [0], [0], [1], [0, 0, 1, 1], [], []>} : vector<16x128xbf16>, vector<128x256xbf16>, vector<16x256xf32> -> vector<16x256xf32>
    %c0_8 = arith.constant 0 : index
    %c0_9 = arith.constant 0 : index
    %6 = vector.load %arg5[%c0_8, %c0_9] : memref<1x256xf32, #tpu.memory_space<vmem>>, vector<1x256xf32>
    %7 = vector.broadcast %6 : vector<1x256xf32> to vector<16x256xf32>
    %8 = arith.addf %5, %7 : vector<16x256xf32>
    %cst_10 = arith.constant 0.000000e+00 : f32
    %9 = vector.broadcast %cst_10 : f32 to vector<16x256xf32>
    %10 = arith.maximumf %8, %9 : vector<16x256xf32>
    %11 = arith.truncf %10 : vector<16x256xf32> to vector<16x256xbf16>
    %c0_11 = arith.constant 0 : index
    %c0_12 = arith.constant 0 : index
    %c0_13 = arith.constant 0 : index
    %12 = vector.load %arg2[%c0_11, %c0_12, %c0_13] : memref<8x256x256xbf16, #tpu.memory_space<vmem>>, vector<1x256x256xbf16>
    %13 = vector.shape_cast %12 : vector<1x256x256xbf16> to vector<256x256xbf16>
    %cst_14 = arith.constant dense<0.000000e+00> : vector<16x256xf32>
    %14 = tpu.matmul %11, %13, %cst_14 {dimension_numbers = #tpu.dot_dimension_numbers<[1], [0], [0], [1], [0, 0, 1, 1], [], []>} : vector<16x256xbf16>, vector<256x256xbf16>, vector<16x256xf32> -> vector<16x256xf32>
    %15 = vector.extract_strided_slice %1 {offsets = [0, 0], sizes = [1, 256], strides = [1, 1]} : vector<8x256xf32> to vector<1x256xf32>
    %16 = vector.broadcast %15 : vector<1x256xf32> to vector<16x256xf32>
    %17 = arith.addf %14, %16 : vector<16x256xf32>
    %cst_15 = arith.constant 0.000000e+00 : f32
    %18 = vector.broadcast %cst_15 : f32 to vector<16x256xf32>
    %19 = arith.maximumf %17, %18 : vector<16x256xf32>
    %20 = arith.truncf %19 : vector<16x256xf32> to vector<16x256xbf16>
    %c1 = arith.constant 1 : index
    %c0_16 = arith.constant 0 : index
    %c0_17 = arith.constant 0 : index
    %21 = vector.load %arg2[%c1, %c0_16, %c0_17] : memref<8x256x256xbf16, #tpu.memory_space<vmem>>, vector<1x256x256xbf16>
    %22 = vector.shape_cast %21 : vector<1x256x256xbf16> to vector<256x256xbf16>
    %cst_18 = arith.constant dense<0.000000e+00> : vector<16x256xf32>
    %23 = tpu.matmul %20, %22, %cst_18 {dimension_numbers = #tpu.dot_dimension_numbers<[1], [0], [0], [1], [0, 0, 1, 1], [], []>} : vector<16x256xbf16>, vector<256x256xbf16>, vector<16x256xf32> -> vector<16x256xf32>
    %24 = vector.extract_strided_slice %1 {offsets = [1, 0], sizes = [1, 256], strides = [1, 1]} : vector<8x256xf32> to vector<1x256xf32>
    %25 = vector.broadcast %24 : vector<1x256xf32> to vector<16x256xf32>
    %26 = arith.addf %23, %25 : vector<16x256xf32>
    %cst_19 = arith.constant 0.000000e+00 : f32
    %27 = vector.broadcast %cst_19 : f32 to vector<16x256xf32>
    %28 = arith.maximumf %26, %27 : vector<16x256xf32>
    %29 = arith.truncf %28 : vector<16x256xf32> to vector<16x256xbf16>
    %c2 = arith.constant 2 : index
    %c0_20 = arith.constant 0 : index
    %c0_21 = arith.constant 0 : index
    %30 = vector.load %arg2[%c2, %c0_20, %c0_21] : memref<8x256x256xbf16, #tpu.memory_space<vmem>>, vector<1x256x256xbf16>
    %31 = vector.shape_cast %30 : vector<1x256x256xbf16> to vector<256x256xbf16>
    %cst_22 = arith.constant dense<0.000000e+00> : vector<16x256xf32>
    %32 = tpu.matmul %29, %31, %cst_22 {dimension_numbers = #tpu.dot_dimension_numbers<[1], [0], [0], [1], [0, 0, 1, 1], [], []>} : vector<16x256xbf16>, vector<256x256xbf16>, vector<16x256xf32> -> vector<16x256xf32>
    %33 = vector.extract_strided_slice %1 {offsets = [2, 0], sizes = [1, 256], strides = [1, 1]} : vector<8x256xf32> to vector<1x256xf32>
    %34 = vector.broadcast %33 : vector<1x256xf32> to vector<16x256xf32>
    %35 = arith.addf %32, %34 : vector<16x256xf32>
    %cst_23 = arith.constant 0.000000e+00 : f32
    %36 = vector.broadcast %cst_23 : f32 to vector<16x256xf32>
    %37 = arith.maximumf %35, %36 : vector<16x256xf32>
    %38 = arith.truncf %37 : vector<16x256xf32> to vector<16x256xbf16>
    %c3 = arith.constant 3 : index
    %c0_24 = arith.constant 0 : index
    %c0_25 = arith.constant 0 : index
    %39 = vector.load %arg2[%c3, %c0_24, %c0_25] : memref<8x256x256xbf16, #tpu.memory_space<vmem>>, vector<1x256x256xbf16>
    %40 = vector.shape_cast %39 : vector<1x256x256xbf16> to vector<256x256xbf16>
    %cst_26 = arith.constant dense<0.000000e+00> : vector<16x256xf32>
    %41 = tpu.matmul %38, %40, %cst_26 {dimension_numbers = #tpu.dot_dimension_numbers<[1], [0], [0], [1], [0, 0, 1, 1], [], []>} : vector<16x256xbf16>, vector<256x256xbf16>, vector<16x256xf32> -> vector<16x256xf32>
    %42 = vector.extract_strided_slice %1 {offsets = [3, 0], sizes = [1, 256], strides = [1, 1]} : vector<8x256xf32> to vector<1x256xf32>
    %43 = vector.broadcast %42 : vector<1x256xf32> to vector<16x256xf32>
    %44 = arith.addf %41, %43 : vector<16x256xf32>
    %cst_27 = arith.constant 0.000000e+00 : f32
    %45 = vector.broadcast %cst_27 : f32 to vector<16x256xf32>
    %46 = arith.maximumf %44, %45 : vector<16x256xf32>
    %47 = arith.truncf %46 : vector<16x256xf32> to vector<16x256xbf16>
    %c4 = arith.constant 4 : index
    %c0_28 = arith.constant 0 : index
    %c0_29 = arith.constant 0 : index
    %48 = vector.load %arg2[%c4, %c0_28, %c0_29] : memref<8x256x256xbf16, #tpu.memory_space<vmem>>, vector<1x256x256xbf16>
    %49 = vector.shape_cast %48 : vector<1x256x256xbf16> to vector<256x256xbf16>
    %cst_30 = arith.constant dense<0.000000e+00> : vector<16x256xf32>
    %50 = tpu.matmul %47, %49, %cst_30 {dimension_numbers = #tpu.dot_dimension_numbers<[1], [0], [0], [1], [0, 0, 1, 1], [], []>} : vector<16x256xbf16>, vector<256x256xbf16>, vector<16x256xf32> -> vector<16x256xf32>
    %c1_31 = arith.constant 1 : index
    %c0_32 = arith.constant 0 : index
    %c0_33 = arith.constant 0 : index
    %51 = vector.load %arg4[%c1_31, %c0_32, %c0_33] : memref<2x128x256xbf16, #tpu.memory_space<vmem>>, vector<1x128x256xbf16>
    %52 = vector.shape_cast %51 : vector<1x128x256xbf16> to vector<128x256xbf16>
    %cst_34 = arith.constant dense<0.000000e+00> : vector<16x256xf32>
    %53 = tpu.matmul %0, %52, %cst_34 {dimension_numbers = #tpu.dot_dimension_numbers<[1], [0], [0], [1], [0, 0, 1, 1], [], []>} : vector<16x128xbf16>, vector<128x256xbf16>, vector<16x256xf32> -> vector<16x256xf32>
    %54 = arith.addf %50, %53 : vector<16x256xf32>
    %55 = vector.extract_strided_slice %1 {offsets = [4, 0], sizes = [1, 256], strides = [1, 1]} : vector<8x256xf32> to vector<1x256xf32>
    %56 = vector.broadcast %55 : vector<1x256xf32> to vector<16x256xf32>
    %57 = arith.addf %54, %56 : vector<16x256xf32>
    %cst_35 = arith.constant 0.000000e+00 : f32
    %58 = vector.broadcast %cst_35 : f32 to vector<16x256xf32>
    %59 = arith.maximumf %57, %58 : vector<16x256xf32>
    %60 = arith.truncf %59 : vector<16x256xf32> to vector<16x256xbf16>
    %c5 = arith.constant 5 : index
    %c0_36 = arith.constant 0 : index
    %c0_37 = arith.constant 0 : index
    %61 = vector.load %arg2[%c5, %c0_36, %c0_37] : memref<8x256x256xbf16, #tpu.memory_space<vmem>>, vector<1x256x256xbf16>
    %62 = vector.shape_cast %61 : vector<1x256x256xbf16> to vector<256x256xbf16>
    %cst_38 = arith.constant dense<0.000000e+00> : vector<16x256xf32>
    %63 = tpu.matmul %60, %62, %cst_38 {dimension_numbers = #tpu.dot_dimension_numbers<[1], [0], [0], [1], [0, 0, 1, 1], [], []>} : vector<16x256xbf16>, vector<256x256xbf16>, vector<16x256xf32> -> vector<16x256xf32>
    %64 = vector.extract_strided_slice %1 {offsets = [5, 0], sizes = [1, 256], strides = [1, 1]} : vector<8x256xf32> to vector<1x256xf32>
    %65 = vector.broadcast %64 : vector<1x256xf32> to vector<16x256xf32>
    %66 = arith.addf %63, %65 : vector<16x256xf32>
    %cst_39 = arith.constant 0.000000e+00 : f32
    %67 = vector.broadcast %cst_39 : f32 to vector<16x256xf32>
    %68 = arith.maximumf %66, %67 : vector<16x256xf32>
    %69 = arith.truncf %68 : vector<16x256xf32> to vector<16x256xbf16>
    %c6 = arith.constant 6 : index
    %c0_40 = arith.constant 0 : index
    %c0_41 = arith.constant 0 : index
    %70 = vector.load %arg2[%c6, %c0_40, %c0_41] : memref<8x256x256xbf16, #tpu.memory_space<vmem>>, vector<1x256x256xbf16>
    %71 = vector.shape_cast %70 : vector<1x256x256xbf16> to vector<256x256xbf16>
    %cst_42 = arith.constant dense<0.000000e+00> : vector<16x256xf32>
    %72 = tpu.matmul %69, %71, %cst_42 {dimension_numbers = #tpu.dot_dimension_numbers<[1], [0], [0], [1], [0, 0, 1, 1], [], []>} : vector<16x256xbf16>, vector<256x256xbf16>, vector<16x256xf32> -> vector<16x256xf32>
    %73 = vector.extract_strided_slice %1 {offsets = [6, 0], sizes = [1, 256], strides = [1, 1]} : vector<8x256xf32> to vector<1x256xf32>
    %74 = vector.broadcast %73 : vector<1x256xf32> to vector<16x256xf32>
    %75 = arith.addf %72, %74 : vector<16x256xf32>
    %cst_43 = arith.constant 0.000000e+00 : f32
    %76 = vector.broadcast %cst_43 : f32 to vector<16x256xf32>
    %77 = arith.maximumf %75, %76 : vector<16x256xf32>
    %78 = arith.truncf %77 : vector<16x256xf32> to vector<16x256xbf16>
    %c7 = arith.constant 7 : index
    %c0_44 = arith.constant 0 : index
    %c0_45 = arith.constant 0 : index
    %79 = vector.load %arg2[%c7, %c0_44, %c0_45] : memref<8x256x256xbf16, #tpu.memory_space<vmem>>, vector<1x256x256xbf16>
    %80 = vector.shape_cast %79 : vector<1x256x256xbf16> to vector<256x256xbf16>
    %cst_46 = arith.constant dense<0.000000e+00> : vector<16x256xf32>
    %81 = tpu.matmul %78, %80, %cst_46 {dimension_numbers = #tpu.dot_dimension_numbers<[1], [0], [0], [1], [0, 0, 1, 1], [], []>} : vector<16x256xbf16>, vector<256x256xbf16>, vector<16x256xf32> -> vector<16x256xf32>
    %82 = vector.extract_strided_slice %1 {offsets = [7, 0], sizes = [1, 256], strides = [1, 1]} : vector<8x256xf32> to vector<1x256xf32>
    %83 = vector.broadcast %82 : vector<1x256xf32> to vector<16x256xf32>
    %84 = arith.addf %81, %83 : vector<16x256xf32>
    %85 = arith.truncf %84 : vector<16x256xf32> to vector<16x256xbf16>
    %c0_47 = arith.constant 0 : index
    %c0_48 = arith.constant 0 : index
    %c0_49 = arith.constant 0 : index
    %86 = vector.load %arg6[%c0_47, %c0_48, %c0_49] : memref<2x256x128xbf16, #tpu.memory_space<vmem>>, vector<1x256x128xbf16>
    %87 = vector.shape_cast %86 : vector<1x256x128xbf16> to vector<256x128xbf16>
    %cst_50 = arith.constant dense<0.000000e+00> : vector<16x128xf32>
    %88 = tpu.matmul %85, %87, %cst_50 {dimension_numbers = #tpu.dot_dimension_numbers<[1], [0], [0], [1], [0, 0, 1, 1], [], []>} : vector<16x256xbf16>, vector<256x128xbf16>, vector<16x128xf32> -> vector<16x128xf32>
    %c0_51 = arith.constant 0 : index
    %c0_52 = arith.constant 0 : index
    %c0_53 = arith.constant 0 : index
    %89 = vector.load %arg8[%c0_51, %c0_52, %c0_53] : memref<2x128x128xbf16, #tpu.memory_space<vmem>>, vector<1x128x128xbf16>
    %90 = vector.shape_cast %89 : vector<1x128x128xbf16> to vector<128x128xbf16>
    %cst_54 = arith.constant dense<0.000000e+00> : vector<16x128xf32>
    %91 = tpu.matmul %0, %90, %cst_54 {dimension_numbers = #tpu.dot_dimension_numbers<[1], [0], [0], [1], [0, 0, 1, 1], [], []>} : vector<16x128xbf16>, vector<128x128xbf16>, vector<16x128xf32> -> vector<16x128xf32>
    %92 = arith.addf %88, %91 : vector<16x128xf32>
    %93 = vector.extract_strided_slice %2 {offsets = [0, 0], sizes = [1, 128], strides = [1, 1]} : vector<2x128xf32> to vector<1x128xf32>
    %94 = vector.broadcast %93 : vector<1x128xf32> to vector<16x128xf32>
    %95 = arith.addf %92, %94 : vector<16x128xf32>
    %cst_55 = arith.constant 0.000000e+00 : f32
    %96 = vector.broadcast %cst_55 : f32 to vector<16x128xf32>
    %97 = arith.maximumf %95, %96 : vector<16x128xf32>
    %98 = arith.truncf %97 : vector<16x128xf32> to vector<16x128xbf16>
    %c1_56 = arith.constant 1 : index
    %c0_57 = arith.constant 0 : index
    %c0_58 = arith.constant 0 : index
    %99 = vector.load %arg6[%c1_56, %c0_57, %c0_58] : memref<2x256x128xbf16, #tpu.memory_space<vmem>>, vector<1x256x128xbf16>
    %100 = vector.shape_cast %99 : vector<1x256x128xbf16> to vector<256x128xbf16>
    %cst_59 = arith.constant dense<0.000000e+00> : vector<16x128xf32>
    %101 = tpu.matmul %78, %100, %cst_59 {dimension_numbers = #tpu.dot_dimension_numbers<[1], [0], [0], [1], [0, 0, 1, 1], [], []>} : vector<16x256xbf16>, vector<256x128xbf16>, vector<16x128xf32> -> vector<16x128xf32>
    %c1_60 = arith.constant 1 : index
    %c0_61 = arith.constant 0 : index
    %c0_62 = arith.constant 0 : index
    %102 = vector.load %arg8[%c1_60, %c0_61, %c0_62] : memref<2x128x128xbf16, #tpu.memory_space<vmem>>, vector<1x128x128xbf16>
    %103 = vector.shape_cast %102 : vector<1x128x128xbf16> to vector<128x128xbf16>
    %cst_63 = arith.constant dense<0.000000e+00> : vector<16x128xf32>
    %104 = tpu.matmul %98, %103, %cst_63 {dimension_numbers = #tpu.dot_dimension_numbers<[1], [0], [0], [1], [0, 0, 1, 1], [], []>} : vector<16x128xbf16>, vector<128x128xbf16>, vector<16x128xf32> -> vector<16x128xf32>
    %105 = arith.addf %101, %104 : vector<16x128xf32>
    %106 = vector.extract_strided_slice %2 {offsets = [1, 0], sizes = [1, 128], strides = [1, 1]} : vector<2x128xf32> to vector<1x128xf32>
    %107 = vector.broadcast %106 : vector<1x128xf32> to vector<16x128xf32>
    %108 = arith.addf %105, %107 : vector<16x128xf32>
    %109 = tpu.iota {dimensions = array<i32: 1>} : vector<16x128xi32>
    %c1_i32 = arith.constant 1 : i32
    %110 = vector.broadcast %c1_i32 : i32 to vector<16x128xi32>
    %111 = arith.cmpi sge, %109, %110 : vector<16x128xi32>
    %c3_i32 = arith.constant 3 : i32
    %112 = vector.broadcast %c3_i32 : i32 to vector<16x128xi32>
    %113 = arith.cmpi sle, %109, %112 : vector<16x128xi32>
    %114 = arith.andi %111, %113 : vector<16x128xi1>
    %cst_64 = arith.constant 0.000000e+00 : f32
    %115 = vector.broadcast %cst_64 : f32 to vector<16x128xf32>
    %116 = arith.select %114, %108, %115 : vector<16x128xi1>, vector<16x128xf32>
    %117 = arith.mulf %116, %116 : vector<16x128xf32>
    %cst_65 = arith.constant dense<0.000000e+00> : vector<16xf32>
    %118 = vector.multi_reduction <add>, %117, %cst_65 [1] : vector<16x128xf32> to vector<16xf32>
    %119 = vector.shape_cast %118 : vector<16xf32> to vector<16x1xf32>
    %cst_66 = arith.constant 1.1920929E-7 : f32
    %120 = vector.broadcast %cst_66 : f32 to vector<16x1xf32>
    %121 = arith.maximumf %119, %120 : vector<16x1xf32>
    %122 = math.rsqrt %121 : vector<16x1xf32>
    %cst_67 = arith.constant 0.000000e+00 : f32
    %123 = vector.broadcast %cst_67 : f32 to vector<16x128xf32>
    %124 = arith.subf %123, %108 : vector<16x128xf32>
    %125 = math.exp %124 : vector<16x128xf32>
    %cst_68 = arith.constant 1.000000e+00 : f32
    %126 = vector.broadcast %cst_68 : f32 to vector<16x128xf32>
    %127 = arith.addf %126, %125 : vector<16x128xf32>
    %cst_69 = arith.constant 1.000000e+00 : f32
    %128 = vector.broadcast %cst_69 : f32 to vector<16x128xf32>
    %129 = arith.divf %128, %127 : vector<16x128xf32>
    %c0_i32 = arith.constant 0 : i32
    %130 = vector.broadcast %c0_i32 : i32 to vector<16x128xi32>
    %131 = arith.cmpi eq, %109, %130 : vector<16x128xi32>
    %cst_70 = arith.constant 0.000000e+00 : f32
    %132 = vector.broadcast %cst_70 : f32 to vector<16x128xf32>
    %133 = arith.maximumf %108, %132 : vector<16x128xf32>
    %cst_71 = arith.constant 0.000000e+00 : f32
    %134 = vector.broadcast %cst_71 : f32 to vector<16x128xf32>
    %135 = arith.subf %134, %116 : vector<16x128xf32>
    %136 = vector.broadcast %122 : vector<16x1xf32> to vector<16x128xf32>
    %137 = arith.mulf %135, %136 : vector<16x128xf32>
    %c4_i32 = arith.constant 4 : i32
    %138 = vector.broadcast %c4_i32 : i32 to vector<16x128xi32>
    %139 = arith.cmpi sge, %109, %138 : vector<16x128xi32>
    %c6_i32 = arith.constant 6 : i32
    %140 = vector.broadcast %c6_i32 : i32 to vector<16x128xi32>
    %141 = arith.cmpi sle, %109, %140 : vector<16x128xi32>
    %142 = arith.andi %139, %141 : vector<16x128xi1>
    %cst_72 = arith.constant 0.000000e+00 : f32
    %143 = vector.broadcast %cst_72 : f32 to vector<16x128xf32>
    %144 = arith.select %142, %129, %143 : vector<16x128xi1>, vector<16x128xf32>
    %145 = arith.select %114, %137, %144 : vector<16x128xi1>, vector<16x128xf32>
    %146 = arith.select %131, %133, %145 : vector<16x128xi1>, vector<16x128xf32>
    %c0_73 = arith.constant 0 : index
    %c0_74 = arith.constant 0 : index
    %147 = vector.load %arg9[%c0_73, %c0_74] : memref<16x128xf32, #tpu.memory_space<vmem>>, vector<16x128xf32>
    tpu.vector_store %arg9[%c0_73, %c0_74], %146 {strides = array<i32>} : memref<16x128xf32, #tpu.memory_space<vmem>>, vector<16x128xf32>,
    return
  }
  func.func @transform_0(%arg0: i32) -> (i32, i32) {
    %c0_i32 = arith.constant 0 : i32
    %c0_i32_0 = arith.constant 0 : i32
    return %arg0, %c0_i32 : i32, i32
  }
  func.func @transform_1(%arg0: i32) -> (i32, i32, i32) {
    %c0_i32 = arith.constant 0 : i32
    %c0_i32_0 = arith.constant 0 : i32
    %c0_i32_1 = arith.constant 0 : i32
    %c0_i32_2 = arith.constant 0 : i32
    return %c0_i32, %c0_i32_0, %c0_i32_1 : i32, i32, i32
  }
  func.func @transform_2(%arg0: i32) -> (i32, i32) {
    %c0_i32 = arith.constant 0 : i32
    %c0_i32_0 = arith.constant 0 : i32
    %c0_i32_1 = arith.constant 0 : i32
    return %c0_i32, %c0_i32_0 : i32, i32
  }
  func.func @transform_3(%arg0: i32) -> (i32, i32, i32) {
    %c0_i32 = arith.constant 0 : i32
    %c0_i32_0 = arith.constant 0 : i32
    %c0_i32_1 = arith.constant 0 : i32
    %c0_i32_2 = arith.constant 0 : i32
    return %c0_i32, %c0_i32_0, %c0_i32_1 : i32, i32, i32
  }
  func.func @transform_4(%arg0: i32) -> (i32, i32) {
    %c0_i32 = arith.constant 0 : i32
    %c0_i32_0 = arith.constant 0 : i32
    %c0_i32_1 = arith.constant 0 : i32
    return %c0_i32, %c0_i32_0 : i32, i32
  }
  func.func @transform_5(%arg0: i32) -> (i32, i32, i32) {
    %c0_i32 = arith.constant 0 : i32
    %c0_i32_0 = arith.constant 0 : i32
    %c0_i32_1 = arith.constant 0 : i32
    %c0_i32_2 = arith.constant 0 : i32
    return %c0_i32, %c0_i32_0, %c0_i32_1 : i32, i32, i32
  }
  func.func @transform_6(%arg0: i32) -> (i32, i32) {
    %c0_i32 = arith.constant 0 : i32
    %c0_i32_0 = arith.constant 0 : i32
    %c0_i32_1 = arith.constant 0 : i32
    return %c0_i32, %c0_i32_0 : i32, i32
  }
  func.func @transform_7(%arg0: i32) -> (i32, i32, i32) {
    %c0_i32 = arith.constant 0 : i32
    %c0_i32_0 = arith.constant 0 : i32
    %c0_i32_1 = arith.constant 0 : i32
    %c0_i32_2 = arith.constant 0 : i32
    return %c0_i32, %c0_i32_0, %c0_i32_1 : i32, i32, i32
  }
  func.func @transform_8(%arg0: i32) -> (i32, i32) {
    %c0_i32 = arith.constant 0 : i32
    %c0_i32_0 = arith.constant 0 : i32
    return %arg0, %c0_i32 : i32, i32
  }
}

</mosaic_0001>

<bundles_post_ra>
// kernel: tpu_custom_call.1
= control target key start
LH: loop header
LB: loop body
LE: loop exit
PB: predicated region body
PF: predicated region fallthrough
CT: control target
= control target key end

     0   :  { %13 = vsyncpa [#allocation3], 0  ;;  %s4364_s0 = inlined_call_operand.hbm [shape: bf16[16,128], index: 0, kind: input, shape index: {}]   ;;  %s4365_s1 = inlined_call_operand.hbm [shape: bf16[8,256,256], index: 1, kind: input, shape index: {}]   ;;  %s4366_s2 = inlined_call_operand.hbm [shape: f32[8,256], index: 2, kind: input, shape index: {}]   ;;  %s4367_s3 = inlined_call_operand.hbm [shape: bf16[2,128,256], index: 3, kind: input, shape index: {}]   ;;  %s4368_s4 = inlined_call_operand.vmem [shape: f32[1,256], index: 4, kind: input, shape index: {}]   ;;  %s4369_s5 = inlined_call_operand.hbm [shape: bf16[2,256,128], index: 5, kind: input, shape index: {}]   ;;  %s4370_s6 = inlined_call_operand.vmem [shape: f32[2,128], index: 6, kind: input, shape index: {}]   ;;  %s4371_s7 = inlined_call_operand.hbm [shape: bf16[2,128,128], index: 7, kind: input, shape index: {}]   ;;  %s4372_s8 = inlined_call_operand.hbm [shape: f32[16,128], index: 8, kind: output, shape index: {}]  }
   0x1   :  { %14 = vsyncpa [#allocation6], 0 }
   0x2   :  { %15 = vsyncpa [#allocation9], 0 }
   0x3   :  { %16 = vsyncpa [#allocation12], 0 }
   0x4   :  { %17 = vsyncpa [#allocation4], 0  ;;  %s4149_s27 = smov [#allocation5]  }
   0x5   :  { %s35_s28 = sshll.u32 %s4149_s27, 4  ;;  %s36_s28 = int_to_ptr.vmem [resolvable:$true] %s35_s28 }
   0x6   :  { %s4007_s29 = scalar_lea.vmem %s36_s28, 32768  ;;  %p4012_p1 = scmp.lt.s32.totalorder %s36_s28, %s36_s28 }
   0x7   :  { %p4008_p0 = scmp.ne.s32.totalorder %s36_s28, %s4007_s29  ;;  %p4013_p2 = scmp.lt.s32.totalorder %s4007_s29, %s4007_s29 }
   0x9   :  { %p4014_p3 = por %p4013_p2, %p4012_p1 }
   0xb   :  { %p4015_p4 = pnand %p4014_p3, %p4008_p0 }
   0xd   :  { %4018 = shalt.err (!%p4015_p4)
}
   0xe   :  { %s4150_s30 = smov 128   ;;  %s4151_s9 = smov 8  }
   0xf   :  { %41 = dma.hbm_to_vmem [thread:$0]  %s4365_s1, 32768, %s36_s28, [#allocation6], %s4150_s30, %s4150_s30, %s4151_s9  }
  0x10   :  { %s4152_s12 = smov [#allocation8]   ;;  %s4153_s14 = smov [#allocation2]  }
  0x11   :  { %s57_s13 = sshll.u32 %s4152_s12, 4  ;;  %s23_s15 = sshll.u32 %s4153_s14, 4  ;;  %s58_s13 = int_to_ptr.vmem [resolvable:$true] %s57_s13  ;;  %s24_s15 = int_to_ptr.vmem [resolvable:$true] %s23_s15 }
  0x12   :  { %s4027_s16 = scalar_lea.vmem %s58_s13, 4096  ;;  %p4032_p6 = scmp.lt.s32.totalorder %s58_s13, %s58_s13 }
  0x13   :  { %p4028_p5 = scmp.ne.s32.totalorder %s58_s13, %s4027_s16  ;;  %p4033_p7 = scmp.lt.s32.totalorder %s4027_s16, %s4027_s16 }
  0x15   :  { %p4034_p8 = por %p4033_p7, %p4032_p6 }
  0x17   :  { %p4035_p9 = pnand %p4034_p8, %p4028_p5 }
  0x19   :  { %4038 = shalt.err (!%p4035_p9)
}
  0x1a   :  { %63 = dma.hbm_to_vmem [thread:$0]  %s4367_s3, 4096, %s58_s13, [#allocation9], %s4150_s30, %s4150_s30, %s4151_s9  }
  0x1b   :  { %s4047_s1 = scalar_lea.vmem %s24_s15, 128  ;;  %p4052_p11 = scmp.lt.s32.totalorder %s24_s15, %s24_s15 }
  0x1c   :  { %p4048_p10 = scmp.ne.s32.totalorder %s24_s15, %s4047_s1  ;;  %p4053_p12 = scmp.lt.s32.totalorder %s4047_s1, %s4047_s1 }
  0x1e   :  { %p4054_p13 = por %p4053_p12, %p4052_p11 }
  0x20   :  { %p4055_p0 = pnand %p4054_p13, %p4048_p10 }
  0x22   :  { %4058 = shalt.err (!%p4055_p0)
}
  0x23   :  { %s4154_s19 = smov 64   ;;  %s4155_s20 = smov 4  }
  0x24   :  { %29 = dma.hbm_to_vmem [thread:$0]  %s4364_s0, 128, %s24_s15, [#allocation3], %s4154_s19, %s4154_s19, %s4155_s20  }
  0x25   :  { %s4156_s23 = smov [#allocation7]   ;;  %s4157_s3 = smov [#allocation10]  }
  0x26   :  { %s48_s24 = sshll.u32 %s4156_s23, 4  ;;  %s71_s25 = sshll.u32 %s4157_s3, 4  ;;  %s49_s24 = int_to_ptr.vmem [resolvable:$true] %s48_s24  ;;  %s72_s25 = int_to_ptr.vmem [resolvable:$true] %s71_s25 }
  0x27   :  { %s4067_s26 = scalar_lea.vmem %s49_s24, 256  ;;  %p4072_p2 = scmp.lt.s32.totalorder %s49_s24, %s49_s24 }
  0x28   :  { %p4068_p1 = scmp.ne.s32.totalorder %s49_s24, %s4067_s26  ;;  %p4073_p3 = scmp.lt.s32.totalorder %s4067_s26, %s4067_s26 }
  0x2a   :  { %p4074_p4 = por %p4073_p3, %p4072_p2 }
  0x2c   :  { %p4075_p5 = pnand %p4074_p4, %p4068_p1 }
  0x2e   :  { %4078 = shalt.err (!%p4075_p5)
}
  0x2f   :  { %51 = dma.hbm_to_vmem [thread:$0]  %s4366_s2, 256, %s49_s24, [#allocation6]  }
  0x30   :  { %s4087_s29 = scalar_lea.vmem %s72_s25, 4096  ;;  %p4092_p7 = scmp.lt.s32.totalorder %s72_s25, %s72_s25 }
  0x31   :  { %p4088_p6 = scmp.ne.s32.totalorder %s72_s25, %s4087_s29  ;;  %p4093_p8 = scmp.lt.s32.totalorder %s4087_s29, %s4087_s29 }
  0x33   :  { %p4094_p9 = por %p4093_p8, %p4092_p7 }
  0x35   :  { %p4095_p10 = pnand %p4094_p9, %p4088_p6 }
  0x37   :  { %4098 = shalt.err (!%p4095_p10)
}
  0x38   :  { %77 = dma.hbm_to_vmem [thread:$0]  %s4369_s5, 4096, %s72_s25, [#allocation9], %s4154_s19, %s4154_s19, %s4155_s20  }
  0x39   :  { %s4158_s11 = smov [#allocation11]  }
  0x3a   :  { %s85_s12 = sshll.u32 %s4158_s11, 4  ;;  %s86_s12 = int_to_ptr.vmem [resolvable:$true] %s85_s12 }
  0x3b   :  { %s4107_s13 = scalar_lea.vmem %s86_s12, 2048  ;;  %p4112_p12 = scmp.lt.s32.totalorder %s86_s12, %s86_s12 }
  0x3c   :  { %p4108_p11 = scmp.ne.s32.totalorder %s86_s12, %s4107_s13  ;;  %p4113_p13 = scmp.lt.s32.totalorder %s4107_s13, %s4107_s13 }
  0x3e   :  { %p4114_p0 = por %p4113_p13, %p4112_p12 }
  0x40   :  { %p4115_p1 = pnand %p4114_p0, %p4108_p11 }
  0x42   :  { %4118 = shalt.err (!%p4115_p1)
}
  0x43   :  { %91 = dma.hbm_to_vmem [thread:$0]  %s4371_s7, 2048, %s86_s12, [#allocation12], %s4154_s19, %s4154_s19, %s4155_s20  }
  0x44   :  { %4139 = dma.done.wait [#allocation3], 128  }
  0x45   :  { %4140 = vsyncadd [#allocation3], 4294967168 }
  0x46   :  { %4141 = dma.done.wait [#allocation6], 33024  }
  0x47   :  { %4142 = vsyncadd [#allocation6], 4294934272 }
  0x48   :  { %4143 = dma.done.wait [#allocation9], 8192  }
  0x49   :  { %4144 = vsyncadd [#allocation9], 4294959104 }
  0x4a   :  { %4145 = dma.done.wait [#allocation12], 2048  }
  0x4b   :  { %4146 = vsyncadd [#allocation12], 4294965248  ;;  %v4159_v0 = vmov 0   ;;  %v3503_v1 = vld [vmem:[#allocation8 + $0x74] ss:$8 sps:$4 sm:$0xff]   ;;  %v3527_v27 = vld [vmem:[#allocation2] sm:$0xff]  }
  0x4c   :  { %262 = vmatprep.mubr.bf16.mxu0 %v4159_v0  ;;  %v3505_v2 = vld [vmem:[#allocation8 + $0x70] ss:$8 sps:$4 sm:$0xff]   ;;  %230 = vmatprep.subr.bf16.mxu0 %v3503_v1  ;;  %v3506_v3 = vld [vmem:[#allocation8 + $0x64] ss:$8 sps:$4 sm:$0xff]   ;;  %v3508_v4 = vld [vmem:[#allocation8 + $0x60] ss:$8 sps:$4 sm:$0xff]  }
  0x4d   :  { %231 = vmatpush1.bf16.msra.mxu0 %v3505_v2  ;;  %v3509_v5 = vld [vmem:[#allocation8 + $0x54] ss:$8 sps:$4 sm:$0xff]   ;;  %v3511_v6 = vld [vmem:[#allocation8 + $0x50] ss:$8 sps:$4 sm:$0xff]   ;;  %v3512_v7 = vld [vmem:[#allocation8 + $0x44] ss:$8 sps:$4 sm:$0xff]  }
  0x4e   :  { %232 = vmatprep.subr.bf16.mxu0 %v3506_v3  ;;  %v3514_v8 = vld [vmem:[#allocation8 + $0x40] ss:$8 sps:$4 sm:$0xff]   ;;  %v3515_v9 = vld [vmem:[#allocation8 + $0x34] ss:$8 sps:$4 sm:$0xff]   ;;  %v3528_v10 = vld [vmem:[#allocation5 + $0x74] ss:$8 sps:$4 sm:$0xff]  }
  0x4f   :  { %v3530_v11 = vld [vmem:[#allocation5 + $0x70] ss:$8 sps:$4 sm:$0xff]   ;;  %v3531_v12 = vld [vmem:[#allocation5 + $0x64] ss:$8 sps:$4 sm:$0xff]   ;;  %479 = vmatprep.subr.bf16.mxu1 %v3528_v10  ;;  %v3517_v13 = vld [vmem:[#allocation8 + $0x30] ss:$8 sps:$4 sm:$0xff]  }
  0x50   :  { %480 = vmatpush1.bf16.msra.mxu1 %v3530_v11  ;;  %v3533_v14 = vld [vmem:[#allocation5 + $0x60] ss:$8 sps:$4 sm:$0xff]   ;;  %v3518_v15 = vld [vmem:[#allocation8 + $0x24] ss:$8 sps:$4 sm:$0xff]   ;;  %v3520_v17 = vld [vmem:[#allocation8 + $0x20] ss:$8 sps:$4 sm:$0xff]  }
  0x51   :  { %233 = vmatpush1.bf16.msra.mxu0 %v3508_v4  ;;  %481 = vmatprep.subr.bf16.mxu1 %v3531_v12  ;;  %v3534_v16 = vld [vmem:[#allocation5 + $0x54] ss:$8 sps:$4 sm:$0xff]   ;;  %v3536_v18 = vld [vmem:[#allocation5 + $0x50] ss:$8 sps:$4 sm:$0xff]   ;;  %v3521_v19 = vld [vmem:[#allocation8 + $0x14] ss:$8 sps:$4 sm:$0xff]  }
  0x52   :  { %234 = vmatprep.subr.bf16.mxu0 %v3509_v5  ;;  %v3537_v20 = vld [vmem:[#allocation5 + $0x44] ss:$8 sps:$4 sm:$0xff]   ;;  %v3523_v21 = vld [vmem:[#allocation8 + $0x10] ss:$8 sps:$4 sm:$0xff]   ;;  %v3524_v23 = vld [vmem:[#allocation8 + $0x4] ss:$8 sps:$4 sm:$0xff]  }
  0x53   :  { %v3539_v22 = vld [vmem:[#allocation5 + $0x40] ss:$8 sps:$4 sm:$0xff]   ;;  %v3540_v24 = vld [vmem:[#allocation5 + $0x34] ss:$8 sps:$4 sm:$0xff]   ;;  %v3526_v25 = vld [vmem:[#allocation8] ss:$8 sps:$4 sm:$0xff]  }
  0x54   :  { %482 = vmatpush1.bf16.msra.mxu1 %v3533_v14  ;;  %v3542_v26 = vld [vmem:[#allocation5 + $0x30] ss:$8 sps:$4 sm:$0xff]   ;;  %v3543_v28 = vld [vmem:[#allocation5 + $0x24] ss:$8 sps:$4 sm:$0xff]   ;;  %v3545_v29 = vld [vmem:[#allocation5 + $0x20] ss:$8 sps:$4 sm:$0xff]  }
  0x55   :  { %235 = vmatpush1.bf16.msra.mxu0 %v3511_v6  ;;  %483 = vmatprep.subr.bf16.mxu1 %v3534_v16  ;;  %v3546_v30 = vld [vmem:[#allocation5 + $0x14] ss:$8 sps:$4 sm:$0xff]   ;;  %v3548_v31 = vld [vmem:[#allocation5 + $0x10] ss:$8 sps:$4 sm:$0xff]   ;;  %v3549_v32 = vld [vmem:[#allocation5 + $0x4] ss:$8 sps:$4 sm:$0xff]  }
  0x56   :  { %236 = vmatprep.subr.bf16.mxu0 %v3512_v7  ;;  %v3551_v33 = vld [vmem:[#allocation5] ss:$8 sps:$4 sm:$0xff]   ;;  %v3552_v34 = vld [vmem:[#allocation5 + $0xf4] ss:$8 sps:$4 sm:$0xff]   ;;  %v3554_v35 = vld [vmem:[#allocation5 + $0xf0] ss:$8 sps:$4 sm:$0xff]  }
  0x57   :  { %v3555_v36 = vld [vmem:[#allocation5 + $0xe4] ss:$8 sps:$4 sm:$0xff]   ;;  %v3557_v37 = vld [vmem:[#allocation5 + $0xe0] ss:$8 sps:$4 sm:$0xff]   ;;  %v3558_v38 = vld [vmem:[#allocation5 + $0xd4] ss:$8 sps:$4 sm:$0xff]  }
  0x58   :  { %484 = vmatpush1.bf16.msra.mxu1 %v3536_v18  ;;  %v3560_v39 = vld [vmem:[#allocation5 + $0xd0] ss:$8 sps:$4 sm:$0xff]   ;;  %v3561_v40 = vld [vmem:[#allocation5 + $0xc4] ss:$8 sps:$4 sm:$0xff]   ;;  %v3563_v41 = vld [vmem:[#allocation5 + $0xc0] ss:$8 sps:$4 sm:$0xff]  }
  0x59   :  { %237 = vmatpush1.bf16.msra.mxu0 %v3514_v8  ;;  %485 = vmatprep.subr.bf16.mxu1 %v3537_v20  ;;  %v3564_v42 = vld [vmem:[#allocation5 + $0xb4] ss:$8 sps:$4 sm:$0xff]   ;;  %v3566_v43 = vld [vmem:[#allocation5 + $0xb0] ss:$8 sps:$4 sm:$0xff]   ;;  %v3567_v44 = vld [vmem:[#allocation5 + $0xa4] ss:$8 sps:$4 sm:$0xff]  }
  0x5a   :  { %238 = vmatprep.subr.bf16.mxu0 %v3515_v9  ;;  %v3569_v45 = vld [vmem:[#allocation5 + $0xa0] ss:$8 sps:$4 sm:$0xff]   ;;  %v3570_v46 = vld [vmem:[#allocation5 + $0x94] ss:$8 sps:$4 sm:$0xff]   ;;  %v3572_v47 = vld [vmem:[#allocation5 + $0x90] ss:$8 sps:$4 sm:$0xff]  }
  0x5b   :  { %v3573_v48 = vld [vmem:[#allocation5 + $0x84] ss:$8 sps:$4 sm:$0xff]   ;;  %v3575_v49 = vld [vmem:[#allocation5 + $0x80] ss:$8 sps:$4 sm:$0xff]   ;;  %v3576_v50 = vld [vmem:[#allocation5 + $0x170] ss:$8 sps:$4 sm:$0xff]  }
  0x5c   :  { %486 = vmatpush1.bf16.msra.mxu1 %v3539_v22  ;;  %v3578_v51 = vld [vmem:[#allocation5 + $0x174] ss:$8 sps:$4 sm:$0xff]   ;;  %v3581_v52 = vld [vmem:[#allocation5 + $0x164] ss:$8 sps:$4 sm:$0xff]   ;;  %v3579_v53 = vld [vmem:[#allocation5 + $0x160] ss:$8 sps:$4 sm:$0xff]  }
  0x5d   :  { %239 = vmatpush1.bf16.msra.mxu0 %v3517_v13  ;;  %487 = vmatprep.subr.bf16.mxu1 %v3540_v24  ;;  %v3584_v54 = vld [vmem:[#allocation5 + $0x154] ss:$8 sps:$4 sm:$0xff]   ;;  %v3582_v55 = vld [vmem:[#allocation5 + $0x150] ss:$8 sps:$4 sm:$0xff]   ;;  %v3587_v56 = vld [vmem:[#allocation5 + $0x144] ss:$8 sps:$4 sm:$0xff]   ;;  %v134_v13 = vlaneseq }
  0x5e   :  { %240 = vmatprep.subr.bf16.mxu0 %v3518_v15  ;;  %v3585_v57 = vld [vmem:[#allocation5 + $0x140] ss:$8 sps:$4 sm:$0xff]   ;;  %v3590_v58 = vld [vmem:[#allocation5 + $0x134] ss:$8 sps:$4 sm:$0xff]   ;;  %v3588_v59 = vld [vmem:[#allocation5 + $0x130] ss:$8 sps:$4 sm:$0xff]  }
  0x5f   :  { %v3593_v60 = vld [vmem:[#allocation5 + $0x124] ss:$8 sps:$4 sm:$0xff]   ;;  %v3591_v61 = vld [vmem:[#allocation5 + $0x120] ss:$8 sps:$4 sm:$0xff]   ;;  %v3596_v62 = vld [vmem:[#allocation5 + $0x114] ss:$8 sps:$4 sm:$0xff]  }
  0x60   :  { %488 = vmatpush1.bf16.msra.mxu1 %v3542_v26  ;;  %v3594_v63 = vld [vmem:[#allocation5 + $0x110] ss:$8 sps:$4 sm:$0xff]   ;;  %v3599_v1 = vld [vmem:[#allocation5 + $0x104] ss:$8 sps:$4 sm:$0xff]   ;;  %v3597_v2 = vld [vmem:[#allocation5 + $0x100] ss:$8 sps:$4 sm:$0xff]  }
  0x61   :  { %241 = vmatpush1.bf16.msra.mxu0 %v3520_v17  ;;  %489 = vmatprep.subr.bf16.mxu1 %v3543_v28  ;;  %v3602_v3 = vld [vmem:[#allocation5 + $0x1f4] ss:$8 sps:$4 sm:$0xff]   ;;  %v3600_v4 = vld [vmem:[#allocation5 + $0x1f0] ss:$8 sps:$4 sm:$0xff]   ;;  %v3605_v5 = vld [vmem:[#allocation5 + $0x1e4] ss:$8 sps:$4 sm:$0xff]  }
  0x62   :  { %242 = vmatprep.subr.bf16.mxu0 %v3521_v19  ;;  %v3603_v6 = vld [vmem:[#allocation5 + $0x1e0] ss:$8 sps:$4 sm:$0xff]   ;;  %v3608_v7 = vld [vmem:[#allocation5 + $0x1d4] ss:$8 sps:$4 sm:$0xff]   ;;  %v3606_v8 = vld [vmem:[#allocation5 + $0x1d0] ss:$8 sps:$4 sm:$0xff]  }
  0x63   :  { %v3611_v9 = vld [vmem:[#allocation5 + $0x1c4] ss:$8 sps:$4 sm:$0xff]   ;;  %v3609_v10 = vld [vmem:[#allocation5 + $0x1c0] ss:$8 sps:$4 sm:$0xff]   ;;  %v3614_v11 = vld [vmem:[#allocation5 + $0x1b4] ss:$8 sps:$4 sm:$0xff]  }
  0x64   :  { %490 = vmatpush1.bf16.msra.mxu1 %v3545_v29  ;;  %v3612_v12 = vld [vmem:[#allocation5 + $0x1b0] ss:$8 sps:$4 sm:$0xff]   ;;  %v4243_v14 = vshrl.u32 %v134_v13, 7  ;;  %vm4161_vm0 = vmmov 0  }
  0x65   :  { %243 = vmatpush1.bf16.msra.mxu0 %v3523_v21  ;;  %491 = vmatprep.subr.bf16.mxu1 %v3546_v30  ;;  %v132_v17 = vld [vmem:[%s4368_s4] sm:$0x3] }
  0x66   :  { %244 = vmatprep.subr.bf16.mxu0 %v3524_v23  ;;  %v4246_v15 = vsub.s32 1, %v4243_v14  ;;  %v4249_v16 = vsub.s32 0, %v4243_v14 }
  0x68   :  { %492 = vmatpush1.bf16.msra.mxu1 %v3548_v31  ;;  %v141_v19 = vrot.slane %v132_v17, %v4246_v15  ;;  %v137_v20 = vrot.slane %v132_v17, %v4249_v16 }
  0x69   :  { %245 = vmatpush1.bf16.msra.mxu0 %v3526_v25  ;;  %493 = vmatprep.subr.bf16.mxu1 %v3549_v32 }
  0x6a   :  { %729 = vmatprep.subr.bf16.mxu0 %v3578_v51  ;;  %v3639_v51 = vld [vmem:[#allocation5 + $0x220] ss:$8 sps:$4 sm:$0xff]  }
  0x6c   :  { %263 = vmatmul.mubr.bf16.vlgmr.msra.gmra.mxu0 %v3527_v27  ;;  %494 = vmatpush1.bf16.msra.mxu1 %v3551_v33 }
  0x6d   :  { %495 = vmatprep.subr.bf16.mxu1 %v3552_v34  ;;  %730 = vmatpush1.bf16.msra.mxu0 %v3576_v50  ;;  %v3617_v34 = vld [vmem:[#allocation5 + $0x1a4] ss:$8 sps:$4 sm:$0xff]  }
  0x6e   :  { %731 = vmatprep.subr.bf16.mxu0 %v3581_v52  ;;  %v3641_v50 = vld [vmem:[#allocation5 + $0x224] ss:$8 sps:$4 sm:$0xff]   ;;  %v3644_v52 = vld [vmem:[#allocation5 + $0x214] ss:$8 sps:$4 sm:$0xff]  }
  0x70   :  { %496 = vmatpush2.bf16.msra.mxu1 %v3554_v35  ;;  %v3615_v35 = vld [vmem:[#allocation5 + $0x1a0] ss:$8 sps:$4 sm:$0xff]  }
  0x71   :  { %497 = vmatprep.subr.bf16.mxu1 %v3555_v36  ;;  %732 = vmatpush1.bf16.msra.mxu0 %v3579_v53  ;;  %v3620_v36 = vld [vmem:[#allocation5 + $0x194] ss:$8 sps:$4 sm:$0xff]   ;;  %v3642_v53 = vld [vmem:[#allocation5 + $0x210] ss:$8 sps:$4 sm:$0xff]  }
  0x72   :  { %733 = vmatprep.subr.bf16.mxu0 %v3584_v54  ;;  %v3647_v54 = vld [vmem:[#allocation5 + $0x204] ss:$8 sps:$4 sm:$0xff]  }
  0x74   :  { %498 = vmatpush2.bf16.msra.mxu1 %v3557_v37  ;;  %v3618_v37 = vld [vmem:[#allocation5 + $0x190] ss:$8 sps:$4 sm:$0xff]  }
  0x75   :  { %499 = vmatprep.subr.bf16.mxu1 %v3558_v38  ;;  %734 = vmatpush1.bf16.msra.mxu0 %v3582_v55  ;;  %v3623_v38 = vld [vmem:[#allocation5 + $0x184] ss:$8 sps:$4 sm:$0xff]   ;;  %v3645_v55 = vld [vmem:[#allocation5 + $0x200] ss:$8 sps:$4 sm:$0xff]  }
  0x76   :  { %735 = vmatprep.subr.bf16.mxu0 %v3587_v56  ;;  %v3650_v56 = vld [vmem:[#allocation5 + $0x2f4] ss:$8 sps:$4 sm:$0xff]  }
  0x78   :  { %500 = vmatpush2.bf16.msra.mxu1 %v3560_v39  ;;  %v3621_v39 = vld [vmem:[#allocation5 + $0x180] ss:$8 sps:$4 sm:$0xff]  }
  0x79   :  { %501 = vmatprep.subr.bf16.mxu1 %v3561_v40  ;;  %736 = vmatpush1.bf16.msra.mxu0 %v3585_v57  ;;  %v3624_v40 = vld [vmem:[#allocation5 + $0x270] ss:$8 sps:$4 sm:$0xff]  }
  0x7a   :  { %737 = vmatprep.subr.bf16.mxu0 %v3590_v58  ;;  %v3648_v57 = vld [vmem:[#allocation5 + $0x2f0] ss:$8 sps:$4 sm:$0xff]   ;;  %v3653_v58 = vld [vmem:[#allocation5 + $0x2e4] ss:$8 sps:$4 sm:$0xff]  }
  0x7c   :  { %502 = vmatpush2.bf16.msra.mxu1 %v3563_v41  ;;  %v3626_v41 = vld [vmem:[#allocation5 + $0x274] ss:$8 sps:$4 sm:$0xff]  }
  0x7d   :  { %503 = vmatprep.subr.bf16.mxu1 %v3564_v42  ;;  %738 = vmatpush1.bf16.msra.mxu0 %v3588_v59  ;;  %v3629_v42 = vld [vmem:[#allocation5 + $0x264] ss:$8 sps:$4 sm:$0xff]   ;;  %v3651_v59 = vld [vmem:[#allocation5 + $0x2e0] ss:$8 sps:$4 sm:$0xff]  }
  0x7e   :  { %739 = vmatprep.subr.bf16.mxu0 %v3593_v60  ;;  %v3656_v60 = vld [vmem:[#allocation5 + $0x2d4] ss:$8 sps:$4 sm:$0xff]  }
  0x80   :  { %504 = vmatpush2.bf16.msra.mxu1 %v3566_v43  ;;  %v3627_v43 = vld [vmem:[#allocation5 + $0x260] ss:$8 sps:$4 sm:$0xff]  }
  0x81   :  { %505 = vmatprep.subr.bf16.mxu1 %v3567_v44  ;;  %740 = vmatpush1.bf16.msra.mxu0 %v3591_v61  ;;  %v3632_v44 = vld [vmem:[#allocation5 + $0x254] ss:$8 sps:$4 sm:$0xff]   ;;  %v3654_v61 = vld [vmem:[#allocation5 + $0x2d0] ss:$8 sps:$4 sm:$0xff]  }
  0x82   :  { %741 = vmatprep.subr.bf16.mxu0 %v3596_v62  ;;  %v3659_v62 = vld [vmem:[#allocation5 + $0x2c4] ss:$8 sps:$4 sm:$0xff]  }
  0x84   :  { %506 = vmatpush2.bf16.msra.mxu1 %v3569_v45  ;;  %v3630_v45 = vld [vmem:[#allocation5 + $0x250] ss:$8 sps:$4 sm:$0xff]  }
  0x85   :  { %507 = vmatprep.subr.bf16.mxu1 %v3570_v46  ;;  %742 = vmatpush1.bf16.msra.mxu0 %v3594_v63  ;;  %v3635_v46 = vld [vmem:[#allocation5 + $0x244] ss:$8 sps:$4 sm:$0xff]   ;;  %v3657_v63 = vld [vmem:[#allocation5 + $0x2c0] ss:$8 sps:$4 sm:$0xff]  }
  0x86   :  { %743 = vmatprep.subr.bf16.mxu0 %v3599_v1  ;;  %v3662_v1 = vld [vmem:[#allocation5 + $0x2b4] ss:$8 sps:$4 sm:$0xff]  }
  0x88   :  { %508 = vmatpush2.bf16.msra.mxu1 %v3572_v47  ;;  %v3633_v47 = vld [vmem:[#allocation5 + $0x240] ss:$8 sps:$4 sm:$0xff]  }
  0x89   :  { %509 = vmatprep.subr.bf16.mxu1 %v3573_v48  ;;  %744 = vmatpush1.bf16.msra.mxu0 %v3597_v2  ;;  %v3638_v48 = vld [vmem:[#allocation5 + $0x234] ss:$8 sps:$4 sm:$0xff]   ;;  %v3660_v2 = vld [vmem:[#allocation5 + $0x2b0] ss:$8 sps:$4 sm:$0xff]  }
  0x8a   :  { %745 = vmatprep.subr.bf16.mxu0 %v3602_v3  ;;  %v4256_v3 = vld [vmem:[#allocation7 + $0x8] sm:$0xff] }
  0x8c   :  { %510 = vmatpush2.bf16.msra.mxu1 %v3575_v49  ;;  %v3636_v49 = vld [vmem:[#allocation5 + $0x230] ss:$8 sps:$4 sm:$0xff]  }
  0x8d   :  { %746 = vmatpush2.bf16.msra.mxu0 %v3600_v4  ;;  %979 = vmatprep.subr.bf16.mxu1 %v3626_v41  ;;  %v4258_v4 = vld [vmem:[#allocation7] sm:$0xff] }
  0x8e   :  { %747 = vmatprep.subr.bf16.mxu0 %v3605_v5  ;;  %v3689_v41 = vld [vmem:[#allocation5 + $0x324] ss:$8 sps:$4 sm:$0xff]  }
  0x91   :  { %748 = vmatpush2.bf16.msra.mxu0 %v3603_v6  ;;  %v318_v6 = vrot.slane %v4256_v3, %v4249_v16 }
  0x92   :  { %749 = vmatprep.subr.bf16.mxu0 %v3608_v7  ;;  %v314_v7 = vrot.slane %v4258_v4, %v4249_v16 }
  0x95   :  { %750 = vmatpush2.bf16.msra.mxu0 %v3606_v8 }
  0x96   :  { %751 = vmatprep.subr.bf16.mxu0 %v3611_v9 }
  0x99   :  { %752 = vmatpush2.bf16.msra.mxu0 %v3609_v10 }
  0x9a   :  { %753 = vmatprep.subr.bf16.mxu0 %v3614_v11 }
  0x9d   :  { %754 = vmatpush2.bf16.msra.mxu0 %v3612_v12 }
  0x9e   :  { %755 = vmatprep.subr.bf16.mxu0 %v3617_v34  ;;  %v3675_v34 = vld [vmem:[#allocation5 + $0x360] ss:$8 sps:$4 sm:$0xff]  }
  0xa1   :  { %756 = vmatpush2.bf16.msra.mxu0 %v3615_v35  ;;  %v3680_v35 = vld [vmem:[#allocation5 + $0x354] ss:$8 sps:$4 sm:$0xff]  }
  0xa2   :  { %757 = vmatprep.subr.bf16.mxu0 %v3620_v36  ;;  %v3678_v36 = vld [vmem:[#allocation5 + $0x350] ss:$8 sps:$4 sm:$0xff]  }
  0xa5   :  { %758 = vmatpush2.bf16.msra.mxu0 %v3618_v37  ;;  %v3683_v37 = vld [vmem:[#allocation5 + $0x344] ss:$8 sps:$4 sm:$0xff]  }
  0xa6   :  { %759 = vmatprep.subr.bf16.mxu0 %v3623_v38  ;;  %v3681_v38 = vld [vmem:[#allocation5 + $0x340] ss:$8 sps:$4 sm:$0xff]  }
  0xa9   :  { %760 = vmatpush2.bf16.msra.mxu0 %v3621_v39  ;;  %v3686_v39 = vld [vmem:[#allocation5 + $0x334] ss:$8 sps:$4 sm:$0xff]  }
 0x12c   :  { %v264_v18 = vpop.f32.mrf.mxu0 }
 0x12d   :  { %v265_v25 = vadd.f32 %v264_v18, %v137_v20 }
 0x12e   :  { %v266_v21 = vpop.f32.mrf.mxu0 }
 0x12f   :  { %v267_v23 = vadd.f32 %v266_v21, %v141_v19  ;;  %v273_v31 = vmax.f32 %v265_v25, 0.0  ;;  %v3665_v25 = vld [vmem:[#allocation5 + $0x2a4] ss:$8 sps:$4 sm:$0xff]  }
 0x130   :  { %v268_v22 = vpop.f32.mrf.mxu0 }
 0x131   :  { %v269_v24 = vadd.f32 %v268_v22, %v137_v20  ;;  %v274_v29 = vmax.f32 %v267_v23, 0.0 }
 0x132   :  { %v270_v26 = vpop.f32.mrf.mxu0 }
 0x133   :  { %v271_v27 = vadd.f32 %v270_v26, %v141_v19  ;;  %v275_v28 = vmax.f32 %v269_v24, 0.0  ;;  %v3663_v26 = vld [vmem:[#allocation5 + $0x2a0] ss:$8 sps:$4 sm:$0xff]  }
 0x135   :  { %v276_v30 = vmax.f32 %v271_v27, 0.0  ;;  %v277_v33 = vpack.c.bf16 %v275_v28, %v273_v31  ;;  %v3668_v27 = vld [vmem:[#allocation5 + $0x294] ss:$8 sps:$4 sm:$0xff]   ;;  %v3666_v28 = vld [vmem:[#allocation5 + $0x290] ss:$8 sps:$4 sm:$0xff]  }
 0x136   :  { %v3672_v31 = vld [vmem:[#allocation5 + $0x370] ss:$8 sps:$4 sm:$0xff]  }
 0x137   :  { %v278_v32 = vpack.c.bf16 %v276_v30, %v274_v29  ;;  %v3671_v29 = vld [vmem:[#allocation5 + $0x284] ss:$8 sps:$4 sm:$0xff]   ;;  %v3669_v30 = vld [vmem:[#allocation5 + $0x280] ss:$8 sps:$4 sm:$0xff]  }
 0x139   :  { %511 = vmatprep.mubr.bf16.mxu1 %v278_v32  ;;  %v3674_v32 = vld [vmem:[#allocation5 + $0x374] ss:$8 sps:$4 sm:$0xff]  }
 0x13a   :  { %512 = vmatmul.mubr.bf16.vlgmr.msra.gmra.mxu1 %v277_v33  ;;  %v3677_v33 = vld [vmem:[#allocation5 + $0x364] ss:$8 sps:$4 sm:$0xff]   ;;  %1229 = vmatprep.subr.bf16.mxu0 %v3674_v32  ;;  %v3771_v32 = vld [vmem:[#allocation8 + $0xa0] ss:$8 sps:$4 sm:$0xff]  }
 0x13b   :  { %980 = vmatpush1.bf16.msra.mxu1 %v3624_v40  ;;  %v3684_v40 = vld [vmem:[#allocation5 + $0x330] ss:$8 sps:$4 sm:$0xff]  }
 0x13c   :  { %981 = vmatprep.subr.bf16.mxu1 %v3629_v42  ;;  %v3687_v42 = vld [vmem:[#allocation5 + $0x320] ss:$8 sps:$4 sm:$0xff]  }
 0x13f   :  { %982 = vmatpush1.bf16.msra.mxu1 %v3627_v43  ;;  %v3692_v43 = vld [vmem:[#allocation5 + $0x314] ss:$8 sps:$4 sm:$0xff]  }
 0x140   :  { %983 = vmatprep.subr.bf16.mxu1 %v3632_v44  ;;  %v3690_v44 = vld [vmem:[#allocation5 + $0x310] ss:$8 sps:$4 sm:$0xff]  }
 0x143   :  { %984 = vmatpush1.bf16.msra.mxu1 %v3630_v45  ;;  %v3695_v45 = vld [vmem:[#allocation5 + $0x304] ss:$8 sps:$4 sm:$0xff]  }
 0x144   :  { %985 = vmatprep.subr.bf16.mxu1 %v3635_v46  ;;  %v3693_v46 = vld [vmem:[#allocation5 + $0x300] ss:$8 sps:$4 sm:$0xff]  }
 0x147   :  { %986 = vmatpush1.bf16.msra.mxu1 %v3633_v47  ;;  %v3698_v47 = vld [vmem:[#allocation5 + $0x3f4] ss:$8 sps:$4 sm:$0xff]  }
 0x148   :  { %987 = vmatprep.subr.bf16.mxu1 %v3638_v48  ;;  %v3696_v48 = vld [vmem:[#allocation5 + $0x3f0] ss:$8 sps:$4 sm:$0xff]  }
 0x14b   :  { %988 = vmatpush1.bf16.msra.mxu1 %v3636_v49  ;;  %v3701_v49 = vld [vmem:[#allocation5 + $0x3e4] ss:$8 sps:$4 sm:$0xff]  }
 0x14c   :  { %989 = vmatprep.subr.bf16.mxu1 %v3641_v50  ;;  %v3699_v50 = vld [vmem:[#allocation5 + $0x3e0] ss:$8 sps:$4 sm:$0xff]  }
 0x14f   :  { %990 = vmatpush1.bf16.msra.mxu1 %v3639_v51  ;;  %v3704_v51 = vld [vmem:[#allocation5 + $0x3d4] ss:$8 sps:$4 sm:$0xff]  }
 0x150   :  { %991 = vmatprep.subr.bf16.mxu1 %v3644_v52  ;;  %v3702_v52 = vld [vmem:[#allocation5 + $0x3d0] ss:$8 sps:$4 sm:$0xff]  }
 0x153   :  { %992 = vmatpush1.bf16.msra.mxu1 %v3642_v53  ;;  %v3707_v53 = vld [vmem:[#allocation5 + $0x3c4] ss:$8 sps:$4 sm:$0xff]  }
 0x154   :  { %993 = vmatprep.subr.bf16.mxu1 %v3647_v54  ;;  %v3705_v54 = vld [vmem:[#allocation5 + $0x3c0] ss:$8 sps:$4 sm:$0xff]  }
 0x157   :  { %994 = vmatpush1.bf16.msra.mxu1 %v3645_v55  ;;  %v3710_v55 = vld [vmem:[#allocation5 + $0x3b4] ss:$8 sps:$4 sm:$0xff]  }
 0x158   :  { %995 = vmatprep.subr.bf16.mxu1 %v3650_v56  ;;  %v3708_v56 = vld [vmem:[#allocation5 + $0x3b0] ss:$8 sps:$4 sm:$0xff]  }
 0x15b   :  { %996 = vmatpush2.bf16.msra.mxu1 %v3648_v57 }
 0x15c   :  { %997 = vmatprep.subr.bf16.mxu1 %v3653_v58  ;;  %v568_v58 = vrot.slane %v4256_v3, %v4246_v15 }
 0x15f   :  { %998 = vmatpush2.bf16.msra.mxu1 %v3651_v59  ;;  %v564_v59 = vrot.slane %v4258_v4, %v4246_v15 }
 0x160   :  { %999 = vmatprep.subr.bf16.mxu1 %v3656_v60 }
 0x163   :  { %1000 = vmatpush2.bf16.msra.mxu1 %v3654_v61 }
 0x164   :  { %1001 = vmatprep.subr.bf16.mxu1 %v3659_v62 }
 0x167   :  { %1002 = vmatpush2.bf16.msra.mxu1 %v3657_v63 }
 0x168   :  { %1003 = vmatprep.subr.bf16.mxu1 %v3662_v1 }
 0x16b   :  { %1004 = vmatpush2.bf16.msra.mxu1 %v3660_v2 }
 0x16c   :  { %1005 = vmatprep.subr.bf16.mxu1 %v3665_v25  ;;  %v3747_v25 = vld [vmem:[#allocation8 + $0xe0] ss:$8 sps:$4 sm:$0xff]  }
 0x16f   :  { %1006 = vmatpush2.bf16.msra.mxu1 %v3663_v26  ;;  %v3753_v26 = vld [vmem:[#allocation8 + $0xd0] ss:$8 sps:$4 sm:$0xff]  }
 0x170   :  { %1007 = vmatprep.subr.bf16.mxu1 %v3668_v27  ;;  %v3755_v27 = vld [vmem:[#allocation8 + $0xd4] ss:$8 sps:$4 sm:$0xff]  }
 0x173   :  { %1008 = vmatpush2.bf16.msra.mxu1 %v3666_v28  ;;  %v3759_v28 = vld [vmem:[#allocation8 + $0xc0] ss:$8 sps:$4 sm:$0xff]  }
 0x174   :  { %1009 = vmatprep.subr.bf16.mxu1 %v3671_v29  ;;  %v3761_v29 = vld [vmem:[#allocation8 + $0xc4] ss:$8 sps:$4 sm:$0xff]  }
 0x177   :  { %1010 = vmatpush2.bf16.msra.mxu1 %v3669_v30  ;;  %v3765_v30 = vld [vmem:[#allocation8 + $0xb0] ss:$8 sps:$4 sm:$0xff]  }
 0x1fa   :  { %v513_v5 = vpop.f32.mrf.mxu1 }
 0x1fb   :  { %v514_v12 = vadd.f32 %v513_v5, %v314_v7 }
 0x1fc   :  { %v515_v8 = vpop.f32.mrf.mxu1 }
 0x1fd   :  { %v516_v10 = vadd.f32 %v515_v8, %v318_v6  ;;  %v522_v22 = vmax.f32 %v514_v12, 0.0  ;;  %v3713_v12 = vld [vmem:[#allocation5 + $0x3a4] ss:$8 sps:$4 sm:$0xff]  }
 0x1fe   :  { %v517_v9 = vpop.f32.mrf.mxu1 }
 0x1ff   :  { %v518_v11 = vadd.f32 %v517_v9, %v314_v7  ;;  %v523_v20 = vmax.f32 %v516_v10, 0.0 }
 0x200   :  { %v519_v17 = vpop.f32.mrf.mxu1 }
 0x201   :  { %v520_v18 = vadd.f32 %v519_v17, %v318_v6  ;;  %v524_v19 = vmax.f32 %v518_v11, 0.0  ;;  %v3711_v17 = vld [vmem:[#allocation5 + $0x3a0] ss:$8 sps:$4 sm:$0xff]  }
 0x203   :  { %v525_v21 = vmax.f32 %v520_v18, 0.0  ;;  %v526_v24 = vpack.c.bf16 %v524_v19, %v522_v22  ;;  %v3716_v18 = vld [vmem:[#allocation5 + $0x394] ss:$8 sps:$4 sm:$0xff]   ;;  %v3714_v19 = vld [vmem:[#allocation5 + $0x390] ss:$8 sps:$4 sm:$0xff]  }
 0x204   :  { %v3722_v22 = vld [vmem:[#allocation5 + $0x474] ss:$8 sps:$4 sm:$0xff]  }
 0x205   :  { %v527_v23 = vpack.c.bf16 %v525_v21, %v523_v20  ;;  %v3719_v20 = vld [vmem:[#allocation5 + $0x384] ss:$8 sps:$4 sm:$0xff]   ;;  %v3717_v21 = vld [vmem:[#allocation5 + $0x380] ss:$8 sps:$4 sm:$0xff]  }
 0x207   :  { %761 = vmatprep.mubr.bf16.mxu0 %v527_v23  ;;  %v3741_v23 = vld [vmem:[#allocation8 + $0xf0] ss:$8 sps:$4 sm:$0xff]  }
 0x208   :  { %762 = vmatmul.mubr.bf16.vlgmr.msra.gmra.mxu0 %v526_v24  ;;  %v3743_v24 = vld [vmem:[#allocation8 + $0xf4] ss:$8 sps:$4 sm:$0xff]  }
 0x209   :  { %1230 = vmatpush1.bf16.msra.mxu0 %v3672_v31  ;;  %1408 = vmatprep.subr.bf16.mxu1 %v3743_v24  ;;  %v3767_v31 = vld [vmem:[#allocation8 + $0xb4] ss:$8 sps:$4 sm:$0xff]   ;;  %v3783_v24 = vld [vmem:[#allocation8 + $0x80] ss:$8 sps:$4 sm:$0xff]  }
 0x20a   :  { %1231 = vmatprep.subr.bf16.mxu0 %v3677_v33  ;;  %v3773_v33 = vld [vmem:[#allocation8 + $0xa4] ss:$8 sps:$4 sm:$0xff]  }
 0x20d   :  { %1232 = vmatpush1.bf16.msra.mxu0 %v3675_v34  ;;  %v813_v34 = vsub.s32 2, %v4243_v14 }
 0x20e   :  { %1233 = vmatprep.subr.bf16.mxu0 %v3680_v35 }
 0x211   :  { %1234 = vmatpush1.bf16.msra.mxu0 %v3678_v36  ;;  %v818_v36 = vrot.slane %v4256_v3, %v813_v34 }
 0x212   :  { %1235 = vmatprep.subr.bf16.mxu0 %v3683_v37  ;;  %v814_v37 = vrot.slane %v4258_v4, %v813_v34  ;;  %v3798_v34 = vld [vmem:[#allocation5 + $0x550] ss:$8 sps:$4 sm:$0xff]  }
 0x215   :  { %1236 = vmatpush1.bf16.msra.mxu0 %v3681_v38 }
 0x216   :  { %1237 = vmatprep.subr.bf16.mxu0 %v3686_v39 }
 0x219   :  { %1238 = vmatpush1.bf16.msra.mxu0 %v3684_v40 }
 0x21a   :  { %1239 = vmatprep.subr.bf16.mxu0 %v3689_v41 }
 0x21d   :  { %1240 = vmatpush1.bf16.msra.mxu0 %v3687_v42 }
 0x21e   :  { %1241 = vmatprep.subr.bf16.mxu0 %v3692_v43 }
 0x221   :  { %1242 = vmatpush1.bf16.msra.mxu0 %v3690_v44 }
 0x222   :  { %1243 = vmatprep.subr.bf16.mxu0 %v3695_v45 }
 0x225   :  { %1244 = vmatpush1.bf16.msra.mxu0 %v3693_v46 }
 0x226   :  { %1245 = vmatprep.subr.bf16.mxu0 %v3698_v47 }
 0x229   :  { %1246 = vmatpush2.bf16.msra.mxu0 %v3696_v48 }
 0x22a   :  { %1247 = vmatprep.subr.bf16.mxu0 %v3701_v49 }
 0x22d   :  { %1248 = vmatpush2.bf16.msra.mxu0 %v3699_v50  ;;  %v3720_v50 = vld [vmem:[#allocation5 + $0x470] ss:$8 sps:$4 sm:$0xff]  }
 0x22e   :  { %1249 = vmatprep.subr.bf16.mxu0 %v3704_v51 }
 0x231   :  { %1250 = vmatpush2.bf16.msra.mxu0 %v3702_v52  ;;  %v3725_v52 = vld [vmem:[#allocation5 + $0x464] ss:$8 sps:$4 sm:$0xff]  }
 0x232   :  { %1251 = vmatprep.subr.bf16.mxu0 %v3707_v53  ;;  %v3723_v53 = vld [vmem:[#allocation5 + $0x460] ss:$8 sps:$4 sm:$0xff]  }
 0x235   :  { %1252 = vmatpush2.bf16.msra.mxu0 %v3705_v54  ;;  %v3728_v54 = vld [vmem:[#allocation5 + $0x454] ss:$8 sps:$4 sm:$0xff]  }
 0x236   :  { %1253 = vmatprep.subr.bf16.mxu0 %v3710_v55  ;;  %v3726_v55 = vld [vmem:[#allocation5 + $0x450] ss:$8 sps:$4 sm:$0xff]  }
 0x239   :  { %1254 = vmatpush2.bf16.msra.mxu0 %v3708_v56  ;;  %v3731_v56 = vld [vmem:[#allocation5 + $0x444] ss:$8 sps:$4 sm:$0xff]  }
 0x23a   :  { %1255 = vmatprep.subr.bf16.mxu0 %v3713_v12  ;;  %v3768_v12 = vld [vmem:[#allocation5 + $0x4c0] ss:$8 sps:$4 sm:$0xff]  }
 0x23d   :  { %1256 = vmatpush2.bf16.msra.mxu0 %v3711_v17  ;;  %v3776_v17 = vld [vmem:[#allocation5 + $0x4b4] ss:$8 sps:$4 sm:$0xff]  }
 0x23e   :  { %1257 = vmatprep.subr.bf16.mxu0 %v3716_v18  ;;  %v3774_v18 = vld [vmem:[#allocation5 + $0x4b0] ss:$8 sps:$4 sm:$0xff]  }
 0x241   :  { %1258 = vmatpush2.bf16.msra.mxu0 %v3714_v19  ;;  %v3779_v19 = vld [vmem:[#allocation8 + $0x94] ss:$8 sps:$4 sm:$0xff]  }
 0x242   :  { %1259 = vmatprep.subr.bf16.mxu0 %v3719_v20  ;;  %v3777_v20 = vld [vmem:[#allocation8 + $0x90] ss:$8 sps:$4 sm:$0xff]  }
 0x245   :  { %1260 = vmatpush2.bf16.msra.mxu0 %v3717_v21  ;;  %v3782_v21 = vld [vmem:[#allocation5 + $0x4a4] ss:$8 sps:$4 sm:$0xff]  }
 0x246   :  { %1611 = vmatprep.subr.bf16.mxu0 %v3722_v22  ;;  %v3780_v22 = vld [vmem:[#allocation5 + $0x4a0] ss:$8 sps:$4 sm:$0xff]  }
 0x2c8   :  { %v763_v57 = vpop.f32.mrf.mxu0 }
 0x2c9   :  { %v764_v1 = vadd.f32 %v763_v57, %v564_v59  ;;  %v3729_v57 = vld [vmem:[#allocation5 + $0x440] ss:$8 sps:$4 sm:$0xff]  }
 0x2ca   :  { %v765_v60 = vpop.f32.mrf.mxu0 }
 0x2cb   :  { %v766_v62 = vadd.f32 %v765_v60, %v568_v58  ;;  %v772_v9 = vmax.f32 %v764_v1, 0.0  ;;  %v3737_v60 = vld [vmem:[#allocation5 + $0x424] ss:$8 sps:$4 sm:$0xff]  }
 0x2cc   :  { %v767_v61 = vpop.f32.mrf.mxu0  ;;  %v3746_v1 = vld [vmem:[#allocation5 + $0x404] ss:$8 sps:$4 sm:$0xff]  }
 0x2cd   :  { %v768_v63 = vadd.f32 %v767_v61, %v564_v59  ;;  %v773_v7 = vmax.f32 %v766_v62, 0.0  ;;  %v3732_v59 = vld [vmem:[#allocation5 + $0x430] ss:$8 sps:$4 sm:$0xff]   ;;  %v3735_v61 = vld [vmem:[#allocation5 + $0x420] ss:$8 sps:$4 sm:$0xff]  }
 0x2ce   :  { %v769_v2 = vpop.f32.mrf.mxu0  ;;  %v3740_v62 = vld [vmem:[#allocation5 + $0x414] ss:$8 sps:$4 sm:$0xff]  }
 0x2cf   :  { %v770_v5 = vadd.f32 %v769_v2, %v568_v58  ;;  %v774_v6 = vmax.f32 %v768_v63, 0.0  ;;  %v3734_v58 = vld [vmem:[#allocation5 + $0x434] ss:$8 sps:$4 sm:$0xff]   ;;  %v3738_v63 = vld [vmem:[#allocation5 + $0x410] ss:$8 sps:$4 sm:$0xff]  }
 0x2d0   :  { %v3744_v2 = vld [vmem:[#allocation5 + $0x400] ss:$8 sps:$4 sm:$0xff]  }
 0x2d1   :  { %v775_v8 = vmax.f32 %v770_v5, 0.0  ;;  %v776_v11 = vpack.c.bf16 %v774_v6, %v772_v9  ;;  %v3752_v5 = vld [vmem:[#allocation5 + $0x4f4] ss:$8 sps:$4 sm:$0xff]   ;;  %v3750_v6 = vld [vmem:[#allocation5 + $0x4f0] ss:$8 sps:$4 sm:$0xff]  }
 0x2d2   :  { %v3764_v9 = vld [vmem:[#allocation5 + $0x4d4] ss:$8 sps:$4 sm:$0xff]  }
 0x2d3   :  { %v777_v10 = vpack.c.bf16 %v775_v8, %v773_v7  ;;  %v3758_v7 = vld [vmem:[#allocation5 + $0x4e4] ss:$8 sps:$4 sm:$0xff]   ;;  %v3756_v8 = vld [vmem:[#allocation5 + $0x4e0] ss:$8 sps:$4 sm:$0xff]  }
 0x2d5   :  { %1011 = vmatprep.mubr.bf16.mxu1 %v777_v10  ;;  %v3762_v10 = vld [vmem:[#allocation5 + $0x4d0] ss:$8 sps:$4 sm:$0xff]  }
 0x2d6   :  { %1012 = vmatmul.mubr.bf16.vlgmr.msra.gmra.mxu1 %v776_v11  ;;  %v3770_v11 = vld [vmem:[#allocation5 + $0x4c4] ss:$8 sps:$4 sm:$0xff]  }
 0x2d7   :  { %1440 = vmatprep.mubr.bf16.mxu1 %v4159_v0  ;;  %1409 = vmatpush1.bf16.msra.mxu1 %v3741_v23  ;;  %v3749_v0 = vld [vmem:[#allocation8 + $0xe4] ss:$8 sps:$4 sm:$0xff]  }
 0x2d8   :  { %1410 = vmatprep.subr.bf16.mxu1 %v3749_v0  ;;  %v3785_v23 = vld [vmem:[#allocation8 + $0x84] ss:$8 sps:$4 sm:$0xff]   ;;  %v3786_v0 = vld [vmem:[#allocation5 + $0x490] ss:$8 sps:$4 sm:$0xff]  }
 0x2db   :  { %1411 = vmatpush1.bf16.msra.mxu1 %v3747_v25  ;;  %v3788_v25 = vld [vmem:[#allocation5 + $0x494] ss:$8 sps:$4 sm:$0xff]  }
 0x2dc   :  { %1412 = vmatprep.subr.bf16.mxu1 %v3755_v27  ;;  %v3791_v27 = vld [vmem:[#allocation5 + $0x484] ss:$8 sps:$4 sm:$0xff]  }
 0x2df   :  { %1413 = vmatpush1.bf16.msra.mxu1 %v3753_v26  ;;  %v4272_v26 = vld [vmem:[#allocation2] sm:$0xff]  }
 0x2e0   :  { %1414 = vmatprep.subr.bf16.mxu1 %v3761_v29  ;;  %v3792_v29 = vld [vmem:[#allocation5 + $0x570] ss:$8 sps:$4 sm:$0xff]  }
 0x2e3   :  { %1415 = vmatpush1.bf16.msra.mxu1 %v3759_v28  ;;  %v3789_v28 = vld [vmem:[#allocation5 + $0x480] ss:$8 sps:$4 sm:$0xff]  }
 0x2e4   :  { %1416 = vmatprep.subr.bf16.mxu1 %v3767_v31  ;;  %v3797_v31 = vld [vmem:[#allocation5 + $0x564] ss:$8 sps:$4 sm:$0xff]  }
 0x2e7   :  { %1417 = vmatpush1.bf16.msra.mxu1 %v3765_v30  ;;  %v3794_v30 = vld [vmem:[#allocation5 + $0x574] ss:$8 sps:$4 sm:$0xff]  }
 0x2e8   :  { %1418 = vmatprep.subr.bf16.mxu1 %v3773_v33  ;;  %v3800_v33 = vld [vmem:[#allocation5 + $0x554] ss:$8 sps:$4 sm:$0xff]  }
 0x2eb   :  { %1419 = vmatpush1.bf16.msra.mxu1 %v3771_v32  ;;  %v3795_v32 = vld [vmem:[#allocation5 + $0x560] ss:$8 sps:$4 sm:$0xff]  }
 0x2ec   :  { %1420 = vmatprep.subr.bf16.mxu1 %v3779_v19  ;;  %v3839_v19 = vld [vmem:[#allocation5 + $0x584] ss:$8 sps:$4 sm:$0xff]  }
 0x2ef   :  { %1421 = vmatpush1.bf16.msra.mxu1 %v3777_v20  ;;  %v3837_v20 = vld [vmem:[#allocation5 + $0x580] ss:$8 sps:$4 sm:$0xff]  }
 0x2f0   :  { %1422 = vmatprep.subr.bf16.mxu1 %v3785_v23  ;;  %v3845_v23 = vld [vmem:[#allocation5 + $0x664] ss:$8 sps:$4 sm:$0xff]  }
 0x2f3   :  { %1423 = vmatpush1.bf16.msra.mxu1 %v3783_v24  ;;  %v3843_v24 = vld [vmem:[#allocation5 + $0x660] ss:$8 sps:$4 sm:$0xff]  }
 0x2f4   :  { %1873 = vmatprep.subr.bf16.mxu1 %v3794_v30  ;;  %v3852_v30 = vld [vmem:[#allocation5 + $0x630] ss:$8 sps:$4 sm:$0xff]  }
 0x2f6   :  { %1441 = vmatmul.mubr.bf16.vlgmr.msra.gmra.mxu1 %v4272_v26 }
 0x2f7   :  { %1874 = vmatpush1.bf16.msra.mxu1 %v3792_v29  ;;  %v3854_v29 = vld [vmem:[#allocation5 + $0x634] ss:$8 sps:$4 sm:$0xff]  }
 0x2f8   :  { %1875 = vmatprep.subr.bf16.mxu1 %v3797_v31  ;;  %v3857_v31 = vld [vmem:[#allocation5 + $0x624] ss:$8 sps:$4 sm:$0xff]  }
 0x2fb   :  { %1876 = vmatpush1.bf16.msra.mxu1 %v3795_v32  ;;  %v3855_v32 = vld [vmem:[#allocation5 + $0x620] ss:$8 sps:$4 sm:$0xff]  }
 0x2fc   :  { %1877 = vmatprep.subr.bf16.mxu1 %v3800_v33  ;;  %v3860_v33 = vld [vmem:[#allocation5 + $0x614] ss:$8 sps:$4 sm:$0xff]  }
 0x2ff   :  { %1878 = vmatpush1.bf16.msra.mxu1 %v3798_v34  ;;  %v3858_v34 = vld [vmem:[#allocation5 + $0x610] ss:$8 sps:$4 sm:$0xff]  }
 0x396   :  { %v1013_v35 = vpop.f32.mrf.mxu1 }
 0x397   :  { %v1014_v42 = vadd.f32 %v1013_v35, %v814_v37  ;;  %v3803_v35 = vld [vmem:[#allocation5 + $0x544] ss:$8 sps:$4 sm:$0xff]  }
 0x398   :  { %v1015_v38 = vpop.f32.mrf.mxu1  ;;  %1879 = vmatprep.subr.bf16.mxu1 %v3803_v35  ;;  %v3863_v35 = vld [vmem:[#allocation5 + $0x604] ss:$8 sps:$4 sm:$0xff]  }
 0x399   :  { %v1016_v40 = vadd.f32 %v1015_v38, %v818_v36  ;;  %v1022_v48 = vmax.f32 %v1014_v42, 0.0  ;;  %v3804_v38 = vld [vmem:[#allocation5 + $0x530] ss:$8 sps:$4 sm:$0xff]  }
 0x39a   :  { %v1017_v39 = vpop.f32.mrf.mxu1  ;;  %v3810_v42 = vld [vmem:[#allocation5 + $0x510] ss:$8 sps:$4 sm:$0xff]  }
 0x39b   :  { %v1018_v41 = vadd.f32 %v1017_v39, %v814_v37  ;;  %v1023_v46 = vmax.f32 %v1016_v40, 0.0  ;;  %v3806_v37 = vld [vmem:[#allocation5 + $0x534] ss:$8 sps:$4 sm:$0xff]   ;;  %v3809_v39 = vld [vmem:[#allocation5 + $0x524] ss:$8 sps:$4 sm:$0xff]  }
 0x39c   :  { %v1019_v43 = vpop.f32.mrf.mxu1  ;;  %v3807_v40 = vld [vmem:[#allocation5 + $0x520] ss:$8 sps:$4 sm:$0xff]  }
 0x39d   :  { %v1020_v44 = vadd.f32 %v1019_v43, %v818_v36  ;;  %v1024_v45 = vmax.f32 %v1018_v41, 0.0  ;;  %v3801_v36 = vld [vmem:[#allocation5 + $0x540] ss:$8 sps:$4 sm:$0xff]   ;;  %v3812_v41 = vld [vmem:[#allocation5 + $0x514] ss:$8 sps:$4 sm:$0xff]  }
 0x39e   :  { %1880 = vmatpush1.bf16.msra.mxu1 %v3801_v36  ;;  %v3815_v43 = vld [vmem:[#allocation5 + $0x504] ss:$8 sps:$4 sm:$0xff]   ;;  %v3861_v36 = vld [vmem:[#allocation5 + $0x600] ss:$8 sps:$4 sm:$0xff]  }
 0x39f   :  { %v1025_v47 = vmax.f32 %v1020_v44, 0.0  ;;  %v1026_v51 = vpack.c.bf16 %v1024_v45, %v1022_v48  ;;  %1881 = vmatprep.subr.bf16.mxu1 %v3806_v37  ;;  %v3813_v44 = vld [vmem:[#allocation5 + $0x500] ss:$8 sps:$4 sm:$0xff]   ;;  %v3818_v45 = vld [vmem:[#allocation5 + $0x5f4] ss:$8 sps:$4 sm:$0xff]  }
 0x3a0   :  { %v3819_v48 = vld [vmem:[#allocation5 + $0x5e0] ss:$8 sps:$4 sm:$0xff]   ;;  %v3866_v37 = vld [vmem:[#allocation5 + $0x6f4] ss:$8 sps:$4 sm:$0xff]  }
 0x3a1   :  { %v1027_v49 = vpack.c.bf16 %v1025_v47, %v1023_v46  ;;  %v3816_v46 = vld [vmem:[#allocation5 + $0x5f0] ss:$8 sps:$4 sm:$0xff]   ;;  %v3821_v47 = vld [vmem:[#allocation5 + $0x5e4] ss:$8 sps:$4 sm:$0xff]  }
 0x3a2   :  { %1882 = vmatpush1.bf16.msra.mxu1 %v3804_v38  ;;  %v3864_v38 = vld [vmem:[#allocation5 + $0x6f0] ss:$8 sps:$4 sm:$0xff]  }
 0x3a3   :  { %1261 = vmatprep.mubr.bf16.mxu0 %v1027_v49  ;;  %1883 = vmatprep.subr.bf16.mxu1 %v3809_v39  ;;  %v3824_v49 = vld [vmem:[#allocation5 + $0x5d4] ss:$8 sps:$4 sm:$0xff]   ;;  %v3869_v39 = vld [vmem:[#allocation5 + $0x6e4] ss:$8 sps:$4 sm:$0xff]  }
 0x3a4   :  { %1262 = vmatmul.mubr.bf16.vlgmr.msra.gmra.mxu0 %v1026_v51  ;;  %v3825_v51 = vld [vmem:[#allocation5 + $0x5c0] ss:$8 sps:$4 sm:$0xff]  }
 0x3a5   :  { %1612 = vmatpush1.bf16.msra.mxu0 %v3720_v50  ;;  %v3822_v50 = vld [vmem:[#allocation5 + $0x5d0] ss:$8 sps:$4 sm:$0xff]  }
 0x3a6   :  { %1613 = vmatprep.subr.bf16.mxu0 %v3725_v52  ;;  %1884 = vmatpush1.bf16.msra.mxu1 %v3807_v40  ;;  %v3827_v52 = vld [vmem:[#allocation5 + $0x5c4] ss:$8 sps:$4 sm:$0xff]   ;;  %v3867_v40 = vld [vmem:[#allocation5 + $0x6e0] ss:$8 sps:$4 sm:$0xff]  }
 0x3a7   :  { %1885 = vmatprep.subr.bf16.mxu1 %v3812_v41  ;;  %v3872_v41 = vld [vmem:[#allocation5 + $0x6d4] ss:$8 sps:$4 sm:$0xff]  }
 0x3a9   :  { %1614 = vmatpush1.bf16.msra.mxu0 %v3723_v53  ;;  %v1063_v53 = vsub.s32 3, %v4243_v14 }
 0x3aa   :  { %1615 = vmatprep.subr.bf16.mxu0 %v3728_v54  ;;  %1886 = vmatpush1.bf16.msra.mxu1 %v3810_v42  ;;  %v3870_v42 = vld [vmem:[#allocation5 + $0x6d0] ss:$8 sps:$4 sm:$0xff]  }
 0x3ab   :  { %1887 = vmatprep.subr.bf16.mxu1 %v3815_v43  ;;  %v3875_v43 = vld [vmem:[#allocation5 + $0x6c4] ss:$8 sps:$4 sm:$0xff]  }
 0x3ad   :  { %1616 = vmatpush1.bf16.msra.mxu0 %v3726_v55  ;;  %v1068_v55 = vrot.slane %v4256_v3, %v1063_v53 }
 0x3ae   :  { %1617 = vmatprep.subr.bf16.mxu0 %v3731_v56  ;;  %1888 = vmatpush1.bf16.msra.mxu1 %v3813_v44  ;;  %v1064_v56 = vrot.slane %v4258_v4, %v1063_v53  ;;  %v3873_v44 = vld [vmem:[#allocation5 + $0x6c0] ss:$8 sps:$4 sm:$0xff]  }
 0x3af   :  { %1889 = vmatprep.subr.bf16.mxu1 %v3818_v45  ;;  %v3878_v45 = vld [vmem:[#allocation5 + $0x6b4] ss:$8 sps:$4 sm:$0xff]  }
 0x3b1   :  { %1618 = vmatpush1.bf16.msra.mxu0 %v3729_v57 }
 0x3b2   :  { %1619 = vmatprep.subr.bf16.mxu0 %v3734_v58  ;;  %1890 = vmatpush2.bf16.msra.mxu1 %v3816_v46  ;;  %v3876_v46 = vld [vmem:[#allocation5 + $0x6b0] ss:$8 sps:$4 sm:$0xff]  }
 0x3b3   :  { %1891 = vmatprep.subr.bf16.mxu1 %v3821_v47 }
 0x3b5   :  { %1620 = vmatpush1.bf16.msra.mxu0 %v3732_v59 }
 0x3b6   :  { %1621 = vmatprep.subr.bf16.mxu0 %v3737_v60  ;;  %1892 = vmatpush2.bf16.msra.mxu1 %v3819_v48  ;;  %v1442_v47 = vpop.f32.mrf.mxu1 }
 0x3b7   :  { %1893 = vmatprep.subr.bf16.mxu1 %v3824_v49 }
 0x3b8   :  { %v1444_v48 = vpop.f32.mrf.mxu1 }
 0x3b9   :  { %1622 = vmatpush1.bf16.msra.mxu0 %v3735_v61 }
 0x3ba   :  { %1623 = vmatprep.subr.bf16.mxu0 %v3740_v62  ;;  %1894 = vmatpush2.bf16.msra.mxu1 %v3822_v50  ;;  %v1656_v50 = vsub.s32 4, %v4243_v14 }
 0x3bb   :  { %1895 = vmatprep.subr.bf16.mxu1 %v3827_v52 }
 0x3bd   :  { %1624 = vmatpush1.bf16.msra.mxu0 %v3738_v63 }
 0x3be   :  { %1625 = vmatprep.subr.bf16.mxu0 %v3746_v1  ;;  %1896 = vmatpush2.bf16.msra.mxu1 %v3825_v51  ;;  %v1446_v51 = vpop.f32.mrf.mxu1 }
 0x3c1   :  { %1626 = vmatpush1.bf16.msra.mxu0 %v3744_v2 }
 0x3c2   :  { %1627 = vmatprep.subr.bf16.mxu0 %v3752_v5 }
 0x3c5   :  { %1628 = vmatpush2.bf16.msra.mxu0 %v3750_v6 }
 0x3c6   :  { %1629 = vmatprep.subr.bf16.mxu0 %v3758_v7 }
 0x3c9   :  { %1630 = vmatpush2.bf16.msra.mxu0 %v3756_v8 }
 0x3ca   :  { %1631 = vmatprep.subr.bf16.mxu0 %v3764_v9  ;;  %v3830_v9 = vld [vmem:[#allocation5 + $0x5b4] ss:$8 sps:$4 sm:$0xff]  }
 0x3cb   :  { %1897 = vmatprep.subr.bf16.mxu1 %v3830_v9 }
 0x3cd   :  { %1632 = vmatpush2.bf16.msra.mxu0 %v3762_v10  ;;  %v3828_v10 = vld [vmem:[#allocation5 + $0x5b0] ss:$8 sps:$4 sm:$0xff]  }
 0x3ce   :  { %1633 = vmatprep.subr.bf16.mxu0 %v3770_v11  ;;  %1898 = vmatpush2.bf16.msra.mxu1 %v3828_v10  ;;  %v3833_v11 = vld [vmem:[#allocation5 + $0x5a4] ss:$8 sps:$4 sm:$0xff]  }
 0x3cf   :  { %1899 = vmatprep.subr.bf16.mxu1 %v3833_v11  ;;  %v3881_v11 = vld [vmem:[#allocation5 + $0x6a4] ss:$8 sps:$4 sm:$0xff]  }
 0x3d1   :  { %1634 = vmatpush2.bf16.msra.mxu0 %v3768_v12  ;;  %v3831_v12 = vld [vmem:[#allocation5 + $0x5a0] ss:$8 sps:$4 sm:$0xff]  }
 0x3d2   :  { %1635 = vmatprep.subr.bf16.mxu0 %v3776_v17  ;;  %1900 = vmatpush2.bf16.msra.mxu1 %v3831_v12  ;;  %v3836_v17 = vld [vmem:[#allocation5 + $0x594] ss:$8 sps:$4 sm:$0xff]   ;;  %v3879_v12 = vld [vmem:[#allocation5 + $0x6a0] ss:$8 sps:$4 sm:$0xff]  }
 0x3d3   :  { %1901 = vmatprep.subr.bf16.mxu1 %v3836_v17  ;;  %v3884_v17 = vld [vmem:[#allocation5 + $0x694] ss:$8 sps:$4 sm:$0xff]  }
 0x3d5   :  { %1636 = vmatpush2.bf16.msra.mxu0 %v3774_v18  ;;  %v3834_v18 = vld [vmem:[#allocation5 + $0x590] ss:$8 sps:$4 sm:$0xff]  }
 0x3d6   :  { %1637 = vmatprep.subr.bf16.mxu0 %v3782_v21  ;;  %1902 = vmatpush2.bf16.msra.mxu1 %v3834_v18  ;;  %v3840_v21 = vld [vmem:[#allocation5 + $0x670] ss:$8 sps:$4 sm:$0xff]  }
 0x3d7   :  { %1903 = vmatprep.subr.bf16.mxu1 %v3839_v19  ;;  %v3882_v18 = vld [vmem:[#allocation5 + $0x690] ss:$8 sps:$4 sm:$0xff]   ;;  %v3887_v19 = vld [vmem:[#allocation5 + $0x684] ss:$8 sps:$4 sm:$0xff]  }
 0x3d9   :  { %1638 = vmatpush2.bf16.msra.mxu0 %v3780_v22  ;;  %v3842_v22 = vld [vmem:[#allocation5 + $0x674] ss:$8 sps:$4 sm:$0xff]  }
 0x3da   :  { %1639 = vmatprep.subr.bf16.mxu0 %v3788_v25  ;;  %1904 = vmatpush2.bf16.msra.mxu1 %v3837_v20  ;;  %v3848_v25 = vld [vmem:[#allocation5 + $0x654] ss:$8 sps:$4 sm:$0xff]   ;;  %v3885_v20 = vld [vmem:[#allocation5 + $0x680] ss:$8 sps:$4 sm:$0xff]  }
 0x3dd   :  { %1640 = vmatpush2.bf16.msra.mxu0 %v3786_v0  ;;  %v3846_v0 = vld [vmem:[#allocation5 + $0x650] ss:$8 sps:$4 sm:$0xff]  }
 0x3de   :  { %1641 = vmatprep.subr.bf16.mxu0 %v3791_v27  ;;  %v3851_v27 = vld [vmem:[#allocation5 + $0x644] ss:$8 sps:$4 sm:$0xff]  }
 0x3e1   :  { %1642 = vmatpush2.bf16.msra.mxu0 %v3789_v28  ;;  %v3849_v28 = vld [vmem:[#allocation5 + $0x640] ss:$8 sps:$4 sm:$0xff]  }
 0x3e2   :  { %2123 = vmatprep.subr.bf16.mxu0 %v3842_v22  ;;  %v3890_v22 = vld [vmem:[#allocation5 + $0x774] ss:$8 sps:$4 sm:$0xff]  }
 0x3e3   :  { %2373 = vmatprep.subr.bf16.mxu1 %v3890_v22 }
 0x464   :  { %v1263_v54 = vpop.f32.mrf.mxu0 }
 0x465   :  { %v1264_v61 = vadd.f32 %v1263_v54, %v1064_v56  ;;  %v1661_v54 = vrot.slane %v4256_v3, %v1656_v50 }
 0x466   :  { %v1265_v57 = vpop.f32.mrf.mxu0 }
 0x467   :  { %v1266_v59 = vadd.f32 %v1265_v57, %v1068_v55  ;;  %v1272_v6 = vmax.f32 %v1264_v61, 0.0 }
 0x468   :  { %v1267_v58 = vpop.f32.mrf.mxu0 }
 0x469   :  { %v1268_v60 = vadd.f32 %v1267_v58, %v1064_v56  ;;  %v1273_v2 = vmax.f32 %v1266_v59, 0.0  ;;  %v1657_v56 = vrot.slane %v4258_v4, %v1656_v50  ;;  %v1448_v59 = vpop.f32.mrf.mxu1 }
 0x46a   :  { %v1269_v62 = vpop.f32.mrf.mxu0 }
 0x46b   :  { %v1270_v63 = vadd.f32 %v1269_v62, %v1068_v55  ;;  %v1274_v1 = vmax.f32 %v1268_v60, 0.0 }
 0x46d   :  { %v1275_v5 = vmax.f32 %v1270_v63, 0.0  ;;  %v1276_v8 = vpack.c.bf16 %v1274_v1, %v1272_v6 }
 0x46f   :  { %v1277_v7 = vpack.c.bf16 %v1275_v5, %v1273_v2 }
 0x471   :  { %1643 = vmatprep.mubr.bf16.mxu0 %v1277_v7 }
 0x472   :  { %1644 = vmatmul.mubr.bf16.vlgmr.msra.gmra.mxu0 %v1276_v8 }
 0x473   :  { %2124 = vmatpush1.bf16.msra.mxu0 %v3840_v21  ;;  %v3888_v21 = vld [vmem:[#allocation5 + $0x770] ss:$8 sps:$4 sm:$0xff]  }
 0x474   :  { %2125 = vmatprep.subr.bf16.mxu0 %v3845_v23  ;;  %v3893_v23 = vld [vmem:[#allocation5 + $0x764] ss:$8 sps:$4 sm:$0xff]  }
 0x477   :  { %2126 = vmatpush1.bf16.msra.mxu0 %v3843_v24  ;;  %v3891_v24 = vld [vmem:[#allocation5 + $0x760] ss:$8 sps:$4 sm:$0xff]  }
 0x478   :  { %2127 = vmatprep.subr.bf16.mxu0 %v3848_v25  ;;  %v3896_v25 = vld [vmem:[#allocation5 + $0x754] ss:$8 sps:$4 sm:$0xff]  }
 0x47b   :  { %2128 = vmatpush1.bf16.msra.mxu0 %v3846_v0  ;;  %v3894_v0 = vld [vmem:[#allocation5 + $0x750] ss:$8 sps:$4 sm:$0xff]  }
 0x47c   :  { %2129 = vmatprep.subr.bf16.mxu0 %v3851_v27  ;;  %v3899_v27 = vld [vmem:[#allocation5 + $0x744] ss:$8 sps:$4 sm:$0xff]  }
 0x47f   :  { %2130 = vmatpush1.bf16.msra.mxu0 %v3849_v28  ;;  %v3897_v28 = vld [vmem:[#allocation5 + $0x740] ss:$8 sps:$4 sm:$0xff]  }
 0x480   :  { %2131 = vmatprep.subr.bf16.mxu0 %v3854_v29  ;;  %v3902_v29 = vld [vmem:[#allocation5 + $0x734] ss:$8 sps:$4 sm:$0xff]  }
 0x483   :  { %2132 = vmatpush1.bf16.msra.mxu0 %v3852_v30  ;;  %v3900_v30 = vld [vmem:[#allocation5 + $0x730] ss:$8 sps:$4 sm:$0xff]  }
 0x484   :  { %2133 = vmatprep.subr.bf16.mxu0 %v3857_v31  ;;  %v3905_v31 = vld [vmem:[#allocation5 + $0x724] ss:$8 sps:$4 sm:$0xff]  }
 0x487   :  { %2134 = vmatpush1.bf16.msra.mxu0 %v3855_v32  ;;  %v3903_v32 = vld [vmem:[#allocation5 + $0x720] ss:$8 sps:$4 sm:$0xff]  }
 0x488   :  { %2135 = vmatprep.subr.bf16.mxu0 %v3860_v33  ;;  %v3908_v33 = vld [vmem:[#allocation5 + $0x714] ss:$8 sps:$4 sm:$0xff]  }
 0x48b   :  { %2136 = vmatpush1.bf16.msra.mxu0 %v3858_v34  ;;  %v3906_v34 = vld [vmem:[#allocation5 + $0x710] ss:$8 sps:$4 sm:$0xff]  }
 0x48c   :  { %2137 = vmatprep.subr.bf16.mxu0 %v3863_v35  ;;  %v3911_v35 = vld [vmem:[#allocation5 + $0x704] ss:$8 sps:$4 sm:$0xff]  }
 0x48f   :  { %2138 = vmatpush1.bf16.msra.mxu0 %v3861_v36  ;;  %v3909_v36 = vld [vmem:[#allocation5 + $0x700] ss:$8 sps:$4 sm:$0xff]  }
 0x490   :  { %2139 = vmatprep.subr.bf16.mxu0 %v3866_v37  ;;  %v3914_v37 = vld [vmem:[#allocation5 + $0x7f4] ss:$8 sps:$4 sm:$0xff]  }
 0x493   :  { %2140 = vmatpush2.bf16.msra.mxu0 %v3864_v38  ;;  %v3912_v38 = vld [vmem:[#allocation5 + $0x7f0] ss:$8 sps:$4 sm:$0xff]  }
 0x494   :  { %2141 = vmatprep.subr.bf16.mxu0 %v3869_v39  ;;  %v3917_v39 = vld [vmem:[#allocation5 + $0x7e4] ss:$8 sps:$4 sm:$0xff]  }
 0x497   :  { %2142 = vmatpush2.bf16.msra.mxu0 %v3867_v40  ;;  %v3915_v40 = vld [vmem:[#allocation5 + $0x7e0] ss:$8 sps:$4 sm:$0xff]  }
 0x498   :  { %2143 = vmatprep.subr.bf16.mxu0 %v3872_v41  ;;  %v3920_v41 = vld [vmem:[#allocation5 + $0x7d4] ss:$8 sps:$4 sm:$0xff]  }
 0x49b   :  { %2144 = vmatpush2.bf16.msra.mxu0 %v3870_v42  ;;  %v3918_v42 = vld [vmem:[#allocation5 + $0x7d0] ss:$8 sps:$4 sm:$0xff]  }
 0x49c   :  { %2145 = vmatprep.subr.bf16.mxu0 %v3875_v43  ;;  %v3923_v43 = vld [vmem:[#allocation5 + $0x7c4] ss:$8 sps:$4 sm:$0xff]  }
 0x49f   :  { %2146 = vmatpush2.bf16.msra.mxu0 %v3873_v44  ;;  %v3921_v44 = vld [vmem:[#allocation5 + $0x7c0] ss:$8 sps:$4 sm:$0xff]  }
 0x4a0   :  { %2147 = vmatprep.subr.bf16.mxu0 %v3878_v45  ;;  %v3926_v45 = vld [vmem:[#allocation5 + $0x7b4] ss:$8 sps:$4 sm:$0xff]  }
 0x4a3   :  { %2148 = vmatpush2.bf16.msra.mxu0 %v3876_v46  ;;  %v3924_v46 = vld [vmem:[#allocation5 + $0x7b0] ss:$8 sps:$4 sm:$0xff]  }
 0x4a4   :  { %2149 = vmatprep.subr.bf16.mxu0 %v3881_v11  ;;  %v3942_v11 = vld [vmem:[#allocation11 + $0x28] sm:$0xff]  }
 0x4a7   :  { %2150 = vmatpush2.bf16.msra.mxu0 %v3879_v12  ;;  %v3945_v12 = vld [vmem:[#allocation11 + $0x20] sm:$0xff]  }
 0x4a8   :  { %2151 = vmatprep.subr.bf16.mxu0 %v3884_v17  ;;  %v3948_v17 = vld [vmem:[#allocation11 + $0x18] sm:$0xff]  }
 0x4ab   :  { %2152 = vmatpush2.bf16.msra.mxu0 %v3882_v18  ;;  %v3951_v18 = vld [vmem:[#allocation11 + $0x10] sm:$0xff]  }
 0x4ac   :  { %2153 = vmatprep.subr.bf16.mxu0 %v3887_v19  ;;  %v1957_v19 = vsub.s32 6, %v4243_v14 }
 0x4af   :  { %2154 = vmatpush2.bf16.msra.mxu0 %v3885_v20 }
 0x532   :  { %v1645_v49 = vpop.f32.mrf.mxu0 }
 0x533   :  { %v1646_v55 = vadd.f32 %v1645_v49, %v1442_v47  ;;  %v1707_v47 = vsub.s32 5, %v4243_v14 }
 0x534   :  { %v1647_v52 = vpop.f32.mrf.mxu0 }
 0x535   :  { %v1648_v53 = vadd.f32 %v1647_v52, %v1444_v48  ;;  %v1662_v1 = vadd.f32 %v1657_v56, %v1646_v55  ;;  %v1712_v49 = vrot.slane %v4256_v3, %v1707_v47  ;;  %v1708_v50 = vrot.slane %v4258_v4, %v1707_v47  ;;  %v3932_v3 = vld [vmem:[#allocation5 + $0x794] ss:$8 sps:$4 sm:$0xff]   ;;  %v3930_v4 = vld [vmem:[#allocation5 + $0x790] ss:$8 sps:$4 sm:$0xff]   ;;  %v3952_v47 = vld [vmem:[#allocation10 + $0x50] sm:$0xff]  }
 0x536   :  { %v1649_v57 = vpop.f32.mrf.mxu0 }
 0x537   :  { %v1650_v58 = vadd.f32 %v1649_v57, %v1446_v51  ;;  %v1663_v61 = vadd.f32 %v1661_v54, %v1648_v53  ;;  %v1666_v8 = vmax.f32 %v1662_v1, 0.0  ;;  %v3929_v1 = vld [vmem:[#allocation5 + $0x7a4] ss:$8 sps:$4 sm:$0xff]  }
 0x538   :  { %v1651_v60 = vpop.f32.mrf.mxu0 }
 0x539   :  { %v1664_v62 = vadd.f32 %v1657_v56, %v1650_v58  ;;  %v1652_v63 = vadd.f32 %v1651_v60, %v1448_v59  ;;  %v1667_v6 = vmax.f32 %v1663_v61, 0.0 }
 0x53b   :  { %v1665_v2 = vadd.f32 %v1661_v54, %v1652_v63  ;;  %v1668_v5 = vmax.f32 %v1664_v62, 0.0 }
 0x53d   :  { %v1669_v7 = vmax.f32 %v1665_v2, 0.0  ;;  %v1670_v10 = vpack.c.bf16 %v1668_v5, %v1666_v8  ;;  %v3927_v2 = vld [vmem:[#allocation5 + $0x7a0] ss:$8 sps:$4 sm:$0xff]   ;;  %v3935_v5 = vld [vmem:[#allocation5 + $0x784] ss:$8 sps:$4 sm:$0xff]  }
 0x53e   :  { %v3937_v8 = vld [vmem:[#allocation10 + $0x78] sm:$0xff]  }
 0x53f   :  { %v1671_v9 = vpack.c.bf16 %v1669_v7, %v1667_v6  ;;  %v3933_v6 = vld [vmem:[#allocation5 + $0x780] ss:$8 sps:$4 sm:$0xff]  }
 0x540   :  { %v3936_v7 = vld [vmem:[#allocation11 + $0x38] sm:$0xff]  }
 0x541   :  { %1905 = vmatprep.mubr.bf16.mxu1 %v1671_v9  ;;  %v4160_v9 = vmov 0.0  }
 0x542   :  { %1906 = vmatmul.mubr.bf16.vlgmr.msra.gmra.mxu1 %v1670_v10  ;;  %3449 = vmatprep.subr.bf16.mxu0 %v4160_v9  ;;  %v3939_v10 = vld [vmem:[#allocation11 + $0x30] sm:$0xff]  }
 0x543   :  { %2374 = vmatpush1.bf16.msra.mxu1 %v3888_v21  ;;  %v4292_v21 = vld [vmem:[#allocation7 + $0x8] sm:$0xff] }
 0x544   :  { %2375 = vmatprep.subr.bf16.mxu1 %v3893_v23  ;;  %v1962_v22 = vrot.slane %v4292_v21, %v1957_v19  ;;  %v4295_v23 = vld [vmem:[#allocation7] sm:$0xff] }
 0x547   :  { %2376 = vmatpush1.bf16.msra.mxu1 %v3891_v24  ;;  %v1958_v24 = vrot.slane %v4295_v23, %v1957_v19  ;;  %v3967_v19 = vld [vmem:[#allocation10 + $0xa0] sm:$0xff]  }
 0x548   :  { %2377 = vmatprep.subr.bf16.mxu1 %v3896_v25 }
 0x54b   :  { %2378 = vmatpush1.bf16.msra.mxu1 %v3894_v0 }
 0x54c   :  { %2379 = vmatprep.subr.bf16.mxu1 %v3899_v27 }
 0x54f   :  { %2380 = vmatpush1.bf16.msra.mxu1 %v3897_v28 }
 0x550   :  { %2381 = vmatprep.subr.bf16.mxu1 %v3902_v29 }
 0x553   :  { %2382 = vmatpush1.bf16.msra.mxu1 %v3900_v30 }
 0x554   :  { %2383 = vmatprep.subr.bf16.mxu1 %v3905_v31 }
 0x557   :  { %2384 = vmatpush1.bf16.msra.mxu1 %v3903_v32 }
 0x558   :  { %2385 = vmatprep.subr.bf16.mxu1 %v3908_v33 }
 0x55b   :  { %2386 = vmatpush1.bf16.msra.mxu1 %v3906_v34 }
 0x55c   :  { %2387 = vmatprep.subr.bf16.mxu1 %v3911_v35 }
 0x55f   :  { %2388 = vmatpush1.bf16.msra.mxu1 %v3909_v36 }
 0x560   :  { %2389 = vmatprep.subr.bf16.mxu1 %v3914_v37  ;;  %v3938_v37 = vld [vmem:[#allocation10 + $0x38] sm:$0xff]  }
 0x563   :  { %2390 = vmatpush2.bf16.msra.mxu1 %v3912_v38 }
 0x564   :  { %2391 = vmatprep.subr.bf16.mxu1 %v3917_v39  ;;  %v3940_v39 = vld [vmem:[#allocation10 + $0x70] sm:$0xff]  }
 0x567   :  { %2392 = vmatpush2.bf16.msra.mxu1 %v3915_v40  ;;  %v3941_v40 = vld [vmem:[#allocation10 + $0x30] sm:$0xff]  }
 0x568   :  { %2393 = vmatprep.subr.bf16.mxu1 %v3920_v41  ;;  %v3943_v41 = vld [vmem:[#allocation10 + $0x68] sm:$0xff]  }
 0x56b   :  { %2394 = vmatpush2.bf16.msra.mxu1 %v3918_v42  ;;  %v3944_v42 = vld [vmem:[#allocation10 + $0x28] sm:$0xff]  }
 0x56c   :  { %2395 = vmatprep.subr.bf16.mxu1 %v3923_v43  ;;  %v3946_v43 = vld [vmem:[#allocation10 + $0x60] sm:$0xff]  }
 0x56f   :  { %2396 = vmatpush2.bf16.msra.mxu1 %v3921_v44  ;;  %v3947_v44 = vld [vmem:[#allocation10 + $0x20] sm:$0xff]  }
 0x570   :  { %2397 = vmatprep.subr.bf16.mxu1 %v3926_v45  ;;  %v3949_v45 = vld [vmem:[#allocation10 + $0x58] sm:$0xff]  }
 0x573   :  { %2398 = vmatpush2.bf16.msra.mxu1 %v3924_v46  ;;  %v3950_v46 = vld [vmem:[#allocation10 + $0x18] sm:$0xff]  }
 0x574   :  { %2399 = vmatprep.subr.bf16.mxu1 %v3929_v1 }
 0x577   :  { %2400 = vmatpush2.bf16.msra.mxu1 %v3927_v2 }
 0x578   :  { %2401 = vmatprep.subr.bf16.mxu1 %v3932_v3 }
 0x57b   :  { %2402 = vmatpush2.bf16.msra.mxu1 %v3930_v4 }
 0x57c   :  { %2403 = vmatprep.subr.bf16.mxu1 %v3935_v5 }
 0x57f   :  { %2404 = vmatpush2.bf16.msra.mxu1 %v3933_v6 }
 0x580   :  { %3396 = vmatprep.subr.bf16.mxu1 %v3937_v8  ;;  %v3961_v8 = vld [vmem:[#allocation10 + $0xb8] sm:$0xff]  }
 0x602   :  { %v1907_v48 = vpop.f32.mrf.mxu1 }
 0x603   :  { %v1908_v55 = vadd.f32 %v1907_v48, %v1708_v50  ;;  %v3953_v48 = vld [vmem:[#allocation10 + $0x10] sm:$0xff]  }
 0x604   :  { %v1909_v51 = vpop.f32.mrf.mxu1 }
 0x605   :  { %v1910_v53 = vadd.f32 %v1909_v51, %v1712_v49  ;;  %v1916_v61 = vmax.f32 %v1908_v55, 0.0  ;;  %v3956_v51 = vld [vmem:[#allocation10 + $0x8] sm:$0xff]   ;;  %v3960_v55 = vld [vmem:[#allocation10 + $0xf8] sm:$0xff]  }
 0x606   :  { %v1911_v52 = vpop.f32.mrf.mxu1 }
 0x607   :  { %v1912_v54 = vadd.f32 %v1911_v52, %v1708_v50  ;;  %v1917_v59 = vmax.f32 %v1910_v53, 0.0  ;;  %v3955_v50 = vld [vmem:[#allocation10 + $0x48] sm:$0xff]   ;;  %v3957_v52 = vld [vmem:[#allocation11] sm:$0xff]  }
 0x608   :  { %v1913_v56 = vpop.f32.mrf.mxu1  ;;  %v3958_v53 = vld [vmem:[#allocation10 + $0x40] sm:$0xff]  }
 0x609   :  { %v1914_v57 = vadd.f32 %v1913_v56, %v1712_v49  ;;  %v1918_v58 = vmax.f32 %v1912_v54, 0.0  ;;  %v3954_v49 = vld [vmem:[#allocation11 + $0x8] sm:$0xff]   ;;  %v3959_v54 = vld [vmem:[#allocation10] sm:$0xff]   ;;  %v3976_v56 = vld [vmem:[#allocation11 + $0x78] sm:$0xff]  }
 0x60b   :  { %v1919_v60 = vmax.f32 %v1914_v57, 0.0  ;;  %v1920_v63 = vpack.c.bf16 %v1918_v58, %v1916_v61  ;;  %v3977_v57 = vld [vmem:[#allocation11 + $0x70] sm:$0xff]   ;;  %v3978_v58 = vld [vmem:[#allocation11 + $0x68] sm:$0xff]  }
 0x60d   :  { %v1921_v62 = vpack.c.bf16 %v1919_v60, %v1917_v59  ;;  %v3979_v59 = vld [vmem:[#allocation11 + $0x60] sm:$0xff]  }
 0x60f   :  { %2155 = vmatprep.mubr.bf16.mxu0 %v1921_v62 }
 0x610   :  { %2156 = vmatmul.mubr.bf16.vlgmr.msra.gmra.mxu0 %v1920_v63 }
 0x611   :  { %3450 = vmatpush3.bf16.msra.mxu0 %v3936_v7  ;;  %3465 = vmatprep.mubr.msk.bf16.mxu0 %vm4161_vm0, %v4160_v9 }
 0x612   :  { %3451 = vmatprep.subr.bf16.mxu0 %v4160_v9 }
 0x615   :  { %3452 = vmatpush3.bf16.msra.mxu0 %v3939_v10 }
 0x616   :  { %3453 = vmatprep.subr.bf16.mxu0 %v4160_v9 }
 0x619   :  { %3454 = vmatpush3.bf16.msra.mxu0 %v3942_v11  ;;  %v3962_v11 = vld [vmem:[#allocation10 + $0xf0] sm:$0xff]  }
 0x61a   :  { %3455 = vmatprep.subr.bf16.mxu0 %v4160_v9 }
 0x61d   :  { %3456 = vmatpush3.bf16.msra.mxu0 %v3945_v12  ;;  %v3964_v12 = vld [vmem:[#allocation10 + $0xe8] sm:$0xff]  }
 0x61e   :  { %3457 = vmatprep.subr.bf16.mxu0 %v4160_v9 }
 0x621   :  { %3458 = vmatpush3.bf16.msra.mxu0 %v3948_v17  ;;  %v3965_v17 = vld [vmem:[#allocation10 + $0xa8] sm:$0xff]  }
 0x622   :  { %3459 = vmatprep.subr.bf16.mxu0 %v4160_v9 }
 0x625   :  { %3460 = vmatpush3.bf16.msra.mxu0 %v3951_v18  ;;  %v3966_v18 = vld [vmem:[#allocation10 + $0xe0] sm:$0xff]  }
 0x626   :  { %3461 = vmatprep.subr.bf16.mxu0 %v4160_v9 }
 0x629   :  { %3462 = vmatpush3.bf16.msra.mxu0 %v3954_v49 }
 0x62a   :  { %3463 = vmatprep.subr.bf16.mxu0 %v4160_v9 }
 0x62d   :  { %3464 = vmatpush3.bf16.msra.mxu0 %v3957_v52  ;;  %v4326_v52 = vand.u32 127, %v134_v13 }
 0x62e   :  { %3469 = vmatprep.subr.bf16.mxu0 %v4160_v9 }
 0x62f   :  { %vm2985_vm1 = vcmp.ge.s32.totalorder %v4326_v52, 1  ;;  %vm2986_vm2 = vcmp.le.s32.totalorder %v4326_v52, 3  ;;  %vm3019_vm4 = vcmp.ge.s32.totalorder %v4326_v52, 4  ;;  %vm3020_vm5 = vcmp.le.s32.totalorder %v4326_v52, 6 }
 0x630   :  { %3466 = vmatmul.mubr.bf16.vlgmr.msra.gmra.mxu0 %v4272_v26  ;;  %v2207_v26 = vsub.s32 7, %v4243_v14  ;;  %v3963_v14 = vld [vmem:[#allocation10 + $0xb0] sm:$0xff]   ;;  %vm4331_vm3 = vmand %vm2985_vm1, %vm2986_vm2  ;;  %vm3012_vm7 = vcmp.eq.s32.totalorder %v4326_v52, 0 }
 0x631   :  { %3485 = vmatprep.mubr.msk.bf16.mxu0 %vm4161_vm0, %v4160_v9  ;;  %3470 = vmatpush3.bf16.msra.mxu0 %v3976_v56  ;;  %vm4341_vm6 = vmand %vm3019_vm4, %vm3020_vm5 }
 0x632   :  { %3471 = vmatprep.subr.bf16.mxu0 %v4160_v9  ;;  %v2212_v62 = vrot.slane %v4292_v21, %v2207_v26  ;;  %v2208_v63 = vrot.slane %v4295_v23, %v2207_v26  ;;  %v3969_v21 = vld [vmem:[#allocation10 + $0x98] sm:$0xff]   ;;  %v3971_v23 = vld [vmem:[#allocation10 + $0x90] sm:$0xff]  }
 0x635   :  { %3472 = vmatpush3.bf16.msra.mxu0 %v3977_v57 }
 0x636   :  { %3473 = vmatprep.subr.bf16.mxu0 %v4160_v9 }
 0x639   :  { %3474 = vmatpush3.bf16.msra.mxu0 %v3978_v58 }
 0x63a   :  { %3475 = vmatprep.subr.bf16.mxu0 %v4160_v9 }
 0x63d   :  { %3476 = vmatpush3.bf16.msra.mxu0 %v3979_v59 }
 0x63e   :  { %3477 = vmatprep.subr.bf16.mxu0 %v4160_v9 }
 0x6d0   :  { %v2157_v20 = vpop.f32.mrf.mxu0 }
 0x6d1   :  { %v2158_v29 = vadd.f32 %v2157_v20, %v1958_v24  ;;  %v3968_v20 = vld [vmem:[#allocation10 + $0xd8] sm:$0xff]  }
 0x6d2   :  { %v2159_v25 = vpop.f32.mrf.mxu0 }
 0x6d3   :  { %v2160_v27 = vadd.f32 %v2159_v25, %v1962_v22  ;;  %v2166_v35 = vmax.f32 %v2158_v29, 0.0  ;;  %v3973_v25 = vld [vmem:[#allocation10 + $0x88] sm:$0xff]  }
 0x6d4   :  { %v2161_v0 = vpop.f32.mrf.mxu0 }
 0x6d5   :  { %v2162_v28 = vadd.f32 %v2161_v0, %v1958_v24  ;;  %v2167_v33 = vmax.f32 %v2160_v27, 0.0  ;;  %v3972_v24 = vld [vmem:[#allocation10 + $0xc8] sm:$0xff]   ;;  %v3974_v0 = vld [vmem:[#allocation10 + $0xc0] sm:$0xff]  }
 0x6d6   :  { %v2163_v30 = vpop.f32.mrf.mxu0  ;;  %v3975_v27 = vld [vmem:[#allocation10 + $0x80] sm:$0xff]  }
 0x6d7   :  { %v2164_v31 = vadd.f32 %v2163_v30, %v1962_v22  ;;  %v2168_v32 = vmax.f32 %v2162_v28, 0.0  ;;  %v3970_v22 = vld [vmem:[#allocation10 + $0xd0] sm:$0xff]   ;;  %v3980_v30 = vld [vmem:[#allocation11 + $0x58] sm:$0xff]  }
 0x6d8   :  { %3478 = vmatpush3.bf16.msra.mxu0 %v3980_v30 }
 0x6d9   :  { %v2169_v34 = vmax.f32 %v2164_v31, 0.0  ;;  %v4300_v38 = vpack.c.bf16 %v2168_v32, %v2166_v35  ;;  %3479 = vmatprep.subr.bf16.mxu0 %v4160_v9  ;;  %v3983_v35 = vld [vmem:[#allocation11 + $0x40] sm:$0xff]  }
 0x6db   :  { %v4298_v36 = vpack.c.bf16 %v2169_v34, %v2167_v33  ;;  %v3981_v33 = vld [vmem:[#allocation11 + $0x50] sm:$0xff]   ;;  %v3982_v34 = vld [vmem:[#allocation11 + $0x48] sm:$0xff]  }
 0x6dc   :  { %3480 = vmatpush3.bf16.msra.mxu0 %v3981_v33 }
 0x6dd   :  { %2405 = vmatprep.mubr.bf16.mxu1 %v4298_v36  ;;  %3481 = vmatprep.subr.bf16.mxu0 %v4160_v9 }
 0x6de   :  { %2406 = vmatmul.mubr.bf16.vlgmr.msra.gmra.mxu1 %v4300_v38 }
 0x6df   :  { %3397 = vmatpush3.bf16.msra.mxu1 %v3938_v37  ;;  %v115_v37 = vld [vmem:[%s4370_s6] sm:$0x3]  ;;  %s4162_s6 = smov [#allocation13]  }
 0x6e0   :  { %3398 = vmatprep.subr.bf16.mxu1 %v3940_v39  ;;  %3482 = vmatpush3.bf16.msra.mxu0 %v3982_v34  ;;  %s3035_s16 = sshll.u32 %s4162_s6, 4  ;;  %s3036_s16 = int_to_ptr.vmem [resolvable:$true] %s3035_s16 }
 0x6e1   :  { %3483 = vmatprep.subr.bf16.mxu0 %v4160_v9  ;;  %s4119_s17 = scalar_lea.vmem %s3036_s16, 256  ;;  %p4124_p3 = scmp.lt.s32.totalorder %s3036_s16, %s3036_s16 }
 0x6e2   :  { %p4120_p2 = scmp.ne.s32.totalorder %s3036_s16, %s4119_s17  ;;  %p4125_p4 = scmp.lt.s32.totalorder %s4119_s17, %s4119_s17 }
 0x6e3   :  { %3399 = vmatpush3.bf16.msra.mxu1 %v3941_v40 }
 0x6e4   :  { %3400 = vmatprep.subr.bf16.mxu1 %v3943_v41  ;;  %3484 = vmatpush3.bf16.msra.mxu0 %v3983_v35  ;;  %p4126_p5 = por %p4125_p4, %p4124_p3 }
 0x6e6   :  { %p4127_p6 = pnand %p4126_p5, %p4120_p2 }
 0x6e7   :  { %3401 = vmatpush3.bf16.msra.mxu1 %v3944_v42  ;;  %v2695_v42 = vrot.slane %v115_v37, %v4249_v16 }
 0x6e8   :  { %3402 = vmatprep.subr.bf16.mxu1 %v3946_v43 }
 0x6eb   :  { %3403 = vmatpush3.bf16.msra.mxu1 %v3947_v44 }
 0x6ec   :  { %3404 = vmatprep.subr.bf16.mxu1 %v3949_v45 }
 0x6ef   :  { %3405 = vmatpush3.bf16.msra.mxu1 %v3950_v46 }
 0x6f0   :  { %3406 = vmatprep.subr.bf16.mxu1 %v3952_v47  ;;  %v2548_v28 = vpop.f32.mrf.mxu0 }
 0x6f2   :  { %v3467_v29 = vpop.f32.mrf.mxu0 }
 0x6f3   :  { %3407 = vmatpush3.bf16.msra.mxu1 %v3953_v48 }
 0x6f4   :  { %3408 = vmatprep.subr.bf16.mxu1 %v3955_v50  ;;  %v2551_v31 = vpop.f32.mrf.mxu0 }
 0x6f6   :  { %v3468_v32 = vpop.f32.mrf.mxu0 }
 0x6f7   :  { %3409 = vmatpush3.bf16.msra.mxu1 %v3956_v51 }
 0x6f8   :  { %3410 = vmatprep.subr.bf16.mxu1 %v3958_v53 }
 0x6fb   :  { %3411 = vmatpush3.bf16.msra.mxu1 %v3959_v54 }
 0x6fc   :  { %3427 = vmatprep.subr.bf16.mxu1 %v3960_v55  ;;  %v2980_v55 = vrot.slane %v115_v37, %v4246_v15 }
 0x79e   :  { %v2407_v60 = vpop.f32.mrf.mxu1 }
 0x79f   :  { %v2408_v6 = vadd.f32 %v2407_v60, %v2208_v63 }
 0x7a0   :  { %v2409_v61 = vpop.f32.mrf.mxu1 }
 0x7a1   :  { %v2410_v4 = vadd.f32 %v2409_v61, %v2212_v62 }
 0x7a2   :  { %v2411_v1 = vpop.f32.mrf.mxu1 }
 0x7a3   :  { %v2412_v2 = vadd.f32 %v2411_v1, %v2208_v63 }
 0x7a4   :  { %v2413_v3 = vpop.f32.mrf.mxu1 }
 0x7a5   :  { %v2414_v5 = vadd.f32 %v2413_v3, %v2212_v62  ;;  %v2416_v10 = vpack.c.bf16 %v2412_v2, %v2408_v6 }
 0x7a7   :  { %v2417_v7 = vpack.c.bf16 %v2414_v5, %v2410_v4 }
 0x7a9   :  { %2683 = vmatprep.mubr.bf16.mxu1 %v2417_v7 }
 0x7aa   :  { %2684 = vmatmul.mubr.bf16.vlgmr.msra.gmra.mxu1 %v2416_v10 }
 0x7ab   :  { %3428 = vmatpush3.bf16.msra.mxu1 %v3961_v8  ;;  %2968 = vmatprep.mubr.bf16.mxu1 %v4298_v36 }
 0x7ac   :  { %3429 = vmatprep.subr.bf16.mxu1 %v3962_v11 }
 0x7af   :  { %3430 = vmatpush3.bf16.msra.mxu1 %v3963_v14 }
 0x7b0   :  { %3431 = vmatprep.subr.bf16.mxu1 %v3964_v12 }
 0x7b3   :  { %3432 = vmatpush3.bf16.msra.mxu1 %v3965_v17 }
 0x7b4   :  { %3433 = vmatprep.subr.bf16.mxu1 %v3966_v18 }
 0x7b7   :  { %3434 = vmatpush3.bf16.msra.mxu1 %v3967_v19 }
 0x7b8   :  { %3435 = vmatprep.subr.bf16.mxu1 %v3968_v20 }
 0x7bb   :  { %3436 = vmatpush3.bf16.msra.mxu1 %v3969_v21 }
 0x7bc   :  { %3437 = vmatprep.subr.bf16.mxu1 %v3970_v22 }
 0x7bf   :  { %3438 = vmatpush3.bf16.msra.mxu1 %v3971_v23 }
 0x7c0   :  { %3439 = vmatprep.subr.bf16.mxu1 %v3972_v24 }
 0x7c3   :  { %3440 = vmatpush3.bf16.msra.mxu1 %v3973_v25 }
 0x7c4   :  { %3441 = vmatprep.subr.bf16.mxu1 %v3974_v0 }
 0x7c7   :  { %3442 = vmatpush3.bf16.msra.mxu1 %v3975_v27 }
 0x7ca   :  { %2969 = vmatmul.mubr.bf16.vlgmr.msra.gmra.mxu1 %v4300_v38 }
 0x86a   :  { %v3412_v36 = vpop.f32.mrf.mxu1 }
 0x86c   :  { %v3413_v38 = vpop.f32.mrf.mxu1 }
 0x86d   :  { %v3414_v39 = vadd.f32 %v3413_v38, %v3412_v36 }
 0x86e   :  { %v3415_v40 = vpop.f32.mrf.mxu1 }
 0x86f   :  { %v2686_v41 = vadd.f32 %v3414_v39, %v2548_v28 }
 0x870   :  { %v3416_v43 = vpop.f32.mrf.mxu1 }
 0x871   :  { %v3417_v44 = vadd.f32 %v3416_v43, %v3415_v40  ;;  %v2696_v45 = vadd.f32 %v2695_v42, %v2686_v41 }
 0x873   :  { %v2689_v46 = vadd.f32 %v3417_v44, %v2551_v31  ;;  %v2698_v48 = vmax.f32 %v2696_v45, 0.0 }
 0x875   :  { %v2697_v47 = vadd.f32 %v2695_v42, %v2689_v46 }
 0x877   :  { %v2699_v9 = vmax.f32 %v2697_v47, 0.0 }
 0x879   :  { %v2700_v49 = vpack.c.bf16 %v2699_v9, %v2698_v48 }
 0x87b   :  { %3486 = vmatmul.mubr.bf16.vlgmr.msra.gmra.mxu0 %v2700_v49 }
 0x88a   :  { %v3443_v50 = vpop.f32.mrf.mxu1 }
 0x88c   :  { %v3444_v51 = vpop.f32.mrf.mxu1 }
 0x88d   :  { %v3445_v54 = vadd.f32 %v3444_v51, %v3443_v50 }
 0x88e   :  { %v3446_v53 = vpop.f32.mrf.mxu1 }
 0x890   :  { %v3447_v16 = vpop.f32.mrf.mxu1 }
 0x891   :  { %v3448_v26 = vadd.f32 %v3447_v16, %v3446_v53 }
 0x93b   :  { %v2833_v56 = vpop.f32.mrf.mxu0 }
 0x93c   :  { %v2971_v57 = vadd.f32 %v3445_v54, %v2833_v56 }
 0x93d   :  { %v3487_v58 = vpop.f32.mrf.mxu0 }
 0x93e   :  { %v2981_v60 = vadd.f32 %v2980_v55, %v2971_v57 }
 0x93f   :  { %v2836_v13 = vpop.f32.mrf.mxu0 }
 0x940   :  { %v2974_v61 = vadd.f32 %v3448_v26, %v2836_v13  ;;  %v2988_v62 = vsel %vm4331_vm3, %v2981_v60, 0.0  ;;  %v3000_v4 = vsub.f32 0.0, %v2981_v60  ;;  %v3013_v25 = vmax.f32 %v2981_v60, 0.0 }
 0x941   :  { %v3488_v15 = vpop.f32.mrf.mxu0  ;;  %v2990_v63 = vmul.f32 %v2988_v62, %v2988_v62  ;;  %v3015_v21 = vsub.f32 0.0, %v2988_v62 }
 0x942   :  { %v2982_v1 = vadd.f32 %v2980_v55, %v2974_v61  ;;  %v3002_v5 = vmul.f32 1.442695, %v3000_v4 }
 0x943   :  { %2992 = vadd.xlane.f32.xlu0 %v2990_v63 }
 0x944   :  { %v2989_v2 = vsel %vm4331_vm3, %v2982_v1, 0.0  ;;  %v3001_v6 = vsub.f32 0.0, %v2982_v1  ;;  %3984 = vpow2.f32 %v3002_v5  ;;  %v3014_v33 = vmax.f32 %v2982_v1, 0.0 }
 0x945   :  { %v2991_v3 = vmul.f32 %v2989_v2, %v2989_v2  ;;  %v3016_v28 = vsub.f32 0.0, %v2989_v2 }
 0x946   :  { %v3004_v7 = vmul.f32 1.442695, %v3001_v6 }
 0x947   :  { %2994 = vadd.xlane.f32.xlu0 %v2991_v3 }
 0x948   :  { %3986 = vpow2.f32 %v3004_v7 }
 0x951   :  { %v3985_v8 = vpop.eup %3984 }
 0x952   :  { %v3006_v10 = vadd.f32 1.0, %v3985_v8 }
 0x954   :  { %3988 = vrcp.f32 %v3006_v10 }
 0x955   :  { %v3987_v11 = vpop.eup %3986 }
 0x956   :  { %v3007_v17 = vadd.f32 1.0, %v3987_v11 }
 0x961   :  { %v3989_v20 = vpop.eup %3988 }
 0x962   :  { %v3022_v0 = vsel %vm4341_vm6, %v3989_v20, 0.0 }
 0x9cc   :  { %v2993_v14 = vpop.xlane.xlu0 %2992 }
 0x9cd   :  { %v2996_v12 = vmax.f32 %v2993_v14, 1.1920929e-07 }
 0x9cf   :  { %3990 = vrsqrt.f32 %v2996_v12 }
 0x9d0   :  { %v2995_v18 = vpop.xlane.xlu0 %2994  ;;  %3992 = vrcp.f32 %v3007_v17 }
 0x9d1   :  { %v2997_v19 = vmax.f32 %v2995_v18, 1.1920929e-07 }
 0x9d3   :  { %3994 = vrsqrt.f32 %v2997_v19 }
 0x9dc   :  { %v3991_v23 = vpop.eup %3990 }
 0x9dd   :  { %v3017_v24 = vmul.f32 %v3991_v23, %v3015_v21  ;;  %v3993_v27 = vpop.eup %3992 }
 0x9de   :  { %v3023_v34 = vsel %vm4341_vm6, %v3993_v27, 0.0 }
 0x9df   :  { %v3024_v29 = vsel %vm4331_vm3, %v3017_v24, %v3022_v0 }
 0x9e0   :  { %v3995_v30 = vpop.eup %3994  ;;  %v3026_v31 = vsel %vm3012_vm7, %v3013_v25, %v3024_v29 }
 0x9e1   :  { %v3018_v32 = vmul.f32 %v3995_v30, %v3016_v28  ;;  %3028 = vst [vmem:[#allocation13] sm:$0xff] %v3026_v31 }
 0x9e3   :  { %v3025_v35 = vsel %vm4331_vm3, %v3018_v32, %v3023_v34 }
 0x9e4   :  { %v3027_v36 = vsel %vm3012_vm7, %v3014_v33, %v3025_v35 }
 0x9e5   :  { %3029 = vst [vmem:[#allocation13 + $0x8] sm:$0xff] %v3027_v36 }
 0x9e6   :  { %4130 = shalt.err (!%p4127_p6)
}
 0x9e7   :  { %3041 = dma.vmem_to_hbm [thread:$0]  %s3036_s16, 256, %s4372_s8, [#allocation4], %s4150_s30, %s4150_s30, %s4151_s9  }
 0x9e8   :  { %4147 = dma.done.wait [#allocation4], 256  }
 0x9e9   :  { %4148 = vsyncadd [#allocation4], 4294967040 }
 0x9ea   :  { %3045 = vsyncpa [#allocation3], 1 }
 0x9eb   :  { %3046 = vsyncpa [#allocation6], 1 }
 0x9ec   :  { %3047 = vsyncpa [#allocation9], 1 }
 0x9ed   :  { %3048 = vsyncpa [#allocation12], 1 }
 0x9ee   :  { %3049 = vsyncpa [#allocation4], 1 }

// kernel: tpu_custom_call.1
= control target key start
LH: loop header
LB: loop body
LE: loop exit
PB: predicated region body
PF: predicated region fallthrough
CT: control target
= control target key end

     0   :  { %13 = vsyncpa [#allocation3], 0  ;;  %s4364_s0 = inlined_call_operand.hbm [shape: bf16[16,128], index: 0, kind: input, shape index: {}]   ;;  %s4365_s1 = inlined_call_operand.hbm [shape: bf16[8,256,256], index: 1, kind: input, shape index: {}]   ;;  %s4366_s2 = inlined_call_operand.hbm [shape: f32[8,256], index: 2, kind: input, shape index: {}]   ;;  %s4367_s3 = inlined_call_operand.hbm [shape: bf16[2,128,256], index: 3, kind: input, shape index: {}]   ;;  %s4368_s4 = inlined_call_operand.vmem [shape: f32[1,256], index: 4, kind: input, shape index: {}]   ;;  %s4369_s5 = inlined_call_operand.hbm [shape: bf16[2,256,128], index: 5, kind: input, shape index: {}]   ;;  %s4370_s6 = inlined_call_operand.vmem [shape: f32[2,128], index: 6, kind: input, shape index: {}]   ;;  %s4371_s7 = inlined_call_operand.hbm [shape: bf16[2,128,128], index: 7, kind: input, shape index: {}]   ;;  %s4372_s8 = inlined_call_operand.hbm [shape: f32[16,128], index: 8, kind: output, shape index: {}]  }
   0x1   :  { %14 = vsyncpa [#allocation6], 0 }
   0x2   :  { %15 = vsyncpa [#allocation9], 0 }
   0x3   :  { %16 = vsyncpa [#allocation12], 0 }
   0x4   :  { %17 = vsyncpa [#allocation4], 0  ;;  %s4149_s27 = smov [#allocation5]  }
   0x5   :  { %s35_s28 = sshll.u32 %s4149_s27, 4  ;;  %s36_s28 = int_to_ptr.vmem [resolvable:$true] %s35_s28 }
   0x6   :  { %s4007_s29 = scalar_lea.vmem %s36_s28, 32768  ;;  %p4012_p1 = scmp.lt.s32.totalorder %s36_s28, %s36_s28 }
   0x7   :  { %p4008_p0 = scmp.ne.s32.totalorder %s36_s28, %s4007_s29  ;;  %p4013_p2 = scmp.lt.s32.totalorder %s4007_s29, %s4007_s29 }
   0x9   :  { %p4014_p3 = por %p4013_p2, %p4012_p1 }
   0xb   :  { %p4015_p4 = pnand %p4014_p3, %p4008_p0 }
   0xd   :  { %4018 = shalt.err (!%p4015_p4)
}
   0xe   :  { %s4150_s30 = smov 128   ;;  %s4151_s9 = smov 8  }
   0xf   :  { %41 = dma.hbm_to_vmem [thread:$0]  %s4365_s1, 32768, %s36_s28, [#allocation6], %s4150_s30, %s4150_s30, %s4151_s9  }
  0x10   :  { %s4152_s12 = smov [#allocation8]   ;;  %s4153_s14 = smov [#allocation2]  }
  0x11   :  { %s57_s13 = sshll.u32 %s4152_s12, 4  ;;  %s23_s15 = sshll.u32 %s4153_s14, 4  ;;  %s58_s13 = int_to_ptr.vmem [resolvable:$true] %s57_s13  ;;  %s24_s15 = int_to_ptr.vmem [resolvable:$true] %s23_s15 }
  0x12   :  { %s4027_s16 = scalar_lea.vmem %s58_s13, 4096  ;;  %p4032_p6 = scmp.lt.s32.totalorder %s58_s13, %s58_s13 }
  0x13   :  { %p4028_p5 = scmp.ne.s32.totalorder %s58_s13, %s4027_s16  ;;  %p4033_p7 = scmp.lt.s32.totalorder %s4027_s16, %s4027_s16 }
  0x15   :  { %p4034_p8 = por %p4033_p7, %p4032_p6 }
  0x17   :  { %p4035_p9 = pnand %p4034_p8, %p4028_p5 }
  0x19   :  { %4038 = shalt.err (!%p4035_p9)
}
  0x1a   :  { %63 = dma.hbm_to_vmem [thread:$0]  %s4367_s3, 4096, %s58_s13, [#allocation9], %s4150_s30, %s4150_s30, %s4151_s9  }
  0x1b   :  { %s4047_s1 = scalar_lea.vmem %s24_s15, 128  ;;  %p4052_p11 = scmp.lt.s32.totalorder %s24_s15, %s24_s15 }
  0x1c   :  { %p4048_p10 = scmp.ne.s32.totalorder %s24_s15, %s4047_s1  ;;  %p4053_p12 = scmp.lt.s32.totalorder %s4047_s1, %s4047_s1 }
  0x1e   :  { %p4054_p13 = por %p4053_p12, %p4052_p11 }
  0x20   :  { %p4055_p0 = pnand %p4054_p13, %p4048_p10 }
  0x22   :  { %4058 = shalt.err (!%p4055_p0)
}
  0x23   :  { %s4154_s19 = smov 64   ;;  %s4155_s20 = smov 4  }
  0x24   :  { %29 = dma.hbm_to_vmem [thread:$0]  %s4364_s0, 128, %s24_s15, [#allocation3], %s4154_s19, %s4154_s19, %s4155_s20  }
  0x25   :  { %s4156_s23 = smov [#allocation7]   ;;  %s4157_s3 = smov [#allocation10]  }
  0x26   :  { %s48_s24 = sshll.u32 %s4156_s23, 4  ;;  %s71_s25 = sshll.u32 %s4157_s3, 4  ;;  %s49_s24 = int_to_ptr.vmem [resolvable:$true] %s48_s24  ;;  %s72_s25 = int_to_ptr.vmem [resolvable:$true] %s71_s25 }
  0x27   :  { %s4067_s26 = scalar_lea.vmem %s49_s24, 256  ;;  %p4072_p2 = scmp.lt.s32.totalorder %s49_s24, %s49_s24 }
  0x28   :  { %p4068_p1 = scmp.ne.s32.totalorder %s49_s24, %s4067_s26  ;;  %p4073_p3 = scmp.lt.s32.totalorder %s4067_s26, %s4067_s26 }
  0x2a   :  { %p4074_p4 = por %p4073_p3, %p4072_p2 }
  0x2c   :  { %p4075_p5 = pnand %p4074_p4, %p4068_p1 }
  0x2e   :  { %4078 = shalt.err (!%p4075_p5)
}
  0x2f   :  { %51 = dma.hbm_to_vmem [thread:$0]  %s4366_s2, 256, %s49_s24, [#allocation6]  }
  0x30   :  { %s4087_s29 = scalar_lea.vmem %s72_s25, 4096  ;;  %p4092_p7 = scmp.lt.s32.totalorder %s72_s25, %s72_s25 }
  0x31   :  { %p4088_p6 = scmp.ne.s32.totalorder %s72_s25, %s4087_s29  ;;  %p4093_p8 = scmp.lt.s32.totalorder %s4087_s29, %s4087_s29 }
  0x33   :  { %p4094_p9 = por %p4093_p8, %p4092_p7 }
  0x35   :  { %p4095_p10 = pnand %p4094_p9, %p4088_p6 }
  0x37   :  { %4098 = shalt.err (!%p4095_p10)
}
  0x38   :  { %77 = dma.hbm_to_vmem [thread:$0]  %s4369_s5, 4096, %s72_s25, [#allocation9], %s4154_s19, %s4154_s19, %s4155_s20  }
  0x39   :  { %s4158_s11 = smov [#allocation11]  }
  0x3a   :  { %s85_s12 = sshll.u32 %s4158_s11, 4  ;;  %s86_s12 = int_to_ptr.vmem [resolvable:$true] %s85_s12 }
  0x3b   :  { %s4107_s13 = scalar_lea.vmem %s86_s12, 2048  ;;  %p4112_p12 = scmp.lt.s32.totalorder %s86_s12, %s86_s12 }
  0x3c   :  { %p4108_p11 = scmp.ne.s32.totalorder %s86_s12, %s4107_s13  ;;  %p4113_p13 = scmp.lt.s32.totalorder %s4107_s13, %s4107_s13 }
  0x3e   :  { %p4114_p0 = por %p4113_p13, %p4112_p12 }
  0x40   :  { %p4115_p1 = pnand %p4114_p0, %p4108_p11 }
  0x42   :  { %4118 = shalt.err (!%p4115_p1)
}
  0x43   :  { %91 = dma.hbm_to_vmem [thread:$0]  %s4371_s7, 2048, %s86_s12, [#allocation12], %s4154_s19, %s4154_s19, %s4155_s20  }
  0x44   :  { %4139 = dma.done.wait [#allocation3], 128  }
  0x45   :  { %4140 = vsyncadd [#allocation3], 4294967168 }
  0x46   :  { %4141 = dma.done.wait [#allocation6], 33024  }
  0x47   :  { %4142 = vsyncadd [#allocation6], 4294934272 }
  0x48   :  { %4143 = dma.done.wait [#allocation9], 8192  }
  0x49   :  { %4144 = vsyncadd [#allocation9], 4294959104 }
  0x4a   :  { %4145 = dma.done.wait [#allocation12], 2048  }
  0x4b   :  { %4146 = vsyncadd [#allocation12], 4294965248  ;;  %v4159_v0 = vmov 0   ;;  %v3503_v1 = vld [vmem:[#allocation8 + $0x74] ss:$8 sps:$4 sm:$0xff]   ;;  %v3527_v27 = vld [vmem:[#allocation2] sm:$0xff]  }
  0x4c   :  { %262 = vmatprep.mubr.bf16.mxu0 %v4159_v0  ;;  %v3505_v2 = vld [vmem:[#allocation8 + $0x70] ss:$8 sps:$4 sm:$0xff]   ;;  %230 = vmatprep.subr.bf16.mxu0 %v3503_v1  ;;  %v3506_v3 = vld [vmem:[#allocation8 + $0x64] ss:$8 sps:$4 sm:$0xff]   ;;  %v3508_v4 = vld [vmem:[#allocation8 + $0x60] ss:$8 sps:$4 sm:$0xff]  }
  0x4d   :  { %231 = vmatpush1.bf16.msra.mxu0 %v3505_v2  ;;  %v3509_v5 = vld [vmem:[#allocation8 + $0x54] ss:$8 sps:$4 sm:$0xff]   ;;  %v3511_v6 = vld [vmem:[#allocation8 + $0x50] ss:$8 sps:$4 sm:$0xff]   ;;  %v3512_v7 = vld [vmem:[#allocation8 + $0x44] ss:$8 sps:$4 sm:$0xff]  }
  0x4e   :  { %232 = vmatprep.subr.bf16.mxu0 %v3506_v3  ;;  %v3514_v8 = vld [vmem:[#allocation8 + $0x40] ss:$8 sps:$4 sm:$0xff]   ;;  %v3515_v9 = vld [vmem:[#allocation8 + $0x34] ss:$8 sps:$4 sm:$0xff]   ;;  %v3528_v10 = vld [vmem:[#allocation5 + $0x74] ss:$8 sps:$4 sm:$0xff]  }
  0x4f   :  { %v3530_v11 = vld [vmem:[#allocation5 + $0x70] ss:$8 sps:$4 sm:$0xff]   ;;  %v3531_v12 = vld [vmem:[#allocation5 + $0x64] ss:$8 sps:$4 sm:$0xff]   ;;  %479 = vmatprep.subr.bf16.mxu1 %v3528_v10  ;;  %v3517_v13 = vld [vmem:[#allocation8 + $0x30] ss:$8 sps:$4 sm:$0xff]  }
  0x50   :  { %480 = vmatpush1.bf16.msra.mxu1 %v3530_v11  ;;  %v3533_v14 = vld [vmem:[#allocation5 + $0x60] ss:$8 sps:$4 sm:$0xff]   ;;  %v3518_v15 = vld [vmem:[#allocation8 + $0x24] ss:$8 sps:$4 sm:$0xff]   ;;  %v3520_v17 = vld [vmem:[#allocation8 + $0x20] ss:$8 sps:$4 sm:$0xff]  }
  0x51   :  { %233 = vmatpush1.bf16.msra.mxu0 %v3508_v4  ;;  %481 = vmatprep.subr.bf16.mxu1 %v3531_v12  ;;  %v3534_v16 = vld [vmem:[#allocation5 + $0x54] ss:$8 sps:$4 sm:$0xff]   ;;  %v3536_v18 = vld [vmem:[#allocation5 + $0x50] ss:$8 sps:$4 sm:$0xff]   ;;  %v3521_v19 = vld [vmem:[#allocation8 + $0x14] ss:$8 sps:$4 sm:$0xff]  }
  0x52   :  { %234 = vmatprep.subr.bf16.mxu0 %v3509_v5  ;;  %v3537_v20 = vld [vmem:[#allocation5 + $0x44] ss:$8 sps:$4 sm:$0xff]   ;;  %v3523_v21 = vld [vmem:[#allocation8 + $0x10] ss:$8 sps:$4 sm:$0xff]   ;;  %v3524_v23 = vld [vmem:[#allocation8 + $0x4] ss:$8 sps:$4 sm:$0xff]  }
  0x53   :  { %v3539_v22 = vld [vmem:[#allocation5 + $0x40] ss:$8 sps:$4 sm:$0xff]   ;;  %v3540_v24 = vld [vmem:[#allocation5 + $0x34] ss:$8 sps:$4 sm:$0xff]   ;;  %v3526_v25 = vld [vmem:[#allocation8] ss:$8 sps:$4 sm:$0xff]  }
  0x54   :  { %482 = vmatpush1.bf16.msra.mxu1 %v3533_v14  ;;  %v3542_v26 = vld [vmem:[#allocation5 + $0x30] ss:$8 sps:$4 sm:$0xff]   ;;  %v3543_v28 = vld [vmem:[#allocation5 + $0x24] ss:$8 sps:$4 sm:$0xff]   ;;  %v3545_v29 = vld [vmem:[#allocation5 + $0x20] ss:$8 sps:$4 sm:$0xff]  }
  0x55   :  { %235 = vmatpush1.bf16.msra.mxu0 %v3511_v6  ;;  %483 = vmatprep.subr.bf16.mxu1 %v3534_v16  ;;  %v3546_v30 = vld [vmem:[#allocation5 + $0x14] ss:$8 sps:$4 sm:$0xff]   ;;  %v3548_v31 = vld [vmem:[#allocation5 + $0x10] ss:$8 sps:$4 sm:$0xff]   ;;  %v3549_v32 = vld [vmem:[#allocation5 + $0x4] ss:$8 sps:$4 sm:$0xff]  }
  0x56   :  { %236 = vmatprep.subr.bf16.mxu0 %v3512_v7  ;;  %v3551_v33 = vld [vmem:[#allocation5] ss:$8 sps:$4 sm:$0xff]   ;;  %v3552_v34 = vld [vmem:[#allocation5 + $0xf4] ss:$8 sps:$4 sm:$0xff]   ;;  %v3554_v35 = vld [vmem:[#allocation5 + $0xf0] ss:$8 sps:$4 sm:$0xff]  }
  0x57   :  { %v3555_v36 = vld [vmem:[#allocation5 + $0xe4] ss:$8 sps:$4 sm:$0xff]   ;;  %v3557_v37 = vld [vmem:[#allocation5 + $0xe0] ss:$8 sps:$4 sm:$0xff]   ;;  %v3558_v38 = vld [vmem:[#allocation5 + $0xd4] ss:$8 sps:$4 sm:$0xff]  }
  0x58   :  { %484 = vmatpush1.bf16.msra.mxu1 %v3536_v18  ;;  %v3560_v39 = vld [vmem:[#allocation5 + $0xd0] ss:$8 sps:$4 sm:$0xff]   ;;  %v3561_v40 = vld [vmem:[#allocation5 + $0xc4] ss:$8 sps:$4 sm:$0xff]   ;;  %v3563_v41 = vld [vmem:[#allocation5 + $0xc0] ss:$8 sps:$4 sm:$0xff]  }
  0x59   :  { %237 = vmatpush1.bf16.msra.mxu0 %v3514_v8  ;;  %485 = vmatprep.subr.bf16.mxu1 %v3537_v20  ;;  %v3564_v42 = vld [vmem:[#allocation5 + $0xb4] ss:$8 sps:$4 sm:$0xff]   ;;  %v3566_v43 = vld [vmem:[#allocation5 + $0xb0] ss:$8 sps:$4 sm:$0xff]   ;;  %v3567_v44 = vld [vmem:[#allocation5 + $0xa4] ss:$8 sps:$4 sm:$0xff]  }
  0x5a   :  { %238 = vmatprep.subr.bf16.mxu0 %v3515_v9  ;;  %v3569_v45 = vld [vmem:[#allocation5 + $0xa0] ss:$8 sps:$4 sm:$0xff]   ;;  %v3570_v46 = vld [vmem:[#allocation5 + $0x94] ss:$8 sps:$4 sm:$0xff]   ;;  %v3572_v47 = vld [vmem:[#allocation5 + $0x90] ss:$8 sps:$4 sm:$0xff]  }
  0x5b   :  { %v3573_v48 = vld [vmem:[#allocation5 + $0x84] ss:$8 sps:$4 sm:$0xff]   ;;  %v3575_v49 = vld [vmem:[#allocation5 + $0x80] ss:$8 sps:$4 sm:$0xff]   ;;  %v3576_v50 = vld [vmem:[#allocation5 + $0x170] ss:$8 sps:$4 sm:$0xff]  }
  0x5c   :  { %486 = vmatpush1.bf16.msra.mxu1 %v3539_v22  ;;  %v3578_v51 = vld [vmem:[#allocation5 + $0x174] ss:$8 sps:$4 sm:$0xff]   ;;  %v3581_v52 = vld [vmem:[#allocation5 + $0x164] ss:$8 sps:$4 sm:$0xff]   ;;  %v3579_v53 = vld [vmem:[#allocation5 + $0x160] ss:$8 sps:$4 sm:$0xff]  }
  0x5d   :  { %239 = vmatpush1.bf16.msra.mxu0 %v3517_v13  ;;  %487 = vmatprep.subr.bf16.mxu1 %v3540_v24  ;;  %v3584_v54 = vld [vmem:[#allocation5 + $0x154] ss:$8 sps:$4 sm:$0xff]   ;;  %v3582_v55 = vld [vmem:[#allocation5 + $0x150] ss:$8 sps:$4 sm:$0xff]   ;;  %v3587_v56 = vld [vmem:[#allocation5 + $0x144] ss:$8 sps:$4 sm:$0xff]   ;;  %v134_v13 = vlaneseq }
  0x5e   :  { %240 = vmatprep.subr.bf16.mxu0 %v3518_v15  ;;  %v3585_v57 = vld [vmem:[#allocation5 + $0x140] ss:$8 sps:$4 sm:$0xff]   ;;  %v3590_v58 = vld [vmem:[#allocation5 + $0x134] ss:$8 sps:$4 sm:$0xff]   ;;  %v3588_v59 = vld [vmem:[#allocation5 + $0x130] ss:$8 sps:$4 sm:$0xff]  }
  0x5f   :  { %v3593_v60 = vld [vmem:[#allocation5 + $0x124] ss:$8 sps:$4 sm:$0xff]   ;;  %v3591_v61 = vld [vmem:[#allocation5 + $0x120] ss:$8 sps:$4 sm:$0xff]   ;;  %v3596_v62 = vld [vmem:[#allocation5 + $0x114] ss:$8 sps:$4 sm:$0xff]  }
  0x60   :  { %488 = vmatpush1.bf16.msra.mxu1 %v3542_v26  ;;  %v3594_v63 = vld [vmem:[#allocation5 + $0x110] ss:$8 sps:$4 sm:$0xff]   ;;  %v3599_v1 = vld [vmem:[#allocation5 + $0x104] ss:$8 sps:$4 sm:$0xff]   ;;  %v3597_v2 = vld [vmem:[#allocation5 + $0x100] ss:$8 sps:$4 sm:$0xff]  }
  0x61   :  { %241 = vmatpush1.bf16.msra.mxu0 %v3520_v17  ;;  %489 = vmatprep.subr.bf16.mxu1 %v3543_v28  ;;  %v3602_v3 = vld [vmem:[#allocation5 + $0x1f4] ss:$8 sps:$4 sm:$0xff]   ;;  %v3600_v4 = vld [vmem:[#allocation5 + $0x1f0] ss:$8 sps:$4 sm:$0xff]   ;;  %v3605_v5 = vld [vmem:[#allocation5 + $0x1e4] ss:$8 sps:$4 sm:$0xff]  }
  0x62   :  { %242 = vmatprep.subr.bf16.mxu0 %v3521_v19  ;;  %v3603_v6 = vld [vmem:[#allocation5 + $0x1e0] ss:$8 sps:$4 sm:$0xff]   ;;  %v3608_v7 = vld [vmem:[#allocation5 + $0x1d4] ss:$8 sps:$4 sm:$0xff]   ;;  %v3606_v8 = vld [vmem:[#allocation5 + $0x1d0] ss:$8 sps:$4 sm:$0xff]  }
  0x63   :  { %v3611_v9 = vld [vmem:[#allocation5 + $0x1c4] ss:$8 sps:$4 sm:$0xff]   ;;  %v3609_v10 = vld [vmem:[#allocation5 + $0x1c0] ss:$8 sps:$4 sm:$0xff]   ;;  %v3614_v11 = vld [vmem:[#allocation5 + $0x1b4] ss:$8 sps:$4 sm:$0xff]  }
  0x64   :  { %490 = vmatpush1.bf16.msra.mxu1 %v3545_v29  ;;  %v3612_v12 = vld [vmem:[#allocation5 + $0x1b0] ss:$8 sps:$4 sm:$0xff]   ;;  %v4243_v14 = vshrl.u32 %v134_v13, 7  ;;  %vm4161_vm0 = vmmov 0  }
  0x65   :  { %243 = vmatpush1.bf16.msra.mxu0 %v3523_v21  ;;  %491 = vmatprep.subr.bf16.mxu1 %v3546_v30  ;;  %v132_v17 = vld [vmem:[%s4368_s4] sm:$0x3] }
  0x66   :  { %244 = vmatprep.subr.bf16.mxu0 %v3524_v23  ;;  %v4246_v15 = vsub.s32 1, %v4243_v14  ;;  %v4249_v16 = vsub.s32 0, %v4243_v14 }
  0x68   :  { %492 = vmatpush1.bf16.msra.mxu1 %v3548_v31  ;;  %v141_v19 = vrot.slane %v132_v17, %v4246_v15  ;;  %v137_v20 = vrot.slane %v132_v17, %v4249_v16 }
  0x69   :  { %245 = vmatpush1.bf16.msra.mxu0 %v3526_v25  ;;  %493 = vmatprep.subr.bf16.mxu1 %v3549_v32 }
  0x6a   :  { %729 = vmatprep.subr.bf16.mxu0 %v3578_v51  ;;  %v3639_v51 = vld [vmem:[#allocation5 + $0x220] ss:$8 sps:$4 sm:$0xff]  }
  0x6c   :  { %263 = vmatmul.mubr.bf16.vlgmr.msra.gmra.mxu0 %v3527_v27  ;;  %494 = vmatpush1.bf16.msra.mxu1 %v3551_v33 }
  0x6d   :  { %495 = vmatprep.subr.bf16.mxu1 %v3552_v34  ;;  %730 = vmatpush1.bf16.msra.mxu0 %v3576_v50  ;;  %v3617_v34 = vld [vmem:[#allocation5 + $0x1a4] ss:$8 sps:$4 sm:$0xff]  }
  0x6e   :  { %731 = vmatprep.subr.bf16.mxu0 %v3581_v52  ;;  %v3641_v50 = vld [vmem:[#allocation5 + $0x224] ss:$8 sps:$4 sm:$0xff]   ;;  %v3644_v52 = vld [vmem:[#allocation5 + $0x214] ss:$8 sps:$4 sm:$0xff]  }
  0x70   :  { %496 = vmatpush2.bf16.msra.mxu1 %v3554_v35  ;;  %v3615_v35 = vld [vmem:[#allocation5 + $0x1a0] ss:$8 sps:$4 sm:$0xff]  }
  0x71   :  { %497 = vmatprep.subr.bf16.mxu1 %v3555_v36  ;;  %732 = vmatpush1.bf16.msra.mxu0 %v3579_v53  ;;  %v3620_v36 = vld [vmem:[#allocation5 + $0x194] ss:$8 sps:$4 sm:$0xff]   ;;  %v3642_v53 = vld [vmem:[#allocation5 + $0x210] ss:$8 sps:$4 sm:$0xff]  }
  0x72   :  { %733 = vmatprep.subr.bf16.mxu0 %v3584_v54  ;;  %v3647_v54 = vld [vmem:[#allocation5 + $0x204] ss:$8 sps:$4 sm:$0xff]  }
  0x74   :  { %498 = vmatpush2.bf16.msra.mxu1 %v3557_v37  ;;  %v3618_v37 = vld [vmem:[#allocation5 + $0x190] ss:$8 sps:$4 sm:$0xff]  }
  0x75   :  { %499 = vmatprep.subr.bf16.mxu1 %v3558_v38  ;;  %734 = vmatpush1.bf16.msra.mxu0 %v3582_v55  ;;  %v3623_v38 = vld [vmem:[#allocation5 + $0x184] ss:$8 sps:$4 sm:$0xff]   ;;  %v3645_v55 = vld [vmem:[#allocation5 + $0x200] ss:$8 sps:$4 sm:$0xff]  }
  0x76   :  { %735 = vmatprep.subr.bf16.mxu0 %v3587_v56  ;;  %v3650_v56 = vld [vmem:[#allocation5 + $0x2f4] ss:$8 sps:$4 sm:$0xff]  }
  0x78   :  { %500 = vmatpush2.bf16.msra.mxu1 %v3560_v39  ;;  %v3621_v39 = vld [vmem:[#allocation5 + $0x180] ss:$8 sps:$4 sm:$0xff]  }
  0x79   :  { %501 = vmatprep.subr.bf16.mxu1 %v3561_v40  ;;  %736 = vmatpush1.bf16.msra.mxu0 %v3585_v57  ;;  %v3624_v40 = vld [vmem:[#allocation5 + $0x270] ss:$8 sps:$4 sm:$0xff]  }
  0x7a   :  { %737 = vmatprep.subr.bf16.mxu0 %v3590_v58  ;;  %v3648_v57 = vld [vmem:[#allocation5 + $0x2f0] ss:$8 sps:$4 sm:$0xff]   ;;  %v3653_v58 = vld [vmem:[#allocation5 + $0x2e4] ss:$8 sps:$4 sm:$0xff]  }
  0x7c   :  { %502 = vmatpush2.bf16.msra.mxu1 %v3563_v41  ;;  %v3626_v41 = vld [vmem:[#allocation5 + $0x274] ss:$8 sps:$4 sm:$0xff]  }
  0x7d   :  { %503 = vmatprep.subr.bf16.mxu1 %v3564_v42  ;;  %738 = vmatpush1.bf16.msra.mxu0 %v3588_v59  ;;  %v3629_v42 = vld [vmem:[#allocation5 + $0x264] ss:$8 sps:$4 sm:$0xff]   ;;  %v3651_v59 = vld [vmem:[#allocation5 + $0x2e0] ss:$8 sps:$4 sm:$0xff]  }
  0x7e   :  { %739 = vmatprep.subr.bf16.mxu0 %v3593_v60  ;;  %v3656_v60 = vld [vmem:[#allocation5 + $0x2d4] ss:$8 sps:$4 sm:$0xff]  }
  0x80   :  { %504 = vmatpush2.bf16.msra.mxu1 %v3566_v43  ;;  %v3627_v43 = vld [vmem:[#allocation5 + $0x260] ss:$8 sps:$4 sm:$0xff]  }
  0x81   :  { %505 = vmatprep.subr.bf16.mxu1 %v3567_v44  ;;  %740 = vmatpush1.bf16.msra.mxu0 %v3591_v61  ;;  %v3632_v44 = vld [vmem:[#allocation5 + $0x254] ss:$8 sps:$4 sm:$0xff]   ;;  %v3654_v61 = vld [vmem:[#allocation5 + $0x2d0] ss:$8 sps:$4 sm:$0xff]  }
  0x82   :  { %741 = vmatprep.subr.bf16.mxu0 %v3596_v62  ;;  %v3659_v62 = vld [vmem:[#allocation5 + $0x2c4] ss:$8 sps:$4 sm:$0xff]  }
  0x84   :  { %506 = vmatpush2.bf16.msra.mxu1 %v3569_v45  ;;  %v3630_v45 = vld [vmem:[#allocation5 + $0x250] ss:$8 sps:$4 sm:$0xff]  }
  0x85   :  { %507 = vmatprep.subr.bf16.mxu1 %v3570_v46  ;;  %742 = vmatpush1.bf16.msra.mxu0 %v3594_v63  ;;  %v3635_v46 = vld [vmem:[#allocation5 + $0x244] ss:$8 sps:$4 sm:$0xff]   ;;  %v3657_v63 = vld [vmem:[#allocation5 + $0x2c0] ss:$8 sps:$4 sm:$0xff]  }
  0x86   :  { %743 = vmatprep.subr.bf16.mxu0 %v3599_v1  ;;  %v3662_v1 = vld [vmem:[#allocation5 + $0x2b4] ss:$8 sps:$4 sm:$0xff]  }
  0x88   :  { %508 = vmatpush2.bf16.msra.mxu1 %v3572_v47  ;;  %v3633_v47 = vld [vmem:[#allocation5 + $0x240] ss:$8 sps:$4 sm:$0xff]  }
  0x89   :  { %509 = vmatprep.subr.bf16.mxu1 %v3573_v48  ;;  %744 = vmatpush1.bf16.msra.mxu0 %v3597_v2  ;;  %v3638_v48 = vld [vmem:[#allocation5 + $0x234] ss:$8 sps:$4 sm:$0xff]   ;;  %v3660_v2 = vld [vmem:[#allocation5 + $0x2b0] ss:$8 sps:$4 sm:$0xff]  }
  0x8a   :  { %745 = vmatprep.subr.bf16.mxu0 %v3602_v3  ;;  %v4256_v3 = vld [vmem:[#allocation7 + $0x8] sm:$0xff] }
  0x8c   :  { %510 = vmatpush2.bf16.msra.mxu1 %v3575_v49  ;;  %v3636_v49 = vld [vmem:[#allocation5 + $0x230] ss:$8 sps:$4 sm:$0xff]  }
  0x8d   :  { %746 = vmatpush2.bf16.msra.mxu0 %v3600_v4  ;;  %979 = vmatprep.subr.bf16.mxu1 %v3626_v41  ;;  %v4258_v4 = vld [vmem:[#allocation7] sm:$0xff] }
  0x8e   :  { %747 = vmatprep.subr.bf16.mxu0 %v3605_v5  ;;  %v3689_v41 = vld [vmem:[#allocation5 + $0x324] ss:$8 sps:$4 sm:$0xff]  }
  0x91   :  { %748 = vmatpush2.bf16.msra.mxu0 %v3603_v6  ;;  %v318_v6 = vrot.slane %v4256_v3, %v4249_v16 }
  0x92   :  { %749 = vmatprep.subr.bf16.mxu0 %v3608_v7  ;;  %v314_v7 = vrot.slane %v4258_v4, %v4249_v16 }
  0x95   :  { %750 = vmatpush2.bf16.msra.mxu0 %v3606_v8 }
  0x96   :  { %751 = vmatprep.subr.bf16.mxu0 %v3611_v9 }
  0x99   :  { %752 = vmatpush2.bf16.msra.mxu0 %v3609_v10 }
  0x9a   :  { %753 = vmatprep.subr.bf16.mxu0 %v3614_v11 }
  0x9d   :  { %754 = vmatpush2.bf16.msra.mxu0 %v3612_v12 }
  0x9e   :  { %755 = vmatprep.subr.bf16.mxu0 %v3617_v34  ;;  %v3675_v34 = vld [vmem:[#allocation5 + $0x360] ss:$8 sps:$4 sm:$0xff]  }
  0xa1   :  { %756 = vmatpush2.bf16.msra.mxu0 %v3615_v35  ;;  %v3680_v35 = vld [vmem:[#allocation5 + $0x354] ss:$8 sps:$4 sm:$0xff]  }
  0xa2   :  { %757 = vmatprep.subr.bf16.mxu0 %v3620_v36  ;;  %v3678_v36 = vld [vmem:[#allocation5 + $0x350] ss:$8 sps:$4 sm:$0xff]  }
  0xa5   :  { %758 = vmatpush2.bf16.msra.mxu0 %v3618_v37  ;;  %v3683_v37 = vld [vmem:[#allocation5 + $0x344] ss:$8 sps:$4 sm:$0xff]  }
  0xa6   :  { %759 = vmatprep.subr.bf16.mxu0 %v3623_v38  ;;  %v3681_v38 = vld [vmem:[#allocation5 + $0x340] ss:$8 sps:$4 sm:$0xff]  }
  0xa9   :  { %760 = vmatpush2.bf16.msra.mxu0 %v3621_v39  ;;  %v3686_v39 = vld [vmem:[#allocation5 + $0x334] ss:$8 sps:$4 sm:$0xff]  }
 0x12c   :  { %v264_v18 = vpop.f32.mrf.mxu0 }
 0x12d   :  { %v265_v25 = vadd.f32 %v264_v18, %v137_v20 }
 0x12e   :  { %v266_v21 = vpop.f32.mrf.mxu0 }
 0x12f   :  { %v267_v23 = vadd.f32 %v266_v21, %v141_v19  ;;  %v273_v31 = vmax.f32 %v265_v25, 0.0  ;;  %v3665_v25 = vld [vmem:[#allocation5 + $0x2a4] ss:$8 sps:$4 sm:$0xff]  }
 0x130   :  { %v268_v22 = vpop.f32.mrf.mxu0 }
 0x131   :  { %v269_v24 = vadd.f32 %v268_v22, %v137_v20  ;;  %v274_v29 = vmax.f32 %v267_v23, 0.0 }
 0x132   :  { %v270_v26 = vpop.f32.mrf.mxu0 }
 0x133   :  { %v271_v27 = vadd.f32 %v270_v26, %v141_v19  ;;  %v275_v28 = vmax.f32 %v269_v24, 0.0  ;;  %v3663_v26 = vld [vmem:[#allocation5 + $0x2a0] ss:$8 sps:$4 sm:$0xff]  }
 0x135   :  { %v276_v30 = vmax.f32 %v271_v27, 0.0  ;;  %v277_v33 = vpack.c.bf16 %v275_v28, %v273_v31  ;;  %v3668_v27 = vld [vmem:[#allocation5 + $0x294] ss:$8 sps:$4 sm:$0xff]   ;;  %v3666_v28 = vld [vmem:[#allocation5 + $0x290] ss:$8 sps:$4 sm:$0xff]  }
 0x136   :  { %v3672_v31 = vld [vmem:[#allocation5 + $0x370] ss:$8 sps:$4 sm:$0xff]  }
 0x137   :  { %v278_v32 = vpack.c.bf16 %v276_v30, %v274_v29  ;;  %v3671_v29 = vld [vmem:[#allocation5 + $0x284] ss:$8 sps:$4 sm:$0xff]   ;;  %v3669_v30 = vld [vmem:[#allocation5 + $0x280] ss:$8 sps:$4 sm:$0xff]  }
 0x139   :  { %511 = vmatprep.mubr.bf16.mxu1 %v278_v32  ;;  %v3674_v32 = vld [vmem:[#allocation5 + $0x374] ss:$8 sps:$4 sm:$0xff]  }
 0x13a   :  { %512 = vmatmul.mubr.bf16.vlgmr.msra.gmra.mxu1 %v277_v33  ;;  %v3677_v33 = vld [vmem:[#allocation5 + $0x364] ss:$8 sps:$4 sm:$0xff]   ;;  %1229 = vmatprep.subr.bf16.mxu0 %v3674_v32  ;;  %v3771_v32 = vld [vmem:[#allocation8 + $0xa0] ss:$8 sps:$4 sm:$0xff]  }
 0x13b   :  { %980 = vmatpush1.bf16.msra.mxu1 %v3624_v40  ;;  %v3684_v40 = vld [vmem:[#allocation5 + $0x330] ss:$8 sps:$4 sm:$0xff]  }
 0x13c   :  { %981 = vmatprep.subr.bf16.mxu1 %v3629_v42  ;;  %v3687_v42 = vld [vmem:[#allocation5 + $0x320] ss:$8 sps:$4 sm:$0xff]  }
 0x13f   :  { %982 = vmatpush1.bf16.msra.mxu1 %v3627_v43  ;;  %v3692_v43 = vld [vmem:[#allocation5 + $0x314] ss:$8 sps:$4 sm:$0xff]  }
 0x140   :  { %983 = vmatprep.subr.bf16.mxu1 %v3632_v44  ;;  %v3690_v44 = vld [vmem:[#allocation5 + $0x310] ss:$8 sps:$4 sm:$0xff]  }
 0x143   :  { %984 = vmatpush1.bf16.msra.mxu1 %v3630_v45  ;;  %v3695_v45 = vld [vmem:[#allocation5 + $0x304] ss:$8 sps:$4 sm:$0xff]  }
 0x144   :  { %985 = vmatprep.subr.bf16.mxu1 %v3635_v46  ;;  %v3693_v46 = vld [vmem:[#allocation5 + $0x300] ss:$8 sps:$4 sm:$0xff]  }
 0x147   :  { %986 = vmatpush1.bf16.msra.mxu1 %v3633_v47  ;;  %v3698_v47 = vld [vmem:[#allocation5 + $0x3f4] ss:$8 sps:$4 sm:$0xff]  }
 0x148   :  { %987 = vmatprep.subr.bf16.mxu1 %v3638_v48  ;;  %v3696_v48 = vld [vmem:[#allocation5 + $0x3f0] ss:$8 sps:$4 sm:$0xff]  }
 0x14b   :  { %988 = vmatpush1.bf16.msra.mxu1 %v3636_v49  ;;  %v3701_v49 = vld [vmem:[#allocation5 + $0x3e4] ss:$8 sps:$4 sm:$0xff]  }
 0x14c   :  { %989 = vmatprep.subr.bf16.mxu1 %v3641_v50  ;;  %v3699_v50 = vld [vmem:[#allocation5 + $0x3e0] ss:$8 sps:$4 sm:$0xff]  }
 0x14f   :  { %990 = vmatpush1.bf16.msra.mxu1 %v3639_v51  ;;  %v3704_v51 = vld [vmem:[#allocation5 + $0x3d4] ss:$8 sps:$4 sm:$0xff]  }
 0x150   :  { %991 = vmatprep.subr.bf16.mxu1 %v3644_v52  ;;  %v3702_v52 = vld [vmem:[#allocation5 + $0x3d0] ss:$8 sps:$4 sm:$0xff]  }
 0x153   :  { %992 = vmatpush1.bf16.msra.mxu1 %v3642_v53  ;;  %v3707_v53 = vld [vmem:[#allocation5 + $0x3c4] ss:$8 sps:$4 sm:$0xff]  }
 0x154   :  { %993 = vmatprep.subr.bf16.mxu1 %v3647_v54  ;;  %v3705_v54 = vld [vmem:[#allocation5 + $0x3c0] ss:$8 sps:$4 sm:$0xff]  }
 0x157   :  { %994 = vmatpush1.bf16.msra.mxu1 %v3645_v55  ;;  %v3710_v55 = vld [vmem:[#allocation5 + $0x3b4] ss:$8 sps:$4 sm:$0xff]  }
 0x158   :  { %995 = vmatprep.subr.bf16.mxu1 %v3650_v56  ;;  %v3708_v56 = vld [vmem:[#allocation5 + $0x3b0] ss:$8 sps:$4 sm:$0xff]  }
 0x15b   :  { %996 = vmatpush2.bf16.msra.mxu1 %v3648_v57 }
 0x15c   :  { %997 = vmatprep.subr.bf16.mxu1 %v3653_v58  ;;  %v568_v58 = vrot.slane %v4256_v3, %v4246_v15 }
 0x15f   :  { %998 = vmatpush2.bf16.msra.mxu1 %v3651_v59  ;;  %v564_v59 = vrot.slane %v4258_v4, %v4246_v15 }
 0x160   :  { %999 = vmatprep.subr.bf16.mxu1 %v3656_v60 }
 0x163   :  { %1000 = vmatpush2.bf16.msra.mxu1 %v3654_v61 }
 0x164   :  { %1001 = vmatprep.subr.bf16.mxu1 %v3659_v62 }
 0x167   :  { %1002 = vmatpush2.bf16.msra.mxu1 %v3657_v63 }
 0x168   :  { %1003 = vmatprep.subr.bf16.mxu1 %v3662_v1 }
 0x16b   :  { %1004 = vmatpush2.bf16.msra.mxu1 %v3660_v2 }
 0x16c   :  { %1005 = vmatprep.subr.bf16.mxu1 %v3665_v25  ;;  %v3747_v25 = vld [vmem:[#allocation8 + $0xe0] ss:$8 sps:$4 sm:$0xff]  }
 0x16f   :  { %1006 = vmatpush2.bf16.msra.mxu1 %v3663_v26  ;;  %v3753_v26 = vld [vmem:[#allocation8 + $0xd0] ss:$8 sps:$4 sm:$0xff]  }
 0x170   :  { %1007 = vmatprep.subr.bf16.mxu1 %v3668_v27  ;;  %v3755_v27 = vld [vmem:[#allocation8 + $0xd4] ss:$8 sps:$4 sm:$0xff]  }
 0x173   :  { %1008 = vmatpush2.bf16.msra.mxu1 %v3666_v28  ;;  %v3759_v28 = vld [vmem:[#allocation8 + $0xc0] ss:$8 sps:$4 sm:$0xff]  }
 0x174   :  { %1009 = vmatprep.subr.bf16.mxu1 %v3671_v29  ;;  %v3761_v29 = vld [vmem:[#allocation8 + $0xc4] ss:$8 sps:$4 sm:$0xff]  }
 0x177   :  { %1010 = vmatpush2.bf16.msra.mxu1 %v3669_v30  ;;  %v3765_v30 = vld [vmem:[#allocation8 + $0xb0] ss:$8 sps:$4 sm:$0xff]  }
 0x1fa   :  { %v513_v5 = vpop.f32.mrf.mxu1 }
 0x1fb   :  { %v514_v12 = vadd.f32 %v513_v5, %v314_v7 }
 0x1fc   :  { %v515_v8 = vpop.f32.mrf.mxu1 }
 0x1fd   :  { %v516_v10 = vadd.f32 %v515_v8, %v318_v6  ;;  %v522_v22 = vmax.f32 %v514_v12, 0.0  ;;  %v3713_v12 = vld [vmem:[#allocation5 + $0x3a4] ss:$8 sps:$4 sm:$0xff]  }
 0x1fe   :  { %v517_v9 = vpop.f32.mrf.mxu1 }
 0x1ff   :  { %v518_v11 = vadd.f32 %v517_v9, %v314_v7  ;;  %v523_v20 = vmax.f32 %v516_v10, 0.0 }
 0x200   :  { %v519_v17 = vpop.f32.mrf.mxu1 }
 0x201   :  { %v520_v18 = vadd.f32 %v519_v17, %v318_v6  ;;  %v524_v19 = vmax.f32 %v518_v11, 0.0  ;;  %v3711_v17 = vld [vmem:[#allocation5 + $0x3a0] ss:$8 sps:$4 sm:$0xff]  }
 0x203   :  { %v525_v21 = vmax.f32 %v520_v18, 0.0  ;;  %v526_v24 = vpack.c.bf16 %v524_v19, %v522_v22  ;;  %v3716_v18 = vld [vmem:[#allocation5 + $0x394] ss:$8 sps:$4 sm:$0xff]   ;;  %v3714_v19 = vld [vmem:[#allocation5 + $0x390] ss:$8 sps:$4 sm:$0xff]  }
 0x204   :  { %v3722_v22 = vld [vmem:[#allocation5 + $0x474] ss:$8 sps:$4 sm:$0xff]  }
 0x205   :  { %v527_v23 = vpack.c.bf16 %v525_v21, %v523_v20  ;;  %v3719_v20 = vld [vmem:[#allocation5 + $0x384] ss:$8 sps:$4 sm:$0xff]   ;;  %v3717_v21 = vld [vmem:[#allocation5 + $0x380] ss:$8 sps:$4 sm:$0xff]  }
 0x207   :  { %761 = vmatprep.mubr.bf16.mxu0 %v527_v23  ;;  %v3741_v23 = vld [vmem:[#allocation8 + $0xf0] ss:$8 sps:$4 sm:$0xff]  }
 0x208   :  { %762 = vmatmul.mubr.bf16.vlgmr.msra.gmra.mxu0 %v526_v24  ;;  %v3743_v24 = vld [vmem:[#allocation8 + $0xf4] ss:$8 sps:$4 sm:$0xff]  }
 0x209   :  { %1230 = vmatpush1.bf16.msra.mxu0 %v3672_v31  ;;  %1408 = vmatprep.subr.bf16.mxu1 %v3743_v24  ;;  %v3767_v31 = vld [vmem:[#allocation8 + $0xb4] ss:$8 sps:$4 sm:$0xff]   ;;  %v3783_v24 = vld [vmem:[#allocation8 + $0x80] ss:$8 sps:$4 sm:$0xff]  }
 0x20a   :  { %1231 = vmatprep.subr.bf16.mxu0 %v3677_v33  ;;  %v3773_v33 = vld [vmem:[#allocation8 + $0xa4] ss:$8 sps:$4 sm:$0xff]  }
 0x20d   :  { %1232 = vmatpush1.bf16.msra.mxu0 %v3675_v34  ;;  %v813_v34 = vsub.s32 2, %v4243_v14 }
 0x20e   :  { %1233 = vmatprep.subr.bf16.mxu0 %v3680_v35 }
 0x211   :  { %1234 = vmatpush1.bf16.msra.mxu0 %v3678_v36  ;;  %v818_v36 = vrot.slane %v4256_v3, %v813_v34 }
 0x212   :  { %1235 = vmatprep.subr.bf16.mxu0 %v3683_v37  ;;  %v814_v37 = vrot.slane %v4258_v4, %v813_v34  ;;  %v3798_v34 = vld [vmem:[#allocation5 + $0x550] ss:$8 sps:$4 sm:$0xff]  }
 0x215   :  { %1236 = vmatpush1.bf16.msra.mxu0 %v3681_v38 }
 0x216   :  { %1237 = vmatprep.subr.bf16.mxu0 %v3686_v39 }
 0x219   :  { %1238 = vmatpush1.bf16.msra.mxu0 %v3684_v40 }
 0x21a   :  { %1239 = vmatprep.subr.bf16.mxu0 %v3689_v41 }
 0x21d   :  { %1240 = vmatpush1.bf16.msra.mxu0 %v3687_v42 }
 0x21e   :  { %1241 = vmatprep.subr.bf16.mxu0 %v3692_v43 }
 0x221   :  { %1242 = vmatpush1.bf16.msra.mxu0 %v3690_v44 }
 0x222   :  { %1243 = vmatprep.subr.bf16.mxu0 %v3695_v45 }
 0x225   :  { %1244 = vmatpush1.bf16.msra.mxu0 %v3693_v46 }
 0x226   :  { %1245 = vmatprep.subr.bf16.mxu0 %v3698_v47 }
 0x229   :  { %1246 = vmatpush2.bf16.msra.mxu0 %v3696_v48 }
 0x22a   :  { %1247 = vmatprep.subr.bf16.mxu0 %v3701_v49 }
 0x22d   :  { %1248 = vmatpush2.bf16.msra.mxu0 %v3699_v50  ;;  %v3720_v50 = vld [vmem:[#allocation5 + $0x470] ss:$8 sps:$4 sm:$0xff]  }
 0x22e   :  { %1249 = vmatprep.subr.bf16.mxu0 %v3704_v51 }
 0x231   :  { %1250 = vmatpush2.bf16.msra.mxu0 %v3702_v52  ;;  %v3725_v52 = vld [vmem:[#allocation5 + $0x464] ss:$8 sps:$4 sm:$0xff]  }
 0x232   :  { %1251 = vmatprep.subr.bf16.mxu0 %v3707_v53  ;;  %v3723_v53 = vld [vmem:[#allocation5 + $0x460] ss:$8 sps:$4 sm:$0xff]  }
 0x235   :  { %1252 = vmatpush2.bf16.msra.mxu0 %v3705_v54  ;;  %v3728_v54 = vld [vmem:[#allocation5 + $0x454] ss:$8 sps:$4 sm:$0xff]  }
 0x236   :  { %1253 = vmatprep.subr.bf16.mxu0 %v3710_v55  ;;  %v3726_v55 = vld [vmem:[#allocation5 + $0x450] ss:$8 sps:$4 sm:$0xff]  }
 0x239   :  { %1254 = vmatpush2.bf16.msra.mxu0 %v3708_v56  ;;  %v3731_v56 = vld [vmem:[#allocation5 + $0x444] ss:$8 sps:$4 sm:$0xff]  }
 0x23a   :  { %1255 = vmatprep.subr.bf16.mxu0 %v3713_v12  ;;  %v3768_v12 = vld [vmem:[#allocation5 + $0x4c0] ss:$8 sps:$4 sm:$0xff]  }
 0x23d   :  { %1256 = vmatpush2.bf16.msra.mxu0 %v3711_v17  ;;  %v3776_v17 = vld [vmem:[#allocation5 + $0x4b4] ss:$8 sps:$4 sm:$0xff]  }
 0x23e   :  { %1257 = vmatprep.subr.bf16.mxu0 %v3716_v18  ;;  %v3774_v18 = vld [vmem:[#allocation5 + $0x4b0] ss:$8 sps:$4 sm:$0xff]  }
 0x241   :  { %1258 = vmatpush2.bf16.msra.mxu0 %v3714_v19  ;;  %v3779_v19 = vld [vmem:[#allocation8 + $0x94] ss:$8 sps:$4 sm:$0xff]  }
 0x242   :  { %1259 = vmatprep.subr.bf16.mxu0 %v3719_v20  ;;  %v3777_v20 = vld [vmem:[#allocation8 + $0x90] ss:$8 sps:$4 sm:$0xff]  }
 0x245   :  { %1260 = vmatpush2.bf16.msra.mxu0 %v3717_v21  ;;  %v3782_v21 = vld [vmem:[#allocation5 + $0x4a4] ss:$8 sps:$4 sm:$0xff]  }
 0x246   :  { %1611 = vmatprep.subr.bf16.mxu0 %v3722_v22  ;;  %v3780_v22 = vld [vmem:[#allocation5 + $0x4a0] ss:$8 sps:$4 sm:$0xff]  }
 0x2c8   :  { %v763_v57 = vpop.f32.mrf.mxu0 }
 0x2c9   :  { %v764_v1 = vadd.f32 %v763_v57, %v564_v59  ;;  %v3729_v57 = vld [vmem:[#allocation5 + $0x440] ss:$8 sps:$4 sm:$0xff]  }
 0x2ca   :  { %v765_v60 = vpop.f32.mrf.mxu0 }
 0x2cb   :  { %v766_v62 = vadd.f32 %v765_v60, %v568_v58  ;;  %v772_v9 = vmax.f32 %v764_v1, 0.0  ;;  %v3737_v60 = vld [vmem:[#allocation5 + $0x424] ss:$8 sps:$4 sm:$0xff]  }
 0x2cc   :  { %v767_v61 = vpop.f32.mrf.mxu0  ;;  %v3746_v1 = vld [vmem:[#allocation5 + $0x404] ss:$8 sps:$4 sm:$0xff]  }
 0x2cd   :  { %v768_v63 = vadd.f32 %v767_v61, %v564_v59  ;;  %v773_v7 = vmax.f32 %v766_v62, 0.0  ;;  %v3732_v59 = vld [vmem:[#allocation5 + $0x430] ss:$8 sps:$4 sm:$0xff]   ;;  %v3735_v61 = vld [vmem:[#allocation5 + $0x420] ss:$8 sps:$4 sm:$0xff]  }
 0x2ce   :  { %v769_v2 = vpop.f32.mrf.mxu0  ;;  %v3740_v62 = vld [vmem:[#allocation5 + $0x414] ss:$8 sps:$4 sm:$0xff]  }
 0x2cf   :  { %v770_v5 = vadd.f32 %v769_v2, %v568_v58  ;;  %v774_v6 = vmax.f32 %v768_v63, 0.0  ;;  %v3734_v58 = vld [vmem:[#allocation5 + $0x434] ss:$8 sps:$4 sm:$0xff]   ;;  %v3738_v63 = vld [vmem:[#allocation5 + $0x410] ss:$8 sps:$4 sm:$0xff]  }
 0x2d0   :  { %v3744_v2 = vld [vmem:[#allocation5 + $0x400] ss:$8 sps:$4 sm:$0xff]  }
 0x2d1   :  { %v775_v8 = vmax.f32 %v770_v5, 0.0  ;;  %v776_v11 = vpack.c.bf16 %v774_v6, %v772_v9  ;;  %v3752_v5 = vld [vmem:[#allocation5 + $0x4f4] ss:$8 sps:$4 sm:$0xff]   ;;  %v3750_v6 = vld [vmem:[#allocation5 + $0x4f0] ss:$8 sps:$4 sm:$0xff]  }
 0x2d2   :  { %v3764_v9 = vld [vmem:[#allocation5 + $0x4d4] ss:$8 sps:$4 sm:$0xff]  }
 0x2d3   :  { %v777_v10 = vpack.c.bf16 %v775_v8, %v773_v7  ;;  %v3758_v7 = vld [vmem:[#allocation5 + $0x4e4] ss:$8 sps:$4 sm:$0xff]   ;;  %v3756_v8 = vld [vmem:[#allocation5 + $0x4e0] ss:$8 sps:$4 sm:$0xff]  }
 0x2d5   :  { %1011 = vmatprep.mubr.bf16.mxu1 %v777_v10  ;;  %v3762_v10 = vld [vmem:[#allocation5 + $0x4d0] ss:$8 sps:$4 sm:$0xff]  }
 0x2d6   :  { %1012 = vmatmul.mubr.bf16.vlgmr.msra.gmra.mxu1 %v776_v11  ;;  %v3770_v11 = vld [vmem:[#allocation5 + $0x4c4] ss:$8 sps:$4 sm:$0xff]  }
 0x2d7   :  { %1440 = vmatprep.mubr.bf16.mxu1 %v4159_v0  ;;  %1409 = vmatpush1.bf16.msra.mxu1 %v3741_v23  ;;  %v3749_v0 = vld [vmem:[#allocation8 + $0xe4] ss:$8 sps:$4 sm:$0xff]  }
 0x2d8   :  { %1410 = vmatprep.subr.bf16.mxu1 %v3749_v0  ;;  %v3785_v23 = vld [vmem:[#allocation8 + $0x84] ss:$8 sps:$4 sm:$0xff]   ;;  %v3786_v0 = vld [vmem:[#allocation5 + $0x490] ss:$8 sps:$4 sm:$0xff]  }
 0x2db   :  { %1411 = vmatpush1.bf16.msra.mxu1 %v3747_v25  ;;  %v3788_v25 = vld [vmem:[#allocation5 + $0x494] ss:$8 sps:$4 sm:$0xff]  }
 0x2dc   :  { %1412 = vmatprep.subr.bf16.mxu1 %v3755_v27  ;;  %v3791_v27 = vld [vmem:[#allocation5 + $0x484] ss:$8 sps:$4 sm:$0xff]  }
 0x2df   :  { %1413 = vmatpush1.bf16.msra.mxu1 %v3753_v26  ;;  %v4272_v26 = vld [vmem:[#allocation2] sm:$0xff]  }
 0x2e0   :  { %1414 = vmatprep.subr.bf16.mxu1 %v3761_v29  ;;  %v3792_v29 = vld [vmem:[#allocation5 + $0x570] ss:$8 sps:$4 sm:$0xff]  }
 0x2e3   :  { %1415 = vmatpush1.bf16.msra.mxu1 %v3759_v28  ;;  %v3789_v28 = vld [vmem:[#allocation5 + $0x480] ss:$8 sps:$4 sm:$0xff]  }
 0x2e4   :  { %1416 = vmatprep.subr.bf16.mxu1 %v3767_v31  ;;  %v3797_v31 = vld [vmem:[#allocation5 + $0x564] ss:$8 sps:$4 sm:$0xff]  }
 0x2e7   :  { %1417 = vmatpush1.bf16.msra.mxu1 %v3765_v30  ;;  %v3794_v30 = vld [vmem:[#allocation5 + $0x574] ss:$8 sps:$4 sm:$0xff]  }
 0x2e8   :  { %1418 = vmatprep.subr.bf16.mxu1 %v3773_v33  ;;  %v3800_v33 = vld [vmem:[#allocation5 + $0x554] ss:$8 sps:$4 sm:$0xff]  }
 0x2eb   :  { %1419 = vmatpush1.bf16.msra.mxu1 %v3771_v32  ;;  %v3795_v32 = vld [vmem:[#allocation5 + $0x560] ss:$8 sps:$4 sm:$0xff]  }
 0x2ec   :  { %1420 = vmatprep.subr.bf16.mxu1 %v3779_v19  ;;  %v3839_v19 = vld [vmem:[#allocation5 + $0x584] ss:$8 sps:$4 sm:$0xff]  }
 0x2ef   :  { %1421 = vmatpush1.bf16.msra.mxu1 %v3777_v20  ;;  %v3837_v20 = vld [vmem:[#allocation5 + $0x580] ss:$8 sps:$4 sm:$0xff]  }
 0x2f0   :  { %1422 = vmatprep.subr.bf16.mxu1 %v3785_v23  ;;  %v3845_v23 = vld [vmem:[#allocation5 + $0x664] ss:$8 sps:$4 sm:$0xff]  }
 0x2f3   :  { %1423 = vmatpush1.bf16.msra.mxu1 %v3783_v24  ;;  %v3843_v24 = vld [vmem:[#allocation5 + $0x660] ss:$8 sps:$4 sm:$0xff]  }
 0x2f4   :  { %1873 = vmatprep.subr.bf16.mxu1 %v3794_v30  ;;  %v3852_v30 = vld [vmem:[#allocation5 + $0x630] ss:$8 sps:$4 sm:$0xff]  }
 0x2f6   :  { %1441 = vmatmul.mubr.bf16.vlgmr.msra.gmra.mxu1 %v4272_v26 }
 0x2f7   :  { %1874 = vmatpush1.bf16.msra.mxu1 %v3792_v29  ;;  %v3854_v29 = vld [vmem:[#allocation5 + $0x634] ss:$8 sps:$4 sm:$0xff]  }
 0x2f8   :  { %1875 = vmatprep.subr.bf16.mxu1 %v3797_v31  ;;  %v3857_v31 = vld [vmem:[#allocation5 + $0x624] ss:$8 sps:$4 sm:$0xff]  }
 0x2fb   :  { %1876 = vmatpush1.bf16.msra.mxu1 %v3795_v32  ;;  %v3855_v32 = vld [vmem:[#allocation5 + $0x620] ss:$8 sps:$4 sm:$0xff]  }
 0x2fc   :  { %1877 = vmatprep.subr.bf16.mxu1 %v3800_v33  ;;  %v3860_v33 = vld [vmem:[#allocation5 + $0x614] ss:$8 sps:$4 sm:$0xff]  }
 0x2ff   :  { %1878 = vmatpush1.bf16.msra.mxu1 %v3798_v34  ;;  %v3858_v34 = vld [vmem:[#allocation5 + $0x610] ss:$8 sps:$4 sm:$0xff]  }
 0x396   :  { %v1013_v35 = vpop.f32.mrf.mxu1 }
 0x397   :  { %v1014_v42 = vadd.f32 %v1013_v35, %v814_v37  ;;  %v3803_v35 = vld [vmem:[#allocation5 + $0x544] ss:$8 sps:$4 sm:$0xff]  }
 0x398   :  { %v1015_v38 = vpop.f32.mrf.mxu1  ;;  %1879 = vmatprep.subr.bf16.mxu1 %v3803_v35  ;;  %v3863_v35 = vld [vmem:[#allocation5 + $0x604] ss:$8 sps:$4 sm:$0xff]  }
 0x399   :  { %v1016_v40 = vadd.f32 %v1015_v38, %v818_v36  ;;  %v1022_v48 = vmax.f32 %v1014_v42, 0.0  ;;  %v3804_v38 = vld [vmem:[#allocation5 + $0x530] ss:$8 sps:$4 sm:$0xff]  }
 0x39a   :  { %v1017_v39 = vpop.f32.mrf.mxu1  ;;  %v3810_v42 = vld [vmem:[#allocation5 + $0x510] ss:$8 sps:$4 sm:$0xff]  }
 0x39b   :  { %v1018_v41 = vadd.f32 %v1017_v39, %v814_v37  ;;  %v1023_v46 = vmax.f32 %v1016_v40, 0.0  ;;  %v3806_v37 = vld [vmem:[#allocation5 + $0x534] ss:$8 sps:$4 sm:$0xff]   ;;  %v3809_v39 = vld [vmem:[#allocation5 + $0x524] ss:$8 sps:$4 sm:$0xff]  }
 0x39c   :  { %v1019_v43 = vpop.f32.mrf.mxu1  ;;  %v3807_v40 = vld [vmem:[#allocation5 + $0x520] ss:$8 sps:$4 sm:$0xff]  }
 0x39d   :  { %v1020_v44 = vadd.f32 %v1019_v43, %v818_v36  ;;  %v1024_v45 = vmax.f32 %v1018_v41, 0.0  ;;  %v3801_v36 = vld [vmem:[#allocation5 + $0x540] ss:$8 sps:$4 sm:$0xff]   ;;  %v3812_v41 = vld [vmem:[#allocation5 + $0x514] ss:$8 sps:$4 sm:$0xff]  }
 0x39e   :  { %1880 = vmatpush1.bf16.msra.mxu1 %v3801_v36  ;;  %v3815_v43 = vld [vmem:[#allocation5 + $0x504] ss:$8 sps:$4 sm:$0xff]   ;;  %v3861_v36 = vld [vmem:[#allocation5 + $0x600] ss:$8 sps:$4 sm:$0xff]  }
 0x39f   :  { %v1025_v47 = vmax.f32 %v1020_v44, 0.0  ;;  %v1026_v51 = vpack.c.bf16 %v1024_v45, %v1022_v48  ;;  %1881 = vmatprep.subr.bf16.mxu1 %v3806_v37  ;;  %v3813_v44 = vld [vmem:[#allocation5 + $0x500] ss:$8 sps:$4 sm:$0xff]   ;;  %v3818_v45 = vld [vmem:[#allocation5 + $0x5f4] ss:$8 sps:$4 sm:$0xff]  }
 0x3a0   :  { %v3819_v48 = vld [vmem:[#allocation5 + $0x5e0] ss:$8 sps:$4 sm:$0xff]   ;;  %v3866_v37 = vld [vmem:[#allocation5 + $0x6f4] ss:$8 sps:$4 sm:$0xff]  }
 0x3a1   :  { %v1027_v49 = vpack.c.bf16 %v1025_v47, %v1023_v46  ;;  %v3816_v46 = vld [vmem:[#allocation5 + $0x5f0] ss:$8 sps:$4 sm:$0xff]   ;;  %v3821_v47 = vld [vmem:[#allocation5 + $0x5e4] ss:$8 sps:$4 sm:$0xff]  }
 0x3a2   :  { %1882 = vmatpush1.bf16.msra.mxu1 %v3804_v38  ;;  %v3864_v38 = vld [vmem:[#allocation5 + $0x6f0] ss:$8 sps:$4 sm:$0xff]  }
 0x3a3   :  { %1261 = vmatprep.mubr.bf16.mxu0 %v1027_v49  ;;  %1883 = vmatprep.subr.bf16.mxu1 %v3809_v39  ;;  %v3824_v49 = vld [vmem:[#allocation5 + $0x5d4] ss:$8 sps:$4 sm:$0xff]   ;;  %v3869_v39 = vld [vmem:[#allocation5 + $0x6e4] ss:$8 sps:$4 sm:$0xff]  }
 0x3a4   :  { %1262 = vmatmul.mubr.bf16.vlgmr.msra.gmra.mxu0 %v1026_v51  ;;  %v3825_v51 = vld [vmem:[#allocation5 + $0x5c0] ss:$8 sps:$4 sm:$0xff]  }
 0x3a5   :  { %1612 = vmatpush1.bf16.msra.mxu0 %v3720_v50  ;;  %v3822_v50 = vld [vmem:[#allocation5 + $0x5d0] ss:$8 sps:$4 sm:$0xff]  }
 0x3a6   :  { %1613 = vmatprep.subr.bf16.mxu0 %v3725_v52  ;;  %1884 = vmatpush1.bf16.msra.mxu1 %v3807_v40  ;;  %v3827_v52 = vld [vmem:[#allocation5 + $0x5c4] ss:$8 sps:$4 sm:$0xff]   ;;  %v3867_v40 = vld [vmem:[#allocation5 + $0x6e0] ss:$8 sps:$4 sm:$0xff]  }
 0x3a7   :  { %1885 = vmatprep.subr.bf16.mxu1 %v3812_v41  ;;  %v3872_v41 = vld [vmem:[#allocation5 + $0x6d4] ss:$8 sps:$4 sm:$0xff]  }
 0x3a9   :  { %1614 = vmatpush1.bf16.msra.mxu0 %v3723_v53  ;;  %v1063_v53 = vsub.s32 3, %v4243_v14 }
 0x3aa   :  { %1615 = vmatprep.subr.bf16.mxu0 %v3728_v54  ;;  %1886 = vmatpush1.bf16.msra.mxu1 %v3810_v42  ;;  %v3870_v42 = vld [vmem:[#allocation5 + $0x6d0] ss:$8 sps:$4 sm:$0xff]  }
 0x3ab   :  { %1887 = vmatprep.subr.bf16.mxu1 %v3815_v43  ;;  %v3875_v43 = vld [vmem:[#allocation5 + $0x6c4] ss:$8 sps:$4 sm:$0xff]  }
 0x3ad   :  { %1616 = vmatpush1.bf16.msra.mxu0 %v3726_v55  ;;  %v1068_v55 = vrot.slane %v4256_v3, %v1063_v53 }
 0x3ae   :  { %1617 = vmatprep.subr.bf16.mxu0 %v3731_v56  ;;  %1888 = vmatpush1.bf16.msra.mxu1 %v3813_v44  ;;  %v1064_v56 = vrot.slane %v4258_v4, %v1063_v53  ;;  %v3873_v44 = vld [vmem:[#allocation5 + $0x6c0] ss:$8 sps:$4 sm:$0xff]  }
 0x3af   :  { %1889 = vmatprep.subr.bf16.mxu1 %v3818_v45  ;;  %v3878_v45 = vld [vmem:[#allocation5 + $0x6b4] ss:$8 sps:$4 sm:$0xff]  }
 0x3b1   :  { %1618 = vmatpush1.bf16.msra.mxu0 %v3729_v57 }
 0x3b2   :  { %1619 = vmatprep.subr.bf16.mxu0 %v3734_v58  ;;  %1890 = vmatpush2.bf16.msra.mxu1 %v3816_v46  ;;  %v3876_v46 = vld [vmem:[#allocation5 + $0x6b0] ss:$8 sps:$4 sm:$0xff]  }
 0x3b3   :  { %1891 = vmatprep.subr.bf16.mxu1 %v3821_v47 }
 0x3b5   :  { %1620 = vmatpush1.bf16.msra.mxu0 %v3732_v59 }
 0x3b6   :  { %1621 = vmatprep.subr.bf16.mxu0 %v3737_v60  ;;  %1892 = vmatpush2.bf16.msra.mxu1 %v3819_v48  ;;  %v1442_v47 = vpop.f32.mrf.mxu1 }
 0x3b7   :  { %1893 = vmatprep.subr.bf16.mxu1 %v3824_v49 }
 0x3b8   :  { %v1444_v48 = vpop.f32.mrf.mxu1 }
 0x3b9   :  { %1622 = vmatpush1.bf16.msra.mxu0 %v3735_v61 }
 0x3ba   :  { %1623 = vmatprep.subr.bf16.mxu0 %v3740_v62  ;;  %1894 = vmatpush2.bf16.msra.mxu1 %v3822_v50  ;;  %v1656_v50 = vsub.s32 4, %v4243_v14 }
 0x3bb   :  { %1895 = vmatprep.subr.bf16.mxu1 %v3827_v52 }
 0x3bd   :  { %1624 = vmatpush1.bf16.msra.mxu0 %v3738_v63 }
 0x3be   :  { %1625 = vmatprep.subr.bf16.mxu0 %v3746_v1  ;;  %1896 = vmatpush2.bf16.msra.mxu1 %v3825_v51  ;;  %v1446_v51 = vpop.f32.mrf.mxu1 }
 0x3c1   :  { %1626 = vmatpush1.bf16.msra.mxu0 %v3744_v2 }
 0x3c2   :  { %1627 = vmatprep.subr.bf16.mxu0 %v3752_v5 }
 0x3c5   :  { %1628 = vmatpush2.bf16.msra.mxu0 %v3750_v6 }
 0x3c6   :  { %1629 = vmatprep.subr.bf16.mxu0 %v3758_v7 }
 0x3c9   :  { %1630 = vmatpush2.bf16.msra.mxu0 %v3756_v8 }
 0x3ca   :  { %1631 = vmatprep.subr.bf16.mxu0 %v3764_v9  ;;  %v3830_v9 = vld [vmem:[#allocation5 + $0x5b4] ss:$8 sps:$4 sm:$0xff]  }
 0x3cb   :  { %1897 = vmatprep.subr.bf16.mxu1 %v3830_v9 }
 0x3cd   :  { %1632 = vmatpush2.bf16.msra.mxu0 %v3762_v10  ;;  %v3828_v10 = vld [vmem:[#allocation5 + $0x5b0] ss:$8 sps:$4 sm:$0xff]  }
 0x3ce   :  { %1633 = vmatprep.subr.bf16.mxu0 %v3770_v11  ;;  %1898 = vmatpush2.bf16.msra.mxu1 %v3828_v10  ;;  %v3833_v11 = vld [vmem:[#allocation5 + $0x5a4] ss:$8 sps:$4 sm:$0xff]  }
 0x3cf   :  { %1899 = vmatprep.subr.bf16.mxu1 %v3833_v11  ;;  %v3881_v11 = vld [vmem:[#allocation5 + $0x6a4] ss:$8 sps:$4 sm:$0xff]  }
 0x3d1   :  { %1634 = vmatpush2.bf16.msra.mxu0 %v3768_v12  ;;  %v3831_v12 = vld [vmem:[#allocation5 + $0x5a0] ss:$8 sps:$4 sm:$0xff]  }
 0x3d2   :  { %1635 = vmatprep.subr.bf16.mxu0 %v3776_v17  ;;  %1900 = vmatpush2.bf16.msra.mxu1 %v3831_v12  ;;  %v3836_v17 = vld [vmem:[#allocation5 + $0x594] ss:$8 sps:$4 sm:$0xff]   ;;  %v3879_v12 = vld [vmem:[#allocation5 + $0x6a0] ss:$8 sps:$4 sm:$0xff]  }
 0x3d3   :  { %1901 = vmatprep.subr.bf16.mxu1 %v3836_v17  ;;  %v3884_v17 = vld [vmem:[#allocation5 + $0x694] ss:$8 sps:$4 sm:$0xff]  }
 0x3d5   :  { %1636 = vmatpush2.bf16.msra.mxu0 %v3774_v18  ;;  %v3834_v18 = vld [vmem:[#allocation5 + $0x590] ss:$8 sps:$4 sm:$0xff]  }
 0x3d6   :  { %1637 = vmatprep.subr.bf16.mxu0 %v3782_v21  ;;  %1902 = vmatpush2.bf16.msra.mxu1 %v3834_v18  ;;  %v3840_v21 = vld [vmem:[#allocation5 + $0x670] ss:$8 sps:$4 sm:$0xff]  }
 0x3d7   :  { %1903 = vmatprep.subr.bf16.mxu1 %v3839_v19  ;;  %v3882_v18 = vld [vmem:[#allocation5 + $0x690] ss:$8 sps:$4 sm:$0xff]   ;;  %v3887_v19 = vld [vmem:[#allocation5 + $0x684] ss:$8 sps:$4 sm:$0xff]  }
 0x3d9   :  { %1638 = vmatpush2.bf16.msra.mxu0 %v3780_v22  ;;  %v3842_v22 = vld [vmem:[#allocation5 + $0x674] ss:$8 sps:$4 sm:$0xff]  }
 0x3da   :  { %1639 = vmatprep.subr.bf16.mxu0 %v3788_v25  ;;  %1904 = vmatpush2.bf16.msra.mxu1 %v3837_v20  ;;  %v3848_v25 = vld [vmem:[#allocation5 + $0x654] ss:$8 sps:$4 sm:$0xff]   ;;  %v3885_v20 = vld [vmem:[#allocation5 + $0x680] ss:$8 sps:$4 sm:$0xff]  }
 0x3dd   :  { %1640 = vmatpush2.bf16.msra.mxu0 %v3786_v0  ;;  %v3846_v0 = vld [vmem:[#allocation5 + $0x650] ss:$8 sps:$4 sm:$0xff]  }
 0x3de   :  { %1641 = vmatprep.subr.bf16.mxu0 %v3791_v27  ;;  %v3851_v27 = vld [vmem:[#allocation5 + $0x644] ss:$8 sps:$4 sm:$0xff]  }
 0x3e1   :  { %1642 = vmatpush2.bf16.msra.mxu0 %v3789_v28  ;;  %v3849_v28 = vld [vmem:[#allocation5 + $0x640] ss:$8 sps:$4 sm:$0xff]  }
 0x3e2   :  { %2123 = vmatprep.subr.bf16.mxu0 %v3842_v22  ;;  %v3890_v22 = vld [vmem:[#allocation5 + $0x774] ss:$8 sps:$4 sm:$0xff]  }
 0x3e3   :  { %2373 = vmatprep.subr.bf16.mxu1 %v3890_v22 }
 0x464   :  { %v1263_v54 = vpop.f32.mrf.mxu0 }
 0x465   :  { %v1264_v61 = vadd.f32 %v1263_v54, %v1064_v56  ;;  %v1661_v54 = vrot.slane %v4256_v3, %v1656_v50 }
 0x466   :  { %v1265_v57 = vpop.f32.mrf.mxu0 }
 0x467   :  { %v1266_v59 = vadd.f32 %v1265_v57, %v1068_v55  ;;  %v1272_v6 = vmax.f32 %v1264_v61, 0.0 }
 0x468   :  { %v1267_v58 = vpop.f32.mrf.mxu0 }
 0x469   :  { %v1268_v60 = vadd.f32 %v1267_v58, %v1064_v56  ;;  %v1273_v2 = vmax.f32 %v1266_v59, 0.0  ;;  %v1657_v56 = vrot.slane %v4258_v4, %v1656_v50  ;;  %v1448_v59 = vpop.f32.mrf.mxu1 }
 0x46a   :  { %v1269_v62 = vpop.f32.mrf.mxu0 }
 0x46b   :  { %v1270_v63 = vadd.f32 %v1269_v62, %v1068_v55  ;;  %v1274_v1 = vmax.f32 %v1268_v60, 0.0 }
 0x46d   :  { %v1275_v5 = vmax.f32 %v1270_v63, 0.0  ;;  %v1276_v8 = vpack.c.bf16 %v1274_v1, %v1272_v6 }
 0x46f   :  { %v1277_v7 = vpack.c.bf16 %v1275_v5, %v1273_v2 }
 0x471   :  { %1643 = vmatprep.mubr.bf16.mxu0 %v1277_v7 }
 0x472   :  { %1644 = vmatmul.mubr.bf16.vlgmr.msra.gmra.mxu0 %v1276_v8 }
 0x473   :  { %2124 = vmatpush1.bf16.msra.mxu0 %v3840_v21  ;;  %v3888_v21 = vld [vmem:[#allocation5 + $0x770] ss:$8 sps:$4 sm:$0xff]  }
 0x474   :  { %2125 = vmatprep.subr.bf16.mxu0 %v3845_v23  ;;  %v3893_v23 = vld [vmem:[#allocation5 + $0x764] ss:$8 sps:$4 sm:$0xff]  }
 0x477   :  { %2126 = vmatpush1.bf16.msra.mxu0 %v3843_v24  ;;  %v3891_v24 = vld [vmem:[#allocation5 + $0x760] ss:$8 sps:$4 sm:$0xff]  }
 0x478   :  { %2127 = vmatprep.subr.bf16.mxu0 %v3848_v25  ;;  %v3896_v25 = vld [vmem:[#allocation5 + $0x754] ss:$8 sps:$4 sm:$0xff]  }
 0x47b   :  { %2128 = vmatpush1.bf16.msra.mxu0 %v3846_v0  ;;  %v3894_v0 = vld [vmem:[#allocation5 + $0x750] ss:$8 sps:$4 sm:$0xff]  }
 0x47c   :  { %2129 = vmatprep.subr.bf16.mxu0 %v3851_v27  ;;  %v3899_v27 = vld [vmem:[#allocation5 + $0x744] ss:$8 sps:$4 sm:$0xff]  }
 0x47f   :  { %2130 = vmatpush1.bf16.msra.mxu0 %v3849_v28  ;;  %v3897_v28 = vld [vmem:[#allocation5 + $0x740] ss:$8 sps:$4 sm:$0xff]  }
 0x480   :  { %2131 = vmatprep.subr.bf16.mxu0 %v3854_v29  ;;  %v3902_v29 = vld [vmem:[#allocation5 + $0x734] ss:$8 sps:$4 sm:$0xff]  }
 0x483   :  { %2132 = vmatpush1.bf16.msra.mxu0 %v3852_v30  ;;  %v3900_v30 = vld [vmem:[#allocation5 + $0x730] ss:$8 sps:$4 sm:$0xff]  }
 0x484   :  { %2133 = vmatprep.subr.bf16.mxu0 %v3857_v31  ;;  %v3905_v31 = vld [vmem:[#allocation5 + $0x724] ss:$8 sps:$4 sm:$0xff]  }
 0x487   :  { %2134 = vmatpush1.bf16.msra.mxu0 %v3855_v32  ;;  %v3903_v32 = vld [vmem:[#allocation5 + $0x720] ss:$8 sps:$4 sm:$0xff]  }
 0x488   :  { %2135 = vmatprep.subr.bf16.mxu0 %v3860_v33  ;;  %v3908_v33 = vld [vmem:[#allocation5 + $0x714] ss:$8 sps:$4 sm:$0xff]  }
 0x48b   :  { %2136 = vmatpush1.bf16.msra.mxu0 %v3858_v34  ;;  %v3906_v34 = vld [vmem:[#allocation5 + $0x710] ss:$8 sps:$4 sm:$0xff]  }
 0x48c   :  { %2137 = vmatprep.subr.bf16.mxu0 %v3863_v35  ;;  %v3911_v35 = vld [vmem:[#allocation5 + $0x704] ss:$8 sps:$4 sm:$0xff]  }
 0x48f   :  { %2138 = vmatpush1.bf16.msra.mxu0 %v3861_v36  ;;  %v3909_v36 = vld [vmem:[#allocation5 + $0x700] ss:$8 sps:$4 sm:$0xff]  }
 0x490   :  { %2139 = vmatprep.subr.bf16.mxu0 %v3866_v37  ;;  %v3914_v37 = vld [vmem:[#allocation5 + $0x7f4] ss:$8 sps:$4 sm:$0xff]  }
 0x493   :  { %2140 = vmatpush2.bf16.msra.mxu0 %v3864_v38  ;;  %v3912_v38 = vld [vmem:[#allocation5 + $0x7f0] ss:$8 sps:$4 sm:$0xff]  }
 0x494   :  { %2141 = vmatprep.subr.bf16.mxu0 %v3869_v39  ;;  %v3917_v39 = vld [vmem:[#allocation5 + $0x7e4] ss:$8 sps:$4 sm:$0xff]  }
 0x497   :  { %2142 = vmatpush2.bf16.msra.mxu0 %v3867_v40  ;;  %v3915_v40 = vld [vmem:[#allocation5 + $0x7e0] ss:$8 sps:$4 sm:$0xff]  }
 0x498   :  { %2143 = vmatprep.subr.bf16.mxu0 %v3872_v41  ;;  %v3920_v41 = vld [vmem:[#allocation5 + $0x7d4] ss:$8 sps:$4 sm:$0xff]  }
 0x49b   :  { %2144 = vmatpush2.bf16.msra.mxu0 %v3870_v42  ;;  %v3918_v42 = vld [vmem:[#allocation5 + $0x7d0] ss:$8 sps:$4 sm:$0xff]  }
 0x49c   :  { %2145 = vmatprep.subr.bf16.mxu0 %v3875_v43  ;;  %v3923_v43 = vld [vmem:[#allocation5 + $0x7c4] ss:$8 sps:$4 sm:$0xff]  }
 0x49f   :  { %2146 = vmatpush2.bf16.msra.mxu0 %v3873_v44  ;;  %v3921_v44 = vld [vmem:[#allocation5 + $0x7c0] ss:$8 sps:$4 sm:$0xff]  }
 0x4a0   :  { %2147 = vmatprep.subr.bf16.mxu0 %v3878_v45  ;;  %v3926_v45 = vld [vmem:[#allocation5 + $0x7b4] ss:$8 sps:$4 sm:$0xff]  }
 0x4a3   :  { %2148 = vmatpush2.bf16.msra.mxu0 %v3876_v46  ;;  %v3924_v46 = vld [vmem:[#allocation5 + $0x7b0] ss:$8 sps:$4 sm:$0xff]  }
 0x4a4   :  { %2149 = vmatprep.subr.bf16.mxu0 %v3881_v11  ;;  %v3942_v11 = vld [vmem:[#allocation11 + $0x28] sm:$0xff]  }
 0x4a7   :  { %2150 = vmatpush2.bf16.msra.mxu0 %v3879_v12  ;;  %v3945_v12 = vld [vmem:[#allocation11 + $0x20] sm:$0xff]  }
 0x4a8   :  { %2151 = vmatprep.subr.bf16.mxu0 %v3884_v17  ;;  %v3948_v17 = vld [vmem:[#allocation11 + $0x18] sm:$0xff]  }
 0x4ab   :  { %2152 = vmatpush2.bf16.msra.mxu0 %v3882_v18  ;;  %v3951_v18 = vld [vmem:[#allocation11 + $0x10] sm:$0xff]  }
 0x4ac   :  { %2153 = vmatprep.subr.bf16.mxu0 %v3887_v19  ;;  %v1957_v19 = vsub.s32 6, %v4243_v14 }
 0x4af   :  { %2154 = vmatpush2.bf16.msra.mxu0 %v3885_v20 }
 0x532   :  { %v1645_v49 = vpop.f32.mrf.mxu0 }
 0x533   :  { %v1646_v55 = vadd.f32 %v1645_v49, %v1442_v47  ;;  %v1707_v47 = vsub.s32 5, %v4243_v14 }
 0x534   :  { %v1647_v52 = vpop.f32.mrf.mxu0 }
 0x535   :  { %v1648_v53 = vadd.f32 %v1647_v52, %v1444_v48  ;;  %v1662_v1 = vadd.f32 %v1657_v56, %v1646_v55  ;;  %v1712_v49 = vrot.slane %v4256_v3, %v1707_v47  ;;  %v1708_v50 = vrot.slane %v4258_v4, %v1707_v47  ;;  %v3932_v3 = vld [vmem:[#allocation5 + $0x794] ss:$8 sps:$4 sm:$0xff]   ;;  %v3930_v4 = vld [vmem:[#allocation5 + $0x790] ss:$8 sps:$4 sm:$0xff]   ;;  %v3952_v47 = vld [vmem:[#allocation10 + $0x50] sm:$0xff]  }
 0x536   :  { %v1649_v57 = vpop.f32.mrf.mxu0 }
 0x537   :  { %v1650_v58 = vadd.f32 %v1649_v57, %v1446_v51  ;;  %v1663_v61 = vadd.f32 %v1661_v54, %v1648_v53  ;;  %v1666_v8 = vmax.f32 %v1662_v1, 0.0  ;;  %v3929_v1 = vld [vmem:[#allocation5 + $0x7a4] ss:$8 sps:$4 sm:$0xff]  }
 0x538   :  { %v1651_v60 = vpop.f32.mrf.mxu0 }
 0x539   :  { %v1664_v62 = vadd.f32 %v1657_v56, %v1650_v58  ;;  %v1652_v63 = vadd.f32 %v1651_v60, %v1448_v59  ;;  %v1667_v6 = vmax.f32 %v1663_v61, 0.0 }
 0x53b   :  { %v1665_v2 = vadd.f32 %v1661_v54, %v1652_v63  ;;  %v1668_v5 = vmax.f32 %v1664_v62, 0.0 }
 0x53d   :  { %v1669_v7 = vmax.f32 %v1665_v2, 0.0  ;;  %v1670_v10 = vpack.c.bf16 %v1668_v5, %v1666_v8  ;;  %v3927_v2 = vld [vmem:[#allocation5 + $0x7a0] ss:$8 sps:$4 sm:$0xff]   ;;  %v3935_v5 = vld [vmem:[#allocation5 + $0x784] ss:$8 sps:$4 sm:$0xff]  }
 0x53e   :  { %v3937_v8 = vld [vmem:[#allocation10 + $0x78] sm:$0xff]  }
 0x53f   :  { %v1671_v9 = vpack.c.bf16 %v1669_v7, %v1667_v6  ;;  %v3933_v6 = vld [vmem:[#allocation5 + $0x780] ss:$8 sps:$4 sm:$0xff]  }
 0x540   :  { %v3936_v7 = vld [vmem:[#allocation11 + $0x38] sm:$0xff]  }
 0x541   :  { %1905 = vmatprep.mubr.bf16.mxu1 %v1671_v9  ;;  %v4160_v9 = vmov 0.0  }
 0x542   :  { %1906 = vmatmul.mubr.bf16.vlgmr.msra.gmra.mxu1 %v1670_v10  ;;  %3449 = vmatprep.subr.bf16.mxu0 %v4160_v9  ;;  %v3939_v10 = vld [vmem:[#allocation11 + $0x30] sm:$0xff]  }
 0x543   :  { %2374 = vmatpush1.bf16.msra.mxu1 %v3888_v21  ;;  %v4292_v21 = vld [vmem:[#allocation7 + $0x8] sm:$0xff] }
 0x544   :  { %2375 = vmatprep.subr.bf16.mxu1 %v3893_v23  ;;  %v1962_v22 = vrot.slane %v4292_v21, %v1957_v19  ;;  %v4295_v23 = vld [vmem:[#allocation7] sm:$0xff] }
 0x547   :  { %2376 = vmatpush1.bf16.msra.mxu1 %v3891_v24  ;;  %v1958_v24 = vrot.slane %v4295_v23, %v1957_v19  ;;  %v3967_v19 = vld [vmem:[#allocation10 + $0xa0] sm:$0xff]  }
 0x548   :  { %2377 = vmatprep.subr.bf16.mxu1 %v3896_v25 }
 0x54b   :  { %2378 = vmatpush1.bf16.msra.mxu1 %v3894_v0 }
 0x54c   :  { %2379 = vmatprep.subr.bf16.mxu1 %v3899_v27 }
 0x54f   :  { %2380 = vmatpush1.bf16.msra.mxu1 %v3897_v28 }
 0x550   :  { %2381 = vmatprep.subr.bf16.mxu1 %v3902_v29 }
 0x553   :  { %2382 = vmatpush1.bf16.msra.mxu1 %v3900_v30 }
 0x554   :  { %2383 = vmatprep.subr.bf16.mxu1 %v3905_v31 }
 0x557   :  { %2384 = vmatpush1.bf16.msra.mxu1 %v3903_v32 }
 0x558   :  { %2385 = vmatprep.subr.bf16.mxu1 %v3908_v33 }
 0x55b   :  { %2386 = vmatpush1.bf16.msra.mxu1 %v3906_v34 }
 0x55c   :  { %2387 = vmatprep.subr.bf16.mxu1 %v3911_v35 }
 0x55f   :  { %2388 = vmatpush1.bf16.msra.mxu1 %v3909_v36 }
 0x560   :  { %2389 = vmatprep.subr.bf16.mxu1 %v3914_v37  ;;  %v3938_v37 = vld [vmem:[#allocation10 + $0x38] sm:$0xff]  }
 0x563   :  { %2390 = vmatpush2.bf16.msra.mxu1 %v3912_v38 }
 0x564   :  { %2391 = vmatprep.subr.bf16.mxu1 %v3917_v39  ;;  %v3940_v39 = vld [vmem:[#allocation10 + $0x70] sm:$0xff]  }
 0x567   :  { %2392 = vmatpush2.bf16.msra.mxu1 %v3915_v40  ;;  %v3941_v40 = vld [vmem:[#allocation10 + $0x30] sm:$0xff]  }
 0x568   :  { %2393 = vmatprep.subr.bf16.mxu1 %v3920_v41  ;;  %v3943_v41 = vld [vmem:[#allocation10 + $0x68] sm:$0xff]  }
 0x56b   :  { %2394 = vmatpush2.bf16.msra.mxu1 %v3918_v42  ;;  %v3944_v42 = vld [vmem:[#allocation10 + $0x28] sm:$0xff]  }
 0x56c   :  { %2395 = vmatprep.subr.bf16.mxu1 %v3923_v43  ;;  %v3946_v43 = vld [vmem:[#allocation10 + $0x60] sm:$0xff]  }
 0x56f   :  { %2396 = vmatpush2.bf16.msra.mxu1 %v3921_v44  ;;  %v3947_v44 = vld [vmem:[#allocation10 + $0x20] sm:$0xff]  }
 0x570   :  { %2397 = vmatprep.subr.bf16.mxu1 %v3926_v45  ;;  %v3949_v45 = vld [vmem:[#allocation10 + $0x58] sm:$0xff]  }
 0x573   :  { %2398 = vmatpush2.bf16.msra.mxu1 %v3924_v46  ;;  %v3950_v46 = vld [vmem:[#allocation10 + $0x18] sm:$0xff]  }
 0x574   :  { %2399 = vmatprep.subr.bf16.mxu1 %v3929_v1 }
 0x577   :  { %2400 = vmatpush2.bf16.msra.mxu1 %v3927_v2 }
 0x578   :  { %2401 = vmatprep.subr.bf16.mxu1 %v3932_v3 }
 0x57b   :  { %2402 = vmatpush2.bf16.msra.mxu1 %v3930_v4 }
 0x57c   :  { %2403 = vmatprep.subr.bf16.mxu1 %v3935_v5 }
 0x57f   :  { %2404 = vmatpush2.bf16.msra.mxu1 %v3933_v6 }
 0x580   :  { %3396 = vmatprep.subr.bf16.mxu1 %v3937_v8  ;;  %v3961_v8 = vld [vmem:[#allocation10 + $0xb8] sm:$0xff]  }
 0x602   :  { %v1907_v48 = vpop.f32.mrf.mxu1 }
 0x603   :  { %v1908_v55 = vadd.f32 %v1907_v48, %v1708_v50  ;;  %v3953_v48 = vld [vmem:[#allocation10 + $0x10] sm:$0xff]  }
 0x604   :  { %v1909_v51 = vpop.f32.mrf.mxu1 }
 0x605   :  { %v1910_v53 = vadd.f32 %v1909_v51, %v1712_v49  ;;  %v1916_v61 = vmax.f32 %v1908_v55, 0.0  ;;  %v3956_v51 = vld [vmem:[#allocation10 + $0x8] sm:$0xff]   ;;  %v3960_v55 = vld [vmem:[#allocation10 + $0xf8] sm:$0xff]  }
 0x606   :  { %v1911_v52 = vpop.f32.mrf.mxu1 }
 0x607   :  { %v1912_v54 = vadd.f32 %v1911_v52, %v1708_v50  ;;  %v1917_v59 = vmax.f32 %v1910_v53, 0.0  ;;  %v3955_v50 = vld [vmem:[#allocation10 + $0x48] sm:$0xff]   ;;  %v3957_v52 = vld [vmem:[#allocation11] sm:$0xff]  }
 0x608   :  { %v1913_v56 = vpop.f32.mrf.mxu1  ;;  %v3958_v53 = vld [vmem:[#allocation10 + $0x40] sm:$0xff]  }
 0x609   :  { %v1914_v57 = vadd.f32 %v1913_v56, %v1712_v49  ;;  %v1918_v58 = vmax.f32 %v1912_v54, 0.0  ;;  %v3954_v49 = vld [vmem:[#allocation11 + $0x8] sm:$0xff]   ;;  %v3959_v54 = vld [vmem:[#allocation10] sm:$0xff]   ;;  %v3976_v56 = vld [vmem:[#allocation11 + $0x78] sm:$0xff]  }
 0x60b   :  { %v1919_v60 = vmax.f32 %v1914_v57, 0.0  ;;  %v1920_v63 = vpack.c.bf16 %v1918_v58, %v1916_v61  ;;  %v3977_v57 = vld [vmem:[#allocation11 + $0x70] sm:$0xff]   ;;  %v3978_v58 = vld [vmem:[#allocation11 + $0x68] sm:$0xff]  }
 0x60d   :  { %v1921_v62 = vpack.c.bf16 %v1919_v60, %v1917_v59  ;;  %v3979_v59 = vld [vmem:[#allocation11 + $0x60] sm:$0xff]  }
 0x60f   :  { %2155 = vmatprep.mubr.bf16.mxu0 %v1921_v62 }
 0x610   :  { %2156 = vmatmul.mubr.bf16.vlgmr.msra.gmra.mxu0 %v1920_v63 }
 0x611   :  { %3450 = vmatpush3.bf16.msra.mxu0 %v3936_v7  ;;  %3465 = vmatprep.mubr.msk.bf16.mxu0 %vm4161_vm0, %v4160_v9 }
 0x612   :  { %3451 = vmatprep.subr.bf16.mxu0 %v4160_v9 }
 0x615   :  { %3452 = vmatpush3.bf16.msra.mxu0 %v3939_v10 }
 0x616   :  { %3453 = vmatprep.subr.bf16.mxu0 %v4160_v9 }
 0x619   :  { %3454 = vmatpush3.bf16.msra.mxu0 %v3942_v11  ;;  %v3962_v11 = vld [vmem:[#allocation10 + $0xf0] sm:$0xff]  }
 0x61a   :  { %3455 = vmatprep.subr.bf16.mxu0 %v4160_v9 }
 0x61d   :  { %3456 = vmatpush3.bf16.msra.mxu0 %v3945_v12  ;;  %v3964_v12 = vld [vmem:[#allocation10 + $0xe8] sm:$0xff]  }
 0x61e   :  { %3457 = vmatprep.subr.bf16.mxu0 %v4160_v9 }
 0x621   :  { %3458 = vmatpush3.bf16.msra.mxu0 %v3948_v17  ;;  %v3965_v17 = vld [vmem:[#allocation10 + $0xa8] sm:$0xff]  }
 0x622   :  { %3459 = vmatprep.subr.bf16.mxu0 %v4160_v9 }
 0x625   :  { %3460 = vmatpush3.bf16.msra.mxu0 %v3951_v18  ;;  %v3966_v18 = vld [vmem:[#allocation10 + $0xe0] sm:$0xff]  }
 0x626   :  { %3461 = vmatprep.subr.bf16.mxu0 %v4160_v9 }
 0x629   :  { %3462 = vmatpush3.bf16.msra.mxu0 %v3954_v49 }
 0x62a   :  { %3463 = vmatprep.subr.bf16.mxu0 %v4160_v9 }
 0x62d   :  { %3464 = vmatpush3.bf16.msra.mxu0 %v3957_v52  ;;  %v4326_v52 = vand.u32 127, %v134_v13 }
 0x62e   :  { %3469 = vmatprep.subr.bf16.mxu0 %v4160_v9 }
 0x62f   :  { %vm2985_vm1 = vcmp.ge.s32.totalorder %v4326_v52, 1  ;;  %vm2986_vm2 = vcmp.le.s32.totalorder %v4326_v52, 3  ;;  %vm3019_vm4 = vcmp.ge.s32.totalorder %v4326_v52, 4  ;;  %vm3020_vm5 = vcmp.le.s32.totalorder %v4326_v52, 6 }
 0x630   :  { %3466 = vmatmul.mubr.bf16.vlgmr.msra.gmra.mxu0 %v4272_v26  ;;  %v2207_v26 = vsub.s32 7, %v4243_v14  ;;  %v3963_v14 = vld [vmem:[#allocation10 + $0xb0] sm:$0xff]   ;;  %vm4331_vm3 = vmand %vm2985_vm1, %vm2986_vm2  ;;  %vm3012_vm7 = vcmp.eq.s32.totalorder %v4326_v52, 0 }
 0x631   :  { %3485 = vmatprep.mubr.msk.bf16.mxu0 %vm4161_vm0, %v4160_v9  ;;  %3470 = vmatpush3.bf16.msra.mxu0 %v3976_v56  ;;  %vm4341_vm6 = vmand %vm3019_vm4, %vm3020_vm5 }
 0x632   :  { %3471 = vmatprep.subr.bf16.mxu0 %v4160_v9  ;;  %v2212_v62 = vrot.slane %v4292_v21, %v2207_v26  ;;  %v2208_v63 = vrot.slane %v4295_v23, %v2207_v26  ;;  %v3969_v21 = vld [vmem:[#allocation10 + $0x98] sm:$0xff]   ;;  %v3971_v23 = vld [vmem:[#allocation10 + $0x90] sm:$0xff]  }
 0x635   :  { %3472 = vmatpush3.bf16.msra.mxu0 %v3977_v57 }
 0x636   :  { %3473 = vmatprep.subr.bf16.mxu0 %v4160_v9 }
 0x639   :  { %3474 = vmatpush3.bf16.msra.mxu0 %v3978_v58 }
 0x63a   :  { %3475 = vmatprep.subr.bf16.mxu0 %v4160_v9 }
 0x63d   :  { %3476 = vmatpush3.bf16.msra.mxu0 %v3979_v59 }
 0x63e   :  { %3477 = vmatprep.subr.bf16.mxu0 %v4160_v9 }
 0x6d0   :  { %v2157_v20 = vpop.f32.mrf.mxu0 }
 0x6d1   :  { %v2158_v29 = vadd.f32 %v2157_v20, %v1958_v24  ;;  %v3968_v20 = vld [vmem:[#allocation10 + $0xd8] sm:$0xff]  }
 0x6d2   :  { %v2159_v25 = vpop.f32.mrf.mxu0 }
 0x6d3   :  { %v2160_v27 = vadd.f32 %v2159_v25, %v1962_v22  ;;  %v2166_v35 = vmax.f32 %v2158_v29, 0.0  ;;  %v3973_v25 = vld [vmem:[#allocation10 + $0x88] sm:$0xff]  }
 0x6d4   :  { %v2161_v0 = vpop.f32.mrf.mxu0 }
 0x6d5   :  { %v2162_v28 = vadd.f32 %v2161_v0, %v1958_v24  ;;  %v2167_v33 = vmax.f32 %v2160_v27, 0.0  ;;  %v3972_v24 = vld [vmem:[#allocation10 + $0xc8] sm:$0xff]   ;;  %v3974_v0 = vld [vmem:[#allocation10 + $0xc0] sm:$0xff]  }
 0x6d6   :  { %v2163_v30 = vpop.f32.mrf.mxu0  ;;  %v3975_v27 = vld [vmem:[#allocation10 + $0x80] sm:$0xff]  }
 0x6d7   :  { %v2164_v31 = vadd.f32 %v2163_v30, %v1962_v22  ;;  %v2168_v32 = vmax.f32 %v2162_v28, 0.0  ;;  %v3970_v22 = vld [vmem:[#allocation10 + $0xd0] sm:$0xff]   ;;  %v3980_v30 = vld [vmem:[#allocation11 + $0x58] sm:$0xff]  }
 0x6d8   :  { %3478 = vmatpush3.bf16.msra.mxu0 %v3980_v30 }
 0x6d9   :  { %v2169_v34 = vmax.f32 %v2164_v31, 0.0  ;;  %v4300_v38 = vpack.c.bf16 %v2168_v32, %v2166_v35  ;;  %3479 = vmatprep.subr.bf16.mxu0 %v4160_v9  ;;  %v3983_v35 = vld [vmem:[#allocation11 + $0x40] sm:$0xff]  }
 0x6db   :  { %v4298_v36 = vpack.c.bf16 %v2169_v34, %v2167_v33  ;;  %v3981_v33 = vld [vmem:[#allocation11 + $0x50] sm:$0xff]   ;;  %v3982_v34 = vld [vmem:[#allocation11 + $0x48] sm:$0xff]  }
 0x6dc   :  { %3480 = vmatpush3.bf16.msra.mxu0 %v3981_v33 }
 0x6dd   :  { %2405 = vmatprep.mubr.bf16.mxu1 %v4298_v36  ;;  %3481 = vmatprep.subr.bf16.mxu0 %v4160_v9 }
 0x6de   :  { %2406 = vmatmul.mubr.bf16.vlgmr.msra.gmra.mxu1 %v4300_v38 }
 0x6df   :  { %3397 = vmatpush3.bf16.msra.mxu1 %v3938_v37  ;;  %v115_v37 = vld [vmem:[%s4370_s6] sm:$0x3]  ;;  %s4162_s6 = smov [#allocation13]  }
 0x6e0   :  { %3398 = vmatprep.subr.bf16.mxu1 %v3940_v39  ;;  %3482 = vmatpush3.bf16.msra.mxu0 %v3982_v34  ;;  %s3035_s16 = sshll.u32 %s4162_s6, 4  ;;  %s3036_s16 = int_to_ptr.vmem [resolvable:$true] %s3035_s16 }
 0x6e1   :  { %3483 = vmatprep.subr.bf16.mxu0 %v4160_v9  ;;  %s4119_s17 = scalar_lea.vmem %s3036_s16, 256  ;;  %p4124_p3 = scmp.lt.s32.totalorder %s3036_s16, %s3036_s16 }
 0x6e2   :  { %p4120_p2 = scmp.ne.s32.totalorder %s3036_s16, %s4119_s17  ;;  %p4125_p4 = scmp.lt.s32.totalorder %s4119_s17, %s4119_s17 }
 0x6e3   :  { %3399 = vmatpush3.bf16.msra.mxu1 %v3941_v40 }
 0x6e4   :  { %3400 = vmatprep.subr.bf16.mxu1 %v3943_v41  ;;  %3484 = vmatpush3.bf16.msra.mxu0 %v3983_v35  ;;  %p4126_p5 = por %p4125_p4, %p4124_p3 }
 0x6e6   :  { %p4127_p6 = pnand %p4126_p5, %p4120_p2 }
 0x6e7   :  { %3401 = vmatpush3.bf16.msra.mxu1 %v3944_v42  ;;  %v2695_v42 = vrot.slane %v115_v37, %v4249_v16 }
 0x6e8   :  { %3402 = vmatprep.subr.bf16.mxu1 %v3946_v43 }
 0x6eb   :  { %3403 = vmatpush3.bf16.msra.mxu1 %v3947_v44 }
 0x6ec   :  { %3404 = vmatprep.subr.bf16.mxu1 %v3949_v45 }
 0x6ef   :  { %3405 = vmatpush3.bf16.msra.mxu1 %v3950_v46 }
 0x6f0   :  { %3406 = vmatprep.subr.bf16.mxu1 %v3952_v47  ;;  %v2548_v28 = vpop.f32.mrf.mxu0 }
 0x6f2   :  { %v3467_v29 = vpop.f32.mrf.mxu0 }
 0x6f3   :  { %3407 = vmatpush3.bf16.msra.mxu1 %v3953_v48 }
 0x6f4   :  { %3408 = vmatprep.subr.bf16.mxu1 %v3955_v50  ;;  %v2551_v31 = vpop.f32.mrf.mxu0 }
 0x6f6   :  { %v3468_v32 = vpop.f32.mrf.mxu0 }
 0x6f7   :  { %3409 = vmatpush3.bf16.msra.mxu1 %v3956_v51 }
 0x6f8   :  { %3410 = vmatprep.subr.bf16.mxu1 %v3958_v53 }
 0x6fb   :  { %3411 = vmatpush3.bf16.msra.mxu1 %v3959_v54 }
 0x6fc   :  { %3427 = vmatprep.subr.bf16.mxu1 %v3960_v55  ;;  %v2980_v55 = vrot.slane %v115_v37, %v4246_v15 }
 0x79e   :  { %v2407_v60 = vpop.f32.mrf.mxu1 }
 0x79f   :  { %v2408_v6 = vadd.f32 %v2407_v60, %v2208_v63 }
 0x7a0   :  { %v2409_v61 = vpop.f32.mrf.mxu1 }
 0x7a1   :  { %v2410_v4 = vadd.f32 %v2409_v61, %v2212_v62 }
 0x7a2   :  { %v2411_v1 = vpop.f32.mrf.mxu1 }
 0x7a3   :  { %v2412_v2 = vadd.f32 %v2411_v1, %v2208_v63 }
 0x7a4   :  { %v2413_v3 = vpop.f32.mrf.mxu1 }
 0x7a5   :  { %v2414_v5 = vadd.f32 %v2413_v3, %v2212_v62  ;;  %v2416_v10 = vpack.c.bf16 %v2412_v2, %v2408_v6 }
 0x7a7   :  { %v2417_v7 = vpack.c.bf16 %v2414_v5, %v2410_v4 }
 0x7a9   :  { %2683 = vmatprep.mubr.bf16.mxu1 %v2417_v7 }
 0x7aa   :  { %2684 = vmatmul.mubr.bf16.vlgmr.msra.gmra.mxu1 %v2416_v10 }
 0x7ab   :  { %3428 = vmatpush3.bf16.msra.mxu1 %v3961_v8  ;;  %2968 = vmatprep.mubr.bf16.mxu1 %v4298_v36 }
 0x7ac   :  { %3429 = vmatprep.subr.bf16.mxu1 %v3962_v11 }
 0x7af   :  { %3430 = vmatpush3.bf16.msra.mxu1 %v3963_v14 }
 0x7b0   :  { %3431 = vmatprep.subr.bf16.mxu1 %v3964_v12 }
 0x7b3   :  { %3432 = vmatpush3.bf16.msra.mxu1 %v3965_v17 }
 0x7b4   :  { %3433 = vmatprep.subr.bf16.mxu1 %v3966_v18 }
 0x7b7   :  { %3434 = vmatpush3.bf16.msra.mxu1 %v3967_v19 }
 0x7b8   :  { %3435 = vmatprep.subr.bf16.mxu1 %v3968_v20 }
 0x7bb   :  { %3436 = vmatpush3.bf16.msra.mxu1 %v3969_v21 }
 0x7bc   :  { %3437 = vmatprep.subr.bf16.mxu1 %v3970_v22 }
 0x7bf   :  { %3438 = vmatpush3.bf16.msra.mxu1 %v3971_v23 }
 0x7c0   :  { %3439 = vmatprep.subr.bf16.mxu1 %v3972_v24 }
 0x7c3   :  { %3440 = vmatpush3.bf16.msra.mxu1 %v3973_v25 }
 0x7c4   :  { %3441 = vmatprep.subr.bf16.mxu1 %v3974_v0 }
 0x7c7   :  { %3442 = vmatpush3.bf16.msra.mxu1 %v3975_v27 }
 0x7ca   :  { %2969 = vmatmul.mubr.bf16.vlgmr.msra.gmra.mxu1 %v4300_v38 }
 0x86a   :  { %v3412_v36 = vpop.f32.mrf.mxu1 }
 0x86c   :  { %v3413_v38 = vpop.f32.mrf.mxu1 }
 0x86d   :  { %v3414_v39 = vadd.f32 %v3413_v38, %v3412_v36 }
 0x86e   :  { %v3415_v40 = vpop.f32.mrf.mxu1 }
 0x86f   :  { %v2686_v41 = vadd.f32 %v3414_v39, %v2548_v28 }
 0x870   :  { %v3416_v43 = vpop.f32.mrf.mxu1 }
 0x871   :  { %v3417_v44 = vadd.f32 %v3416_v43, %v3415_v40  ;;  %v2696_v45 = vadd.f32 %v2695_v42, %v2686_v41 }
 0x873   :  { %v2689_v46 = vadd.f32 %v3417_v44, %v2551_v31  ;;  %v2698_v48 = vmax.f32 %v2696_v45, 0.0 }
 0x875   :  { %v2697_v47 = vadd.f32 %v2695_v42, %v2689_v46 }
 0x877   :  { %v2699_v9 = vmax.f32 %v2697_v47, 0.0 }
 0x879   :  { %v2700_v49 = vpack.c.bf16 %v2699_v9, %v2698_v48 }
 0x87b   :  { %3486 = vmatmul.mubr.bf16.vlgmr.msra.gmra.mxu0 %v2700_v49 }
 0x88a   :  { %v3443_v50 = vpop.f32.mrf.mxu1 }
 0x88c   :  { %v3444_v51 = vpop.f32.mrf.mxu1 }
 0x88d   :  { %v3445_v54 = vadd.f32 %v3444_v51, %v3443_v50 }
 0x88e   :  { %v3446_v53 = vpop.f32.mrf.mxu1 }
 0x890   :  { %v3447_v16 = vpop.f32.mrf.mxu1 }
 0x891   :  { %v3448_v26 = vadd.f32 %v3447_v16, %v3446_v53 }
 0x93b   :  { %v2833_v56 = vpop.f32.mrf.mxu0 }
 0x93c   :  { %v2971_v57 = vadd.f32 %v3445_v54, %v2833_v56 }
 0x93d   :  { %v3487_v58 = vpop.f32.mrf.mxu0 }
 0x93e   :  { %v2981_v60 = vadd.f32 %v2980_v55, %v2971_v57 }
 0x93f   :  { %v2836_v13 = vpop.f32.mrf.mxu0 }
 0x940   :  { %v2974_v61 = vadd.f32 %v3448_v26, %v2836_v13  ;;  %v2988_v62 = vsel %vm4331_vm3, %v2981_v60, 0.0  ;;  %v3000_v4 = vsub.f32 0.0, %v2981_v60  ;;  %v3013_v25 = vmax.f32 %v2981_v60, 0.0 }
 0x941   :  { %v3488_v15 = vpop.f32.mrf.mxu0  ;;  %v2990_v63 = vmul.f32 %v2988_v62, %v2988_v62  ;;  %v3015_v21 = vsub.f32 0.0, %v2988_v62 }
 0x942   :  { %v2982_v1 = vadd.f32 %v2980_v55, %v2974_v61  ;;  %v3002_v5 = vmul.f32 1.442695, %v3000_v4 }
 0x943   :  { %2992 = vadd.xlane.f32.xlu0 %v2990_v63 }
 0x944   :  { %v2989_v2 = vsel %vm4331_vm3, %v2982_v1, 0.0  ;;  %v3001_v6 = vsub.f32 0.0, %v2982_v1  ;;  %3984 = vpow2.f32 %v3002_v5  ;;  %v3014_v33 = vmax.f32 %v2982_v1, 0.0 }
 0x945   :  { %v2991_v3 = vmul.f32 %v2989_v2, %v2989_v2  ;;  %v3016_v28 = vsub.f32 0.0, %v2989_v2 }
 0x946   :  { %v3004_v7 = vmul.f32 1.442695, %v3001_v6 }
 0x947   :  { %2994 = vadd.xlane.f32.xlu0 %v2991_v3 }
 0x948   :  { %3986 = vpow2.f32 %v3004_v7 }
 0x951   :  { %v3985_v8 = vpop.eup %3984 }
 0x952   :  { %v3006_v10 = vadd.f32 1.0, %v3985_v8 }
 0x954   :  { %3988 = vrcp.f32 %v3006_v10 }
 0x955   :  { %v3987_v11 = vpop.eup %3986 }
 0x956   :  { %v3007_v17 = vadd.f32 1.0, %v3987_v11 }
 0x961   :  { %v3989_v20 = vpop.eup %3988 }
 0x962   :  { %v3022_v0 = vsel %vm4341_vm6, %v3989_v20, 0.0 }
 0x9cc   :  { %v2993_v14 = vpop.xlane.xlu0 %2992 }
 0x9cd   :  { %v2996_v12 = vmax.f32 %v2993_v14, 1.1920929e-07 }
 0x9cf   :  { %3990 = vrsqrt.f32 %v2996_v12 }
 0x9d0   :  { %v2995_v18 = vpop.xlane.xlu0 %2994  ;;  %3992 = vrcp.f32 %v3007_v17 }
 0x9d1   :  { %v2997_v19 = vmax.f32 %v2995_v18, 1.1920929e-07 }
 0x9d3   :  { %3994 = vrsqrt.f32 %v2997_v19 }
 0x9dc   :  { %v3991_v23 = vpop.eup %3990 }
 0x9dd   :  { %v3017_v24 = vmul.f32 %v3991_v23, %v3015_v21  ;;  %v3993_v27 = vpop.eup %3992 }
 0x9de   :  { %v3023_v34 = vsel %vm4341_vm6, %v3993_v27, 0.0 }
 0x9df   :  { %v3024_v29 = vsel %vm4331_vm3, %v3017_v24, %v3022_v0 }
 0x9e0   :  { %v3995_v30 = vpop.eup %3994  ;;  %v3026_v31 = vsel %vm3012_vm7, %v3013_v25, %v3024_v29 }
 0x9e1   :  { %v3018_v32 = vmul.f32 %v3995_v30, %v3016_v28  ;;  %3028 = vst [vmem:[#allocation13] sm:$0xff] %v3026_v31 }
 0x9e3   :  { %v3025_v35 = vsel %vm4331_vm3, %v3018_v32, %v3023_v34 }
 0x9e4   :  { %v3027_v36 = vsel %vm3012_vm7, %v3014_v33, %v3025_v35 }
 0x9e5   :  { %3029 = vst [vmem:[#allocation13 + $0x8] sm:$0xff] %v3027_v36 }
 0x9e6   :  { %4130 = shalt.err (!%p4127_p6)
}
 0x9e7   :  { %3041 = dma.vmem_to_hbm [thread:$0]  %s3036_s16, 256, %s4372_s8, [#allocation4], %s4150_s30, %s4150_s30, %s4151_s9  }
 0x9e8   :  { %4147 = dma.done.wait [#allocation4], 256  }
 0x9e9   :  { %4148 = vsyncadd [#allocation4], 4294967040 }
 0x9ea   :  { %3045 = vsyncpa [#allocation3], 1 }
 0x9eb   :  { %3046 = vsyncpa [#allocation6], 1 }
 0x9ec   :  { %3047 = vsyncpa [#allocation9], 1 }
 0x9ed   :  { %3048 = vsyncpa [#allocation12], 1 }
 0x9ee   :  { %3049 = vsyncpa [#allocation4], 1 }

</bundles_post_ra>
